<compile_context>
chip_gen: v6e
topology: v6e:2x2x1
jax: 0.10.0
libtpu: 0.0.40
codegen_flags: <defaults>
</compile_context>

<pallas_src>
import jax
import jax.numpy as jnp
from jax import lax
from jax.experimental import pallas as pl
from jax.experimental.pallas import tpu as pltpu

# Problem sizes (module default c=64, k=3; small batch/spatial).
N = 2
C = 64
H = 8
W = 8
K = 3
PAD = (K - 1) // 2
EPS = 1e-5                      # BatchNorm2d default eps

HP = H + 2 * PAD
WP = W + 2 * PAD
M = N * H * W                   # 128 rows -> matches an MXU tile edge


# ----------------------------- kernel helpers ------------------------------

def _conv3x3(pad_ref, w_ref, b_ref):
    """3x3 'same' conv as 9 shifted (M,C)@(C,C) MXU matmuls over the
    halo-padded VMEM scratch. Returns (M, C) f32."""
    acc = jnp.zeros((M, C), jnp.float32)
    for t in range(K * K):
        dh, dw = divmod(t, K)
        patch = pad_ref[:, dh:dh + H, dw:dw + W, :].reshape(M, C)
        acc = acc + jnp.dot(patch, w_ref[t], preferred_element_type=jnp.float32)
    return acc + b_ref[...]


def _bn_train(y, g, b):
    """Training-mode BatchNorm2d over flattened (M, C): biased batch stats,
    single reduction pass (sum and sum-of-squares)."""
    inv_m = 1.0 / y.shape[0]
    mean = jnp.sum(y, axis=0, keepdims=True) * inv_m
    ex2 = jnp.sum(y * y, axis=0, keepdims=True) * inv_m
    var = jnp.maximum(ex2 - mean * mean, 0.0)
    return (y - mean) * lax.rsqrt(var + EPS) * g + b


# -------------------------------- fused kernel ------------------------------

def resnet_block_kernel(x_ref, w1_ref, b1_ref, g1_ref, be1_ref,
                        w2_ref, b2_ref, g2_ref, be2_ref,
                        o_ref, pad_ref):
    # pad_ref: (N, H+2, W+2, C) halo-padded activation scratch, reused by both
    # convs; zeroed once, only the interior is ever rewritten.
    pad_ref[...] = jnp.zeros_like(pad_ref)

    x4 = x_ref[...]                                       # (N, H, W, C), reused for residual
    pad_ref[:, PAD:PAD + H, PAD:PAD + W, :] = x4

    # ---- stage 1: relu(bn1(conv1(x))) ----
    y = _conv3x3(pad_ref, w1_ref, b1_ref)
    y = jnp.maximum(_bn_train(y, g1_ref[...], be1_ref[...]), 0.0)

    # ---- stage 2: relu(bn2(conv2(y)) + x); halo border is still zero ----
    pad_ref[:, PAD:PAD + H, PAD:PAD + W, :] = y.reshape(N, H, W, C)
    z = _conv3x3(pad_ref, w2_ref, b2_ref)
    z = _bn_train(z, g2_ref[...], be2_ref[...])
    o_ref[...] = jnp.maximum(z + x4.reshape(M, C), 0.0)


# -------------------------------- wrapper -----------------------------------

_VMEM = pl.BlockSpec(memory_space=pltpu.MemorySpace.VMEM)


@jax.jit
def resnet_block(x_nchw, params):
    """x_nchw: (N, C, H, W) float32, PyTorch layout. Returns NCHW."""
    w1, b1, g1, be1, w2, b2, g2, be2 = params
    x = jnp.transpose(x_nchw, (0, 2, 3, 1)).astype(jnp.float32)   # -> NHWC

    out2d = pl.pallas_call(
        resnet_block_kernel,
        out_shape=jax.ShapeDtypeStruct((M, C), jnp.float32),
        in_specs=[_VMEM] * 9,
        out_specs=_VMEM,
        scratch_shapes=[pltpu.VMEM((N, HP, WP, C), jnp.float32)],
        compiler_params=pltpu.CompilerParams(vmem_limit_bytes=32 * 1024 * 1024),
    )(x, w1, b1, g1, be1, w2, b2, g2, be2)

    return jnp.transpose(out2d.reshape(N, H, W, C), (0, 3, 1, 2))  # -> NCHW


# ------------------------- pure-JAX reference (check) -----------------------

def ref_forward(x_nchw, params):
    w1, b1, g1, be1, w2, b2, g2, be2 = params
    x = jnp.transpose(x_nchw, (0, 2, 3, 1)).astype(jnp.float32)

    def conv(a, wf, bf):
        wf4 = wf.reshape(K, K, C, C)  # HWIO (tap-major matches kernel weights)
        y = lax.conv_general_dilated(
            a, wf4, window_strides=(1, 1), padding="SAME",
            dimension_numbers=("NHWC", "HWIO", "NHWC"))
        return y + bf.reshape(1, 1, 1, C)

    def bn(a, g, b):
        mean = jnp.mean(a, axis=(0, 1, 2), keepdims=True)
        var = jnp.mean((a - mean) ** 2, axis=(0, 1, 2), keepdims=True)
        return ((a - mean) * lax.rsqrt(var + EPS) * g.reshape(1, 1, 1, C)
                + b.reshape(1, 1, 1, C))

    r = jax.nn.relu(bn(conv(x, w1, b1), g1, be1))
    r = bn(conv(r, w2, b2), g2, be2)
    out = jax.nn.relu(r + x)
    return jnp.transpose(out, (0, 3, 1, 2))


# ---------------------------------- main -------------------------------------

if __name__ == "__main__":
    key = jax.random.PRNGKey(0)
    k_w1, k_b1, k_w2, k_b2, k_x = jax.random.split(key, 5)

    # Deterministic synthetic params (Conv2d-like uniform init; BN default init).
    fan_in = C * K * K
    bound = 1.0 / (fan_in ** 0.5)
    w1 = jax.random.uniform(k_w1, (K * K, C, C), jnp.float32, -bound, bound)
    b1 = jax.random.uniform(k_b1, (1, C), jnp.float32, -bound, bound)
    w2 = jax.random.uniform(k_w2, (K * K, C, C), jnp.float32, -bound, bound)
    b2 = jax.random.uniform(k_b2, (1, C), jnp.float32, -bound, bound)
    g1 = jnp.ones((1, C), jnp.float32)
    be1 = jnp.zeros((1, C), jnp.float32)
    g2 = jnp.ones((1, C), jnp.float32)
    be2 = jnp.zeros((1, C), jnp.float32)
    params = (w1, b1, g1, be1, w2, b2, g2, be2)

    # TODO(synk): transpose=True (nn.ConvTranspose2d) branch of __init__ not implemented.

    x = jax.random.normal(k_x, (N, C, H, W), jnp.float32)  # PyTorch NCHW input

    out = jax.block_until_ready(resnet_block(x, params))
    ref = jax.block_until_ready(ref_forward(x, params))

    assert out.shape == (N, C, H, W)
    if not jnp.allclose(out, ref, atol=1e-3, rtol=1e-3):
        max_err = float(jnp.max(jnp.abs(out - ref)))
        raise SystemExit(f"mismatch vs reference, max abs err = {max_err}")
    print("KERNEL_OK")
</pallas_src>

<mosaic_0001>
module attributes {stable_mosaic.version = 11 : i64} {
  func.func @resnet_block_kernel(%arg0: memref<2x8x8x64xf32, #tpu.memory_space<vmem>>, %arg1: memref<9x64x64xf32, #tpu.memory_space<vmem>>, %arg2: memref<1x64xf32, #tpu.memory_space<vmem>>, %arg3: memref<1x64xf32, #tpu.memory_space<vmem>>, %arg4: memref<1x64xf32, #tpu.memory_space<vmem>>, %arg5: memref<9x64x64xf32, #tpu.memory_space<vmem>>, %arg6: memref<1x64xf32, #tpu.memory_space<vmem>>, %arg7: memref<1x64xf32, #tpu.memory_space<vmem>>, %arg8: memref<1x64xf32, #tpu.memory_space<vmem>>, %arg9: memref<128x64xf32, #tpu.memory_space<vmem>>, %arg10: memref<2x10x10x64xf32, #tpu.memory_space<vmem>>) attributes {dimension_semantics = [], scalar_prefetch = 0 : i64, scratch_operands = 1 : i64, tpu.core_type = #tpu.core_type<tc>} {
    %cst = arith.constant 0.000000e+00 : f32
    %0 = vector.broadcast %cst : f32 to vector<2x10x10x64xf32>
    %c0 = arith.constant 0 : index
    %c0_0 = arith.constant 0 : index
    %c0_1 = arith.constant 0 : index
    %c0_2 = arith.constant 0 : index
    %1 = vector.load %arg10[%c0, %c0_0, %c0_1, %c0_2] : memref<2x10x10x64xf32, #tpu.memory_space<vmem>>, vector<2x10x10x64xf32>
    tpu.vector_store %arg10[%c0, %c0_0, %c0_1, %c0_2], %0 {strides = array<i32>} : memref<2x10x10x64xf32, #tpu.memory_space<vmem>>, vector<2x10x10x64xf32>,
    %c0_3 = arith.constant 0 : index
    %c0_4 = arith.constant 0 : index
    %c0_5 = arith.constant 0 : index
    %c0_6 = arith.constant 0 : index
    %2 = vector.load %arg0[%c0_3, %c0_4, %c0_5, %c0_6] : memref<2x8x8x64xf32, #tpu.memory_space<vmem>>, vector<2x8x8x64xf32>
    %c0_7 = arith.constant 0 : index
    %c1 = arith.constant 1 : index
    %c1_8 = arith.constant 1 : index
    %c0_9 = arith.constant 0 : index
    %3 = vector.load %arg10[%c0_7, %c1, %c1_8, %c0_9] : memref<2x10x10x64xf32, #tpu.memory_space<vmem>>, vector<2x8x8x64xf32>
    tpu.vector_store %arg10[%c0_7, %c1, %c1_8, %c0_9], %2 {strides = array<i32>} : memref<2x10x10x64xf32, #tpu.memory_space<vmem>>, vector<2x8x8x64xf32>,
    %cst_10 = arith.constant 0.000000e+00 : f32
    %4 = vector.broadcast %cst_10 : f32 to vector<128x64xf32>
    %c0_11 = arith.constant 0 : index
    %c0_12 = arith.constant 0 : index
    %c0_13 = arith.constant 0 : index
    %c0_14 = arith.constant 0 : index
    %5 = vector.load %arg10[%c0_11, %c0_12, %c0_13, %c0_14] : memref<2x10x10x64xf32, #tpu.memory_space<vmem>>, vector<2x8x8x64xf32>
    %6 = vector.shape_cast %5 : vector<2x8x8x64xf32> to vector<128x64xf32>
    %c0_15 = arith.constant 0 : index
    %c0_16 = arith.constant 0 : index
    %c0_17 = arith.constant 0 : index
    %7 = vector.load %arg1[%c0_15, %c0_16, %c0_17] : memref<9x64x64xf32, #tpu.memory_space<vmem>>, vector<1x64x64xf32>
    %8 = vector.shape_cast %7 : vector<1x64x64xf32> to vector<64x64xf32>
    %cst_18 = arith.constant dense<0.000000e+00> : vector<128x64xf32>
    %9 = tpu.matmul %6, %8, %cst_18 {dimension_numbers = #tpu.dot_dimension_numbers<[1], [0], [0], [1], [0, 0, 1, 1], [], []>} : vector<128x64xf32>, vector<64x64xf32>, vector<128x64xf32> -> vector<128x64xf32>
    %10 = arith.addf %4, %9 : vector<128x64xf32>
    %c0_19 = arith.constant 0 : index
    %c0_20 = arith.constant 0 : index
    %c1_21 = arith.constant 1 : index
    %c0_22 = arith.constant 0 : index
    %11 = vector.load %arg10[%c0_19, %c0_20, %c1_21, %c0_22] : memref<2x10x10x64xf32, #tpu.memory_space<vmem>>, vector<2x8x8x64xf32>
    %12 = vector.shape_cast %11 : vector<2x8x8x64xf32> to vector<128x64xf32>
    %c1_23 = arith.constant 1 : index
    %c0_24 = arith.constant 0 : index
    %c0_25 = arith.constant 0 : index
    %13 = vector.load %arg1[%c1_23, %c0_24, %c0_25] : memref<9x64x64xf32, #tpu.memory_space<vmem>>, vector<1x64x64xf32>
    %14 = vector.shape_cast %13 : vector<1x64x64xf32> to vector<64x64xf32>
    %cst_26 = arith.constant dense<0.000000e+00> : vector<128x64xf32>
    %15 = tpu.matmul %12, %14, %cst_26 {dimension_numbers = #tpu.dot_dimension_numbers<[1], [0], [0], [1], [0, 0, 1, 1], [], []>} : vector<128x64xf32>, vector<64x64xf32>, vector<128x64xf32> -> vector<128x64xf32>
    %16 = arith.addf %10, %15 : vector<128x64xf32>
    %c0_27 = arith.constant 0 : index
    %c0_28 = arith.constant 0 : index
    %c2 = arith.constant 2 : index
    %c0_29 = arith.constant 0 : index
    %17 = vector.load %arg10[%c0_27, %c0_28, %c2, %c0_29] : memref<2x10x10x64xf32, #tpu.memory_space<vmem>>, vector<2x8x8x64xf32>
    %18 = vector.shape_cast %17 : vector<2x8x8x64xf32> to vector<128x64xf32>
    %c2_30 = arith.constant 2 : index
    %c0_31 = arith.constant 0 : index
    %c0_32 = arith.constant 0 : index
    %19 = vector.load %arg1[%c2_30, %c0_31, %c0_32] : memref<9x64x64xf32, #tpu.memory_space<vmem>>, vector<1x64x64xf32>
    %20 = vector.shape_cast %19 : vector<1x64x64xf32> to vector<64x64xf32>
    %cst_33 = arith.constant dense<0.000000e+00> : vector<128x64xf32>
    %21 = tpu.matmul %18, %20, %cst_33 {dimension_numbers = #tpu.dot_dimension_numbers<[1], [0], [0], [1], [0, 0, 1, 1], [], []>} : vector<128x64xf32>, vector<64x64xf32>, vector<128x64xf32> -> vector<128x64xf32>
    %22 = arith.addf %16, %21 : vector<128x64xf32>
    %c0_34 = arith.constant 0 : index
    %c1_35 = arith.constant 1 : index
    %c0_36 = arith.constant 0 : index
    %c0_37 = arith.constant 0 : index
    %23 = vector.load %arg10[%c0_34, %c1_35, %c0_36, %c0_37] : memref<2x10x10x64xf32, #tpu.memory_space<vmem>>, vector<2x8x8x64xf32>
    %24 = vector.shape_cast %23 : vector<2x8x8x64xf32> to vector<128x64xf32>
    %c3 = arith.constant 3 : index
    %c0_38 = arith.constant 0 : index
    %c0_39 = arith.constant 0 : index
    %25 = vector.load %arg1[%c3, %c0_38, %c0_39] : memref<9x64x64xf32, #tpu.memory_space<vmem>>, vector<1x64x64xf32>
    %26 = vector.shape_cast %25 : vector<1x64x64xf32> to vector<64x64xf32>
    %cst_40 = arith.constant dense<0.000000e+00> : vector<128x64xf32>
    %27 = tpu.matmul %24, %26, %cst_40 {dimension_numbers = #tpu.dot_dimension_numbers<[1], [0], [0], [1], [0, 0, 1, 1], [], []>} : vector<128x64xf32>, vector<64x64xf32>, vector<128x64xf32> -> vector<128x64xf32>
    %28 = arith.addf %22, %27 : vector<128x64xf32>
    %c0_41 = arith.constant 0 : index
    %c1_42 = arith.constant 1 : index
    %c1_43 = arith.constant 1 : index
    %c0_44 = arith.constant 0 : index
    %29 = vector.load %arg10[%c0_41, %c1_42, %c1_43, %c0_44] : memref<2x10x10x64xf32, #tpu.memory_space<vmem>>, vector<2x8x8x64xf32>
    %30 = vector.shape_cast %29 : vector<2x8x8x64xf32> to vector<128x64xf32>
    %c4 = arith.constant 4 : index
    %c0_45 = arith.constant 0 : index
    %c0_46 = arith.constant 0 : index
    %31 = vector.load %arg1[%c4, %c0_45, %c0_46] : memref<9x64x64xf32, #tpu.memory_space<vmem>>, vector<1x64x64xf32>
    %32 = vector.shape_cast %31 : vector<1x64x64xf32> to vector<64x64xf32>
    %cst_47 = arith.constant dense<0.000000e+00> : vector<128x64xf32>
    %33 = tpu.matmul %30, %32, %cst_47 {dimension_numbers = #tpu.dot_dimension_numbers<[1], [0], [0], [1], [0, 0, 1, 1], [], []>} : vector<128x64xf32>, vector<64x64xf32>, vector<128x64xf32> -> vector<128x64xf32>
    %34 = arith.addf %28, %33 : vector<128x64xf32>
    %c0_48 = arith.constant 0 : index
    %c1_49 = arith.constant 1 : index
    %c2_50 = arith.constant 2 : index
    %c0_51 = arith.constant 0 : index
    %35 = vector.load %arg10[%c0_48, %c1_49, %c2_50, %c0_51] : memref<2x10x10x64xf32, #tpu.memory_space<vmem>>, vector<2x8x8x64xf32>
    %36 = vector.shape_cast %35 : vector<2x8x8x64xf32> to vector<128x64xf32>
    %c5 = arith.constant 5 : index
    %c0_52 = arith.constant 0 : index
    %c0_53 = arith.constant 0 : index
    %37 = vector.load %arg1[%c5, %c0_52, %c0_53] : memref<9x64x64xf32, #tpu.memory_space<vmem>>, vector<1x64x64xf32>
    %38 = vector.shape_cast %37 : vector<1x64x64xf32> to vector<64x64xf32>
    %cst_54 = arith.constant dense<0.000000e+00> : vector<128x64xf32>
    %39 = tpu.matmul %36, %38, %cst_54 {dimension_numbers = #tpu.dot_dimension_numbers<[1], [0], [0], [1], [0, 0, 1, 1], [], []>} : vector<128x64xf32>, vector<64x64xf32>, vector<128x64xf32> -> vector<128x64xf32>
    %40 = arith.addf %34, %39 : vector<128x64xf32>
    %c0_55 = arith.constant 0 : index
    %c2_56 = arith.constant 2 : index
    %c0_57 = arith.constant 0 : index
    %c0_58 = arith.constant 0 : index
    %41 = vector.load %arg10[%c0_55, %c2_56, %c0_57, %c0_58] : memref<2x10x10x64xf32, #tpu.memory_space<vmem>>, vector<2x8x8x64xf32>
    %42 = vector.shape_cast %41 : vector<2x8x8x64xf32> to vector<128x64xf32>
    %c6 = arith.constant 6 : index
    %c0_59 = arith.constant 0 : index
    %c0_60 = arith.constant 0 : index
    %43 = vector.load %arg1[%c6, %c0_59, %c0_60] : memref<9x64x64xf32, #tpu.memory_space<vmem>>, vector<1x64x64xf32>
    %44 = vector.shape_cast %43 : vector<1x64x64xf32> to vector<64x64xf32>
    %cst_61 = arith.constant dense<0.000000e+00> : vector<128x64xf32>
    %45 = tpu.matmul %42, %44, %cst_61 {dimension_numbers = #tpu.dot_dimension_numbers<[1], [0], [0], [1], [0, 0, 1, 1], [], []>} : vector<128x64xf32>, vector<64x64xf32>, vector<128x64xf32> -> vector<128x64xf32>
    %46 = arith.addf %40, %45 : vector<128x64xf32>
    %c0_62 = arith.constant 0 : index
    %c2_63 = arith.constant 2 : index
    %c1_64 = arith.constant 1 : index
    %c0_65 = arith.constant 0 : index
    %47 = vector.load %arg10[%c0_62, %c2_63, %c1_64, %c0_65] : memref<2x10x10x64xf32, #tpu.memory_space<vmem>>, vector<2x8x8x64xf32>
    %48 = vector.shape_cast %47 : vector<2x8x8x64xf32> to vector<128x64xf32>
    %c7 = arith.constant 7 : index
    %c0_66 = arith.constant 0 : index
    %c0_67 = arith.constant 0 : index
    %49 = vector.load %arg1[%c7, %c0_66, %c0_67] : memref<9x64x64xf32, #tpu.memory_space<vmem>>, vector<1x64x64xf32>
    %50 = vector.shape_cast %49 : vector<1x64x64xf32> to vector<64x64xf32>
    %cst_68 = arith.constant dense<0.000000e+00> : vector<128x64xf32>
    %51 = tpu.matmul %48, %50, %cst_68 {dimension_numbers = #tpu.dot_dimension_numbers<[1], [0], [0], [1], [0, 0, 1, 1], [], []>} : vector<128x64xf32>, vector<64x64xf32>, vector<128x64xf32> -> vector<128x64xf32>
    %52 = arith.addf %46, %51 : vector<128x64xf32>
    %c0_69 = arith.constant 0 : index
    %c2_70 = arith.constant 2 : index
    %c2_71 = arith.constant 2 : index
    %c0_72 = arith.constant 0 : index
    %53 = vector.load %arg10[%c0_69, %c2_70, %c2_71, %c0_72] : memref<2x10x10x64xf32, #tpu.memory_space<vmem>>, vector<2x8x8x64xf32>
    %54 = vector.shape_cast %53 : vector<2x8x8x64xf32> to vector<128x64xf32>
    %c8 = arith.constant 8 : index
    %c0_73 = arith.constant 0 : index
    %c0_74 = arith.constant 0 : index
    %55 = vector.load %arg1[%c8, %c0_73, %c0_74] : memref<9x64x64xf32, #tpu.memory_space<vmem>>, vector<1x64x64xf32>
    %56 = vector.shape_cast %55 : vector<1x64x64xf32> to vector<64x64xf32>
    %cst_75 = arith.constant dense<0.000000e+00> : vector<128x64xf32>
    %57 = tpu.matmul %54, %56, %cst_75 {dimension_numbers = #tpu.dot_dimension_numbers<[1], [0], [0], [1], [0, 0, 1, 1], [], []>} : vector<128x64xf32>, vector<64x64xf32>, vector<128x64xf32> -> vector<128x64xf32>
    %58 = arith.addf %52, %57 : vector<128x64xf32>
    %c0_76 = arith.constant 0 : index
    %c0_77 = arith.constant 0 : index
    %59 = vector.load %arg2[%c0_76, %c0_77] : memref<1x64xf32, #tpu.memory_space<vmem>>, vector<1x64xf32>
    %60 = vector.broadcast %59 : vector<1x64xf32> to vector<128x64xf32>
    %61 = arith.addf %58, %60 : vector<128x64xf32>
    %c0_78 = arith.constant 0 : index
    %c0_79 = arith.constant 0 : index
    %62 = vector.load %arg3[%c0_78, %c0_79] : memref<1x64xf32, #tpu.memory_space<vmem>>, vector<1x64xf32>
    %c0_80 = arith.constant 0 : index
    %c0_81 = arith.constant 0 : index
    %63 = vector.load %arg4[%c0_80, %c0_81] : memref<1x64xf32, #tpu.memory_space<vmem>>, vector<1x64xf32>
    %cst_82 = arith.constant dense<0.000000e+00> : vector<64xf32>
    %64 = vector.multi_reduction <add>, %61, %cst_82 [0] : vector<128x64xf32> to vector<64xf32>
    %65 = vector.shape_cast %64 : vector<64xf32> to vector<1x64xf32>
    %cst_83 = arith.constant 7.812500e-03 : f32
    %66 = vector.broadcast %cst_83 : f32 to vector<1x64xf32>
    %67 = arith.mulf %65, %66 : vector<1x64xf32>
    %68 = arith.mulf %61, %61 : vector<128x64xf32>
    %cst_84 = arith.constant dense<0.000000e+00> : vector<64xf32>
    %69 = vector.multi_reduction <add>, %68, %cst_84 [0] : vector<128x64xf32> to vector<64xf32>
    %70 = vector.shape_cast %69 : vector<64xf32> to vector<1x64xf32>
    %cst_85 = arith.constant 7.812500e-03 : f32
    %71 = vector.broadcast %cst_85 : f32 to vector<1x64xf32>
    %72 = arith.mulf %70, %71 : vector<1x64xf32>
    %73 = arith.mulf %67, %67 : vector<1x64xf32>
    %74 = arith.subf %72, %73 : vector<1x64xf32>
    %cst_86 = arith.constant 0.000000e+00 : f32
    %75 = vector.broadcast %cst_86 : f32 to vector<1x64xf32>
    %76 = arith.maximumf %74, %75 : vector<1x64xf32>
    %77 = vector.broadcast %67 : vector<1x64xf32> to vector<128x64xf32>
    %78 = arith.subf %61, %77 : vector<128x64xf32>
    %cst_87 = arith.constant 9.99999974E-6 : f32
    %79 = vector.broadcast %cst_87 : f32 to vector<1x64xf32>
    %80 = arith.addf %76, %79 : vector<1x64xf32>
    %81 = math.rsqrt %80 : vector<1x64xf32>
    %82 = vector.broadcast %81 : vector<1x64xf32> to vector<128x64xf32>
    %83 = arith.mulf %78, %82 : vector<128x64xf32>
    %84 = vector.broadcast %62 : vector<1x64xf32> to vector<128x64xf32>
    %85 = arith.mulf %83, %84 : vector<128x64xf32>
    %86 = vector.broadcast %63 : vector<1x64xf32> to vector<128x64xf32>
    %87 = arith.addf %85, %86 : vector<128x64xf32>
    %cst_88 = arith.constant 0.000000e+00 : f32
    %88 = vector.broadcast %cst_88 : f32 to vector<128x64xf32>
    %89 = arith.maximumf %87, %88 : vector<128x64xf32>
    %90 = vector.shape_cast %89 : vector<128x64xf32> to vector<2x8x8x64xf32>
    %c0_89 = arith.constant 0 : index
    %c1_90 = arith.constant 1 : index
    %c1_91 = arith.constant 1 : index
    %c0_92 = arith.constant 0 : index
    %91 = vector.load %arg10[%c0_89, %c1_90, %c1_91, %c0_92] : memref<2x10x10x64xf32, #tpu.memory_space<vmem>>, vector<2x8x8x64xf32>
    tpu.vector_store %arg10[%c0_89, %c1_90, %c1_91, %c0_92], %90 {strides = array<i32>} : memref<2x10x10x64xf32, #tpu.memory_space<vmem>>, vector<2x8x8x64xf32>,
    %cst_93 = arith.constant 0.000000e+00 : f32
    %92 = vector.broadcast %cst_93 : f32 to vector<128x64xf32>
    %c0_94 = arith.constant 0 : index
    %c0_95 = arith.constant 0 : index
    %c0_96 = arith.constant 0 : index
    %c0_97 = arith.constant 0 : index
    %93 = vector.load %arg10[%c0_94, %c0_95, %c0_96, %c0_97] : memref<2x10x10x64xf32, #tpu.memory_space<vmem>>, vector<2x8x8x64xf32>
    %94 = vector.shape_cast %93 : vector<2x8x8x64xf32> to vector<128x64xf32>
    %c0_98 = arith.constant 0 : index
    %c0_99 = arith.constant 0 : index
    %c0_100 = arith.constant 0 : index
    %95 = vector.load %arg5[%c0_98, %c0_99, %c0_100] : memref<9x64x64xf32, #tpu.memory_space<vmem>>, vector<1x64x64xf32>
    %96 = vector.shape_cast %95 : vector<1x64x64xf32> to vector<64x64xf32>
    %cst_101 = arith.constant dense<0.000000e+00> : vector<128x64xf32>
    %97 = tpu.matmul %94, %96, %cst_101 {dimension_numbers = #tpu.dot_dimension_numbers<[1], [0], [0], [1], [0, 0, 1, 1], [], []>} : vector<128x64xf32>, vector<64x64xf32>, vector<128x64xf32> -> vector<128x64xf32>
    %98 = arith.addf %92, %97 : vector<128x64xf32>
    %c0_102 = arith.constant 0 : index
    %c0_103 = arith.constant 0 : index
    %c1_104 = arith.constant 1 : index
    %c0_105 = arith.constant 0 : index
    %99 = vector.load %arg10[%c0_102, %c0_103, %c1_104, %c0_105] : memref<2x10x10x64xf32, #tpu.memory_space<vmem>>, vector<2x8x8x64xf32>
    %100 = vector.shape_cast %99 : vector<2x8x8x64xf32> to vector<128x64xf32>
    %c1_106 = arith.constant 1 : index
    %c0_107 = arith.constant 0 : index
    %c0_108 = arith.constant 0 : index
    %101 = vector.load %arg5[%c1_106, %c0_107, %c0_108] : memref<9x64x64xf32, #tpu.memory_space<vmem>>, vector<1x64x64xf32>
    %102 = vector.shape_cast %101 : vector<1x64x64xf32> to vector<64x64xf32>
    %cst_109 = arith.constant dense<0.000000e+00> : vector<128x64xf32>
    %103 = tpu.matmul %100, %102, %cst_109 {dimension_numbers = #tpu.dot_dimension_numbers<[1], [0], [0], [1], [0, 0, 1, 1], [], []>} : vector<128x64xf32>, vector<64x64xf32>, vector<128x64xf32> -> vector<128x64xf32>
    %104 = arith.addf %98, %103 : vector<128x64xf32>
    %c0_110 = arith.constant 0 : index
    %c0_111 = arith.constant 0 : index
    %c2_112 = arith.constant 2 : index
    %c0_113 = arith.constant 0 : index
    %105 = vector.load %arg10[%c0_110, %c0_111, %c2_112, %c0_113] : memref<2x10x10x64xf32, #tpu.memory_space<vmem>>, vector<2x8x8x64xf32>
    %106 = vector.shape_cast %105 : vector<2x8x8x64xf32> to vector<128x64xf32>
    %c2_114 = arith.constant 2 : index
    %c0_115 = arith.constant 0 : index
    %c0_116 = arith.constant 0 : index
    %107 = vector.load %arg5[%c2_114, %c0_115, %c0_116] : memref<9x64x64xf32, #tpu.memory_space<vmem>>, vector<1x64x64xf32>
    %108 = vector.shape_cast %107 : vector<1x64x64xf32> to vector<64x64xf32>
    %cst_117 = arith.constant dense<0.000000e+00> : vector<128x64xf32>
    %109 = tpu.matmul %106, %108, %cst_117 {dimension_numbers = #tpu.dot_dimension_numbers<[1], [0], [0], [1], [0, 0, 1, 1], [], []>} : vector<128x64xf32>, vector<64x64xf32>, vector<128x64xf32> -> vector<128x64xf32>
    %110 = arith.addf %104, %109 : vector<128x64xf32>
    %c0_118 = arith.constant 0 : index
    %c1_119 = arith.constant 1 : index
    %c0_120 = arith.constant 0 : index
    %c0_121 = arith.constant 0 : index
    %111 = vector.load %arg10[%c0_118, %c1_119, %c0_120, %c0_121] : memref<2x10x10x64xf32, #tpu.memory_space<vmem>>, vector<2x8x8x64xf32>
    %112 = vector.shape_cast %111 : vector<2x8x8x64xf32> to vector<128x64xf32>
    %c3_122 = arith.constant 3 : index
    %c0_123 = arith.constant 0 : index
    %c0_124 = arith.constant 0 : index
    %113 = vector.load %arg5[%c3_122, %c0_123, %c0_124] : memref<9x64x64xf32, #tpu.memory_space<vmem>>, vector<1x64x64xf32>
    %114 = vector.shape_cast %113 : vector<1x64x64xf32> to vector<64x64xf32>
    %cst_125 = arith.constant dense<0.000000e+00> : vector<128x64xf32>
    %115 = tpu.matmul %112, %114, %cst_125 {dimension_numbers = #tpu.dot_dimension_numbers<[1], [0], [0], [1], [0, 0, 1, 1], [], []>} : vector<128x64xf32>, vector<64x64xf32>, vector<128x64xf32> -> vector<128x64xf32>
    %116 = arith.addf %110, %115 : vector<128x64xf32>
    %c0_126 = arith.constant 0 : index
    %c1_127 = arith.constant 1 : index
    %c1_128 = arith.constant 1 : index
    %c0_129 = arith.constant 0 : index
    %117 = vector.load %arg10[%c0_126, %c1_127, %c1_128, %c0_129] : memref<2x10x10x64xf32, #tpu.memory_space<vmem>>, vector<2x8x8x64xf32>
    %118 = vector.shape_cast %117 : vector<2x8x8x64xf32> to vector<128x64xf32>
    %c4_130 = arith.constant 4 : index
    %c0_131 = arith.constant 0 : index
    %c0_132 = arith.constant 0 : index
    %119 = vector.load %arg5[%c4_130, %c0_131, %c0_132] : memref<9x64x64xf32, #tpu.memory_space<vmem>>, vector<1x64x64xf32>
    %120 = vector.shape_cast %119 : vector<1x64x64xf32> to vector<64x64xf32>
    %cst_133 = arith.constant dense<0.000000e+00> : vector<128x64xf32>
    %121 = tpu.matmul %118, %120, %cst_133 {dimension_numbers = #tpu.dot_dimension_numbers<[1], [0], [0], [1], [0, 0, 1, 1], [], []>} : vector<128x64xf32>, vector<64x64xf32>, vector<128x64xf32> -> vector<128x64xf32>
    %122 = arith.addf %116, %121 : vector<128x64xf32>
    %c0_134 = arith.constant 0 : index
    %c1_135 = arith.constant 1 : index
    %c2_136 = arith.constant 2 : index
    %c0_137 = arith.constant 0 : index
    %123 = vector.load %arg10[%c0_134, %c1_135, %c2_136, %c0_137] : memref<2x10x10x64xf32, #tpu.memory_space<vmem>>, vector<2x8x8x64xf32>
    %124 = vector.shape_cast %123 : vector<2x8x8x64xf32> to vector<128x64xf32>
    %c5_138 = arith.constant 5 : index
    %c0_139 = arith.constant 0 : index
    %c0_140 = arith.constant 0 : index
    %125 = vector.load %arg5[%c5_138, %c0_139, %c0_140] : memref<9x64x64xf32, #tpu.memory_space<vmem>>, vector<1x64x64xf32>
    %126 = vector.shape_cast %125 : vector<1x64x64xf32> to vector<64x64xf32>
    %cst_141 = arith.constant dense<0.000000e+00> : vector<128x64xf32>
    %127 = tpu.matmul %124, %126, %cst_141 {dimension_numbers = #tpu.dot_dimension_numbers<[1], [0], [0], [1], [0, 0, 1, 1], [], []>} : vector<128x64xf32>, vector<64x64xf32>, vector<128x64xf32> -> vector<128x64xf32>
    %128 = arith.addf %122, %127 : vector<128x64xf32>
    %c0_142 = arith.constant 0 : index
    %c2_143 = arith.constant 2 : index
    %c0_144 = arith.constant 0 : index
    %c0_145 = arith.constant 0 : index
    %129 = vector.load %arg10[%c0_142, %c2_143, %c0_144, %c0_145] : memref<2x10x10x64xf32, #tpu.memory_space<vmem>>, vector<2x8x8x64xf32>
    %130 = vector.shape_cast %129 : vector<2x8x8x64xf32> to vector<128x64xf32>
    %c6_146 = arith.constant 6 : index
    %c0_147 = arith.constant 0 : index
    %c0_148 = arith.constant 0 : index
    %131 = vector.load %arg5[%c6_146, %c0_147, %c0_148] : memref<9x64x64xf32, #tpu.memory_space<vmem>>, vector<1x64x64xf32>
    %132 = vector.shape_cast %131 : vector<1x64x64xf32> to vector<64x64xf32>
    %cst_149 = arith.constant dense<0.000000e+00> : vector<128x64xf32>
    %133 = tpu.matmul %130, %132, %cst_149 {dimension_numbers = #tpu.dot_dimension_numbers<[1], [0], [0], [1], [0, 0, 1, 1], [], []>} : vector<128x64xf32>, vector<64x64xf32>, vector<128x64xf32> -> vector<128x64xf32>
    %134 = arith.addf %128, %133 : vector<128x64xf32>
    %c0_150 = arith.constant 0 : index
    %c2_151 = arith.constant 2 : index
    %c1_152 = arith.constant 1 : index
    %c0_153 = arith.constant 0 : index
    %135 = vector.load %arg10[%c0_150, %c2_151, %c1_152, %c0_153] : memref<2x10x10x64xf32, #tpu.memory_space<vmem>>, vector<2x8x8x64xf32>
    %136 = vector.shape_cast %135 : vector<2x8x8x64xf32> to vector<128x64xf32>
    %c7_154 = arith.constant 7 : index
    %c0_155 = arith.constant 0 : index
    %c0_156 = arith.constant 0 : index
    %137 = vector.load %arg5[%c7_154, %c0_155, %c0_156] : memref<9x64x64xf32, #tpu.memory_space<vmem>>, vector<1x64x64xf32>
    %138 = vector.shape_cast %137 : vector<1x64x64xf32> to vector<64x64xf32>
    %cst_157 = arith.constant dense<0.000000e+00> : vector<128x64xf32>
    %139 = tpu.matmul %136, %138, %cst_157 {dimension_numbers = #tpu.dot_dimension_numbers<[1], [0], [0], [1], [0, 0, 1, 1], [], []>} : vector<128x64xf32>, vector<64x64xf32>, vector<128x64xf32> -> vector<128x64xf32>
    %140 = arith.addf %134, %139 : vector<128x64xf32>
    %c0_158 = arith.constant 0 : index
    %c2_159 = arith.constant 2 : index
    %c2_160 = arith.constant 2 : index
    %c0_161 = arith.constant 0 : index
    %141 = vector.load %arg10[%c0_158, %c2_159, %c2_160, %c0_161] : memref<2x10x10x64xf32, #tpu.memory_space<vmem>>, vector<2x8x8x64xf32>
    %142 = vector.shape_cast %141 : vector<2x8x8x64xf32> to vector<128x64xf32>
    %c8_162 = arith.constant 8 : index
    %c0_163 = arith.constant 0 : index
    %c0_164 = arith.constant 0 : index
    %143 = vector.load %arg5[%c8_162, %c0_163, %c0_164] : memref<9x64x64xf32, #tpu.memory_space<vmem>>, vector<1x64x64xf32>
    %144 = vector.shape_cast %143 : vector<1x64x64xf32> to vector<64x64xf32>
    %cst_165 = arith.constant dense<0.000000e+00> : vector<128x64xf32>
    %145 = tpu.matmul %142, %144, %cst_165 {dimension_numbers = #tpu.dot_dimension_numbers<[1], [0], [0], [1], [0, 0, 1, 1], [], []>} : vector<128x64xf32>, vector<64x64xf32>, vector<128x64xf32> -> vector<128x64xf32>
    %146 = arith.addf %140, %145 : vector<128x64xf32>
    %c0_166 = arith.constant 0 : index
    %c0_167 = arith.constant 0 : index
    %147 = vector.load %arg6[%c0_166, %c0_167] : memref<1x64xf32, #tpu.memory_space<vmem>>, vector<1x64xf32>
    %148 = vector.broadcast %147 : vector<1x64xf32> to vector<128x64xf32>
    %149 = arith.addf %146, %148 : vector<128x64xf32>
    %c0_168 = arith.constant 0 : index
    %c0_169 = arith.constant 0 : index
    %150 = vector.load %arg7[%c0_168, %c0_169] : memref<1x64xf32, #tpu.memory_space<vmem>>, vector<1x64xf32>
    %c0_170 = arith.constant 0 : index
    %c0_171 = arith.constant 0 : index
    %151 = vector.load %arg8[%c0_170, %c0_171] : memref<1x64xf32, #tpu.memory_space<vmem>>, vector<1x64xf32>
    %cst_172 = arith.constant dense<0.000000e+00> : vector<64xf32>
    %152 = vector.multi_reduction <add>, %149, %cst_172 [0] : vector<128x64xf32> to vector<64xf32>
    %153 = vector.shape_cast %152 : vector<64xf32> to vector<1x64xf32>
    %cst_173 = arith.constant 7.812500e-03 : f32
    %154 = vector.broadcast %cst_173 : f32 to vector<1x64xf32>
    %155 = arith.mulf %153, %154 : vector<1x64xf32>
    %156 = arith.mulf %149, %149 : vector<128x64xf32>
    %cst_174 = arith.constant dense<0.000000e+00> : vector<64xf32>
    %157 = vector.multi_reduction <add>, %156, %cst_174 [0] : vector<128x64xf32> to vector<64xf32>
    %158 = vector.shape_cast %157 : vector<64xf32> to vector<1x64xf32>
    %cst_175 = arith.constant 7.812500e-03 : f32
    %159 = vector.broadcast %cst_175 : f32 to vector<1x64xf32>
    %160 = arith.mulf %158, %159 : vector<1x64xf32>
    %161 = arith.mulf %155, %155 : vector<1x64xf32>
    %162 = arith.subf %160, %161 : vector<1x64xf32>
    %cst_176 = arith.constant 0.000000e+00 : f32
    %163 = vector.broadcast %cst_176 : f32 to vector<1x64xf32>
    %164 = arith.maximumf %162, %163 : vector<1x64xf32>
    %165 = vector.broadcast %155 : vector<1x64xf32> to vector<128x64xf32>
    %166 = arith.subf %149, %165 : vector<128x64xf32>
    %cst_177 = arith.constant 9.99999974E-6 : f32
    %167 = vector.broadcast %cst_177 : f32 to vector<1x64xf32>
    %168 = arith.addf %164, %167 : vector<1x64xf32>
    %169 = math.rsqrt %168 : vector<1x64xf32>
    %170 = vector.broadcast %169 : vector<1x64xf32> to vector<128x64xf32>
    %171 = arith.mulf %166, %170 : vector<128x64xf32>
    %172 = vector.broadcast %150 : vector<1x64xf32> to vector<128x64xf32>
    %173 = arith.mulf %171, %172 : vector<128x64xf32>
    %174 = vector.broadcast %151 : vector<1x64xf32> to vector<128x64xf32>
    %175 = arith.addf %173, %174 : vector<128x64xf32>
    %176 = vector.shape_cast %2 : vector<2x8x8x64xf32> to vector<128x64xf32>
    %177 = arith.addf %175, %176 : vector<128x64xf32>
    %cst_178 = arith.constant 0.000000e+00 : f32
    %178 = vector.broadcast %cst_178 : f32 to vector<128x64xf32>
    %179 = arith.maximumf %177, %178 : vector<128x64xf32>
    %c0_179 = arith.constant 0 : index
    %c0_180 = arith.constant 0 : index
    %180 = vector.load %arg9[%c0_179, %c0_180] : memref<128x64xf32, #tpu.memory_space<vmem>>, vector<128x64xf32>
    tpu.vector_store %arg9[%c0_179, %c0_180], %179 {strides = array<i32>} : memref<128x64xf32, #tpu.memory_space<vmem>>, vector<128x64xf32>,
    return
  }
}

</mosaic_0001>

<bundles_post_ra>
// kernel: resnet_block.1
= control target key start
LH: loop header
LB: loop body
LE: loop exit
PB: predicated region body
PF: predicated region fallthrough
CT: control target
= control target key end

     0   :  { %14 = vsyncpa [#allocation4], 0  ;;  %s8196_s0 = inlined_call_operand.hbm [shape: f32[2,8,8,64], index: 0, kind: input, shape index: {}]   ;;  %s8197_s1 = inlined_call_operand.hbm [shape: f32[9,64,64], index: 1, kind: input, shape index: {}]   ;;  %s8198_s2 = inlined_call_operand.vmem [shape: f32[1,64], index: 2, kind: input, shape index: {}]   ;;  %s8199_s3 = inlined_call_operand.vmem [shape: f32[1,64], index: 3, kind: input, shape index: {}]   ;;  %s8200_s4 = inlined_call_operand.vmem [shape: f32[1,64], index: 4, kind: input, shape index: {}]   ;;  %s8201_s5 = inlined_call_operand.hbm [shape: f32[9,64,64], index: 5, kind: input, shape index: {}]   ;;  %s8202_s6 = inlined_call_operand.vmem [shape: f32[1,64], index: 6, kind: input, shape index: {}]   ;;  %s8203_s7 = inlined_call_operand.vmem [shape: f32[1,64], index: 7, kind: input, shape index: {}]   ;;  %s8204_s8 = inlined_call_operand.vmem [shape: f32[1,64], index: 8, kind: input, shape index: {}]   ;;  %s8205_s9 = inlined_call_operand.hbm [shape: f32[128,64], index: 9, kind: output, shape index: {}]  }
   0x1   :  { %15 = vsyncpa [#allocation7], 0 }
   0x2   :  { %16 = vsyncpa [#allocation5], 0  ;;  %s6333_s30 = smov [#allocation6]   ;;  %s6334_s11 = smov [#allocation3]  }
   0x3   :  { %s34_s10 = sshll.u32 %s6333_s30, 4  ;;  %s22_s12 = sshll.u32 %s6334_s11, 4  ;;  %s35_s10 = int_to_ptr.vmem [resolvable:$true] %s34_s10  ;;  %s23_s12 = int_to_ptr.vmem [resolvable:$true] %s22_s12 }
   0x4   :  { %s6255_s13 = scalar_lea.vmem %s35_s10, 9216  ;;  %p6260_p1 = scmp.lt.s32.totalorder %s35_s10, %s35_s10 }
   0x5   :  { %p6256_p0 = scmp.ne.s32.totalorder %s35_s10, %s6255_s13  ;;  %p6261_p2 = scmp.lt.s32.totalorder %s6255_s13, %s6255_s13 }
   0x7   :  { %p6262_p3 = por %p6261_p2, %p6260_p1 }
   0x9   :  { %p6263_p4 = pnand %p6262_p3, %p6256_p0 }
   0xb   :  { %6266 = shalt.err (!%p6263_p4)
}
   0xc   :  { %s6335_s14 = smov 128   ;;  %s6336_s15 = smov 8  }
   0xd   :  { %40 = dma.hbm_to_vmem [thread:$0]  %s8197_s1, 9216, %s35_s10, [#allocation7], %s6335_s14, %s6335_s14, %s6336_s15  }
   0xe   :  { %s6275_s18 = scalar_lea.vmem %s23_s12, 2048  ;;  %p6280_p6 = scmp.lt.s32.totalorder %s23_s12, %s23_s12 }
   0xf   :  { %p6276_p5 = scmp.ne.s32.totalorder %s23_s12, %s6275_s18  ;;  %p6281_p7 = scmp.lt.s32.totalorder %s6275_s18, %s6275_s18 }
  0x11   :  { %p6282_p8 = por %p6281_p7, %p6280_p6 }
  0x13   :  { %p6283_p9 = pnand %p6282_p8, %p6276_p5 }
  0x15   :  { %6286 = shalt.err (!%p6283_p9)
}
  0x16   :  { %28 = dma.hbm_to_vmem [thread:$0]  %s8196_s0, 2048, %s23_s12, [#allocation4], %s6335_s14, %s6335_s14, %s6336_s15  }
  0x17   :  { %s6337_s21 = smov [#allocation8]  }
  0x18   :  { %s52_s22 = sshll.u32 %s6337_s21, 4  ;;  %s53_s22 = int_to_ptr.vmem [resolvable:$true] %s52_s22 }
  0x19   :  { %s6295_s23 = scalar_lea.vmem %s53_s22, 9216  ;;  %p6300_p11 = scmp.lt.s32.totalorder %s53_s22, %s53_s22 }
  0x1a   :  { %p6296_p10 = scmp.ne.s32.totalorder %s53_s22, %s6295_s23  ;;  %p6301_p12 = scmp.lt.s32.totalorder %s6295_s23, %s6295_s23 }
  0x1c   :  { %p6302_p13 = por %p6301_p12, %p6300_p11 }
  0x1e   :  { %p6303_p0 = pnand %p6302_p13, %p6296_p10 }
  0x20   :  { %6306 = shalt.err (!%p6303_p0)
}
  0x21   :  { %58 = dma.hbm_to_vmem [thread:$0]  %s8201_s5, 9216, %s53_s22, [#allocation7], %s6335_s14, %s6335_s14, %s6336_s15  }
  0x22   :  { %6327 = dma.done.wait [#allocation4], 2048  }
  0x23   :  { %6328 = vsyncadd [#allocation4], 4294965248 }
  0x24   :  { %6329 = dma.done.wait [#allocation7], 18432  }
  0x25   :  { %6330 = vsyncadd [#allocation7], 4294948864  ;;  %vm74_vm0 = vcmask 523264   ;;  %vm76_vm1 = vcmask 517120   ;;  %v6338_v0 = vmov 0.0   ;;  %v197_v1 = vld [vmem:[#allocation6 + $0x78] sm:$0xff] }
  0x26   :  { %75 = vst.msk [vmem:[#allocation2] sm:$0xff] %vm74_vm0, %v6338_v0  ;;  %78 = vst.msk [vmem:[#allocation2 + $0x10] sm:$0xff] %vm74_vm0, %v6338_v0  ;;  %v172_v2 = vld [vmem:[#allocation6 + $0x38] sm:$0xff]  ;;  %v196_v3 = vld [vmem:[#allocation6 + $0x70] sm:$0xff]  ;;  %5516 = vmatprep.subr.mxu0 %v197_v1 }
  0x27   :  { %77 = vst.msk [vmem:[#allocation2 + $0x8] sm:$0x3] %vm76_vm1, %v6338_v0  ;;  %79 = vst.msk [vmem:[#allocation2 + $0x18] sm:$0x3] %vm76_vm1, %v6338_v0  ;;  %5556 = vmatprep.subr.mxu1 %v172_v2  ;;  %v171_v4 = vld [vmem:[#allocation6 + $0x30] sm:$0xff]  ;;  %5517 = vmatpush3.msra.mxu0 %v197_v1  ;;  %v195_v5 = vld [vmem:[#allocation6 + $0x68] sm:$0xff] }
  0x28   :  { %80 = vst.msk [vmem:[#allocation2 + $0x20] sm:$0xff] %vm74_vm0, %v6338_v0  ;;  %82 = vst.msk [vmem:[#allocation2 + $0x30] sm:$0xff] %vm74_vm0, %v6338_v0  ;;  %5557 = vmatpush3.msra.mxu1 %v172_v2  ;;  %v170_v6 = vld [vmem:[#allocation6 + $0x28] sm:$0xff]  ;;  %5518 = vmatprep.subr.mxu0 %v196_v3  ;;  %v194_v7 = vld [vmem:[#allocation6 + $0x60] sm:$0xff] }
  0x29   :  { %81 = vst.msk [vmem:[#allocation2 + $0x28] sm:$0x3] %vm76_vm1, %v6338_v0  ;;  %83 = vst.msk [vmem:[#allocation2 + $0x38] sm:$0x3] %vm76_vm1, %v6338_v0  ;;  %5558 = vmatprep.subr.mxu1 %v171_v4  ;;  %5519 = vmatpush3.msra.mxu0 %v196_v3  ;;  %v169_v8 = vld [vmem:[#allocation6 + $0x20] sm:$0xff]  ;;  %v193_v9 = vld [vmem:[#allocation6 + $0x58] sm:$0xff] }
  0x2a   :  { %84 = vst.msk [vmem:[#allocation2 + $0x40] sm:$0xff] %vm74_vm0, %v6338_v0  ;;  %86 = vst.msk [vmem:[#allocation2 + $0x50] sm:$0xff] %vm74_vm0, %v6338_v0  ;;  %5559 = vmatpush3.msra.mxu1 %v171_v4  ;;  %5520 = vmatprep.subr.mxu0 %v195_v5  ;;  %v168_v10 = vld [vmem:[#allocation6 + $0x18] sm:$0xff]  ;;  %v6448_v11 = vld [vmem:[#allocation3] sm:$0xff] }
  0x2b   :  { %85 = vst.msk [vmem:[#allocation2 + $0x48] sm:$0x3] %vm76_vm1, %v6338_v0  ;;  %87 = vst.msk [vmem:[#allocation2 + $0x58] sm:$0x3] %vm76_vm1, %v6338_v0  ;;  %5560 = vmatprep.subr.mxu1 %v170_v6  ;;  %5521 = vmatpush3.msra.mxu0 %v195_v5  ;;  %v6450_v12 = vld [vmem:[#allocation3 + $0x8] sm:$0xff]  ;;  %v192_v13 = vld [vmem:[#allocation6 + $0x50] sm:$0xff] }
  0x2c   :  { %88 = vst.msk [vmem:[#allocation2 + $0x60] sm:$0xff] %vm74_vm0, %v6338_v0  ;;  %90 = vst.msk [vmem:[#allocation2 + $0x70] sm:$0xff] %vm74_vm0, %v6338_v0  ;;  %5561 = vmatpush3.msra.mxu1 %v170_v6  ;;  %5522 = vmatprep.subr.mxu0 %v194_v7  ;;  %v6456_v14 = vld [vmem:[#allocation3 + $0x10] sm:$0xff]  ;;  %v6458_v15 = vld [vmem:[#allocation3 + $0x18] sm:$0xff] }
  0x2d   :  { %89 = vst.msk [vmem:[#allocation2 + $0x68] sm:$0x3] %vm76_vm1, %v6338_v0  ;;  %91 = vst.msk [vmem:[#allocation2 + $0x78] sm:$0x3] %vm76_vm1, %v6338_v0  ;;  %5562 = vmatprep.subr.mxu1 %v169_v8  ;;  %5523 = vmatpush3.msra.mxu0 %v194_v7  ;;  %v167_v16 = vld [vmem:[#allocation6 + $0x10] sm:$0xff]  ;;  %v6464_v17 = vld [vmem:[#allocation3 + $0x20] sm:$0xff] }
  0x2e   :  { %92 = vst.msk [vmem:[#allocation2 + $0x80] sm:$0xff] %vm74_vm0, %v6338_v0  ;;  %94 = vst.msk [vmem:[#allocation2 + $0x90] sm:$0xff] %vm74_vm0, %v6338_v0  ;;  %5563 = vmatpush3.msra.mxu1 %v169_v8  ;;  %v6466_v18 = vld [vmem:[#allocation3 + $0x28] sm:$0xff]  ;;  %5524 = vmatprep.subr.mxu0 %v193_v9  ;;  %v6472_v19 = vld [vmem:[#allocation3 + $0x30] sm:$0xff] }
  0x2f   :  { %93 = vst.msk [vmem:[#allocation2 + $0x88] sm:$0x3] %vm76_vm1, %v6338_v0  ;;  %95 = vst.msk [vmem:[#allocation2 + $0x98] sm:$0x3] %vm76_vm1, %v6338_v0  ;;  %5564 = vmatprep.subr.mxu1 %v168_v10  ;;  %5525 = vmatpush3.msra.mxu0 %v193_v9  ;;  %v191_v20 = vld [vmem:[#allocation6 + $0x48] sm:$0xff]  ;;  %v6476_v22 = vld [vmem:[#allocation3 + $0x40] sm:$0xff] }
  0x30   :  { %96 = vst.msk [vmem:[#allocation2 + $0xa0] sm:$0xff] %vm74_vm0, %v6338_v0  ;;  %98 = vst.msk [vmem:[#allocation2 + $0xb0] sm:$0xff] %vm74_vm0, %v6338_v0  ;;  %5565 = vmatpush3.msra.mxu1 %v168_v10  ;;  %v166_v21 = vld [vmem:[#allocation6 + $0x8] sm:$0xff]  ;;  %5526 = vmatprep.subr.mxu0 %v192_v13  ;;  %v6482_v24 = vld [vmem:[#allocation3 + $0x50] sm:$0xff] }
  0x31   :  { %97 = vst.msk [vmem:[#allocation2 + $0xa8] sm:$0x3] %vm76_vm1, %v6338_v0  ;;  %99 = vst.msk [vmem:[#allocation2 + $0xb8] sm:$0x3] %vm76_vm1, %v6338_v0  ;;  %5566 = vmatprep.subr.mxu1 %v167_v16  ;;  %v6480_v23 = vld [vmem:[#allocation3 + $0x48] sm:$0xff]  ;;  %5527 = vmatpush3.msra.mxu0 %v192_v13  ;;  %v190_v25 = vld [vmem:[#allocation6 + $0x40] sm:$0xff] }
  0x32   :  { %100 = vst.msk [vmem:[#allocation2 + $0xc0] sm:$0xff] %vm74_vm0, %v6338_v0  ;;  %102 = vst.msk [vmem:[#allocation2 + $0xd0] sm:$0xff] %vm74_vm0, %v6338_v0  ;;  %5567 = vmatpush3.msra.mxu1 %v167_v16  ;;  %v165_v26 = vld [vmem:[#allocation6] sm:$0xff]  ;;  %5528 = vmatprep.subr.mxu0 %v191_v20  ;;  %v6488_v28 = vld [vmem:[#allocation3 + $0x58] sm:$0xff] }
  0x33   :  { %101 = vst.msk [vmem:[#allocation2 + $0xc8] sm:$0x3] %vm76_vm1, %v6338_v0  ;;  %103 = vst.msk [vmem:[#allocation2 + $0xd8] sm:$0x3] %vm76_vm1, %v6338_v0  ;;  %5568 = vmatprep.subr.mxu1 %v166_v21  ;;  %v173_v27 = vld [vmem:[#allocation2 + $0x1] sm:$0xff]  ;;  %5529 = vmatpush3.msra.mxu0 %v191_v20  ;;  %v608_v33 = vld [vmem:[#allocation6 + $0xb8] sm:$0xff] }
  0x34   :  { %104 = vst.msk [vmem:[#allocation2 + $0xe0] sm:$0xff] %vm74_vm0, %v6338_v0  ;;  %106 = vst.msk [vmem:[#allocation2 + $0xf0] sm:$0xff] %vm74_vm0, %v6338_v0  ;;  %v6490_v29 = vld [vmem:[#allocation3 + $0x60] sm:$0xff]  ;;  %5569 = vmatpush3.msra.mxu1 %v166_v21  ;;  %5530 = vmatprep.subr.mxu0 %v190_v25  ;;  %v607_v36 = vld [vmem:[#allocation6 + $0xb0] sm:$0xff] }
  0x35   :  { %105 = vst.msk [vmem:[#allocation2 + $0xe8] sm:$0x3] %vm76_vm1, %v6338_v0  ;;  %107 = vst.msk [vmem:[#allocation2 + $0xf8] sm:$0x3] %vm76_vm1, %v6338_v0  ;;  %v149_v30 = vld [vmem:[#allocation2] sm:$0xff]  ;;  %5570 = vmatprep.subr.mxu1 %v165_v26  ;;  %5531 = vmatpush3.msra.mxu0 %v190_v25  ;;  %v842_v37 = vld [vmem:[#allocation6 + $0xf8] sm:$0xff] }
  0x36   :  { %108 = vst.msk [vmem:[#allocation2 + $0x100] sm:$0xff] %vm74_vm0, %v6338_v0  ;;  %110 = vst.msk [vmem:[#allocation2 + $0x110] sm:$0xff] %vm74_vm0, %v6338_v0  ;;  %5532 = vmatprep.mubr.msk.f32.mxu0 %vm74_vm0, %v173_v27  ;;  %5571 = vmatpush3.msra.mxu1 %v165_v26  ;;  %v606_v42 = vld [vmem:[#allocation6 + $0xa8] sm:$0xff]  ;;  %v6536_v46 = vld [vmem:[#allocation3 + $0x70] sm:$0xff] }
  0x37   :  { %109 = vst.msk [vmem:[#allocation2 + $0x108] sm:$0x3] %vm76_vm1, %v6338_v0  ;;  %111 = vst.msk [vmem:[#allocation2 + $0x118] sm:$0x3] %vm76_vm1, %v6338_v0  ;;  %5572 = vmatprep.mubr.msk.f32.mxu1 %vm74_vm0, %v149_v30  ;;  %5596 = vmatprep.subr.mxu0 %v608_v33  ;;  %v6526_v43 = vld [vmem:[#allocation3 + $0x68] sm:$0xff]  ;;  %v605_v49 = vld [vmem:[#allocation6 + $0xa0] sm:$0xff] }
  0x38   :  { %112 = vst.msk [vmem:[#allocation2 + $0x120] sm:$0xff] %vm74_vm0, %v6338_v0  ;;  %114 = vst.msk [vmem:[#allocation2 + $0x130] sm:$0xff] %vm74_vm0, %v6338_v0  ;;  %5636 = vmatprep.subr.mxu1 %v842_v37  ;;  %v841_v50 = vld [vmem:[#allocation6 + $0xf0] sm:$0xff]  ;;  %v181_v53 = vld [vmem:[#allocation2 + $0xa1] sm:$0xff] }
  0x39   :  { %113 = vst.msk [vmem:[#allocation2 + $0x128] sm:$0x3] %vm76_vm1, %v6338_v0  ;;  %115 = vst.msk [vmem:[#allocation2 + $0x138] sm:$0x3] %vm76_vm1, %v6338_v0  ;;  %v157_v54 = vld [vmem:[#allocation2 + $0xa0] sm:$0xff]  ;;  %v6558_v55 = vld [vmem:[#allocation3 + $0x38] sm:$0xff] }
  0x3a   :  { %8224 = vst [vmem:[#allocation13_spill] sm:$0xff] %v6448_v11  ;;  %8225 = vst [vmem:[#allocation14_spill] sm:$0xff] %v6450_v12  ;;  %v604_v56 = vld [vmem:[#allocation6 + $0x98] sm:$0xff]  ;;  %v840_v57 = vld [vmem:[#allocation6 + $0xe8] sm:$0xff] }
  0x3b   :  { %133 = vst.msk [vmem:[#allocation2 + $0x11] sm:$0xff] %vm74_vm0, %v6448_v11  ;;  %134 = vst.msk [vmem:[#allocation2 + $0x21] sm:$0xff] %vm74_vm0, %v6450_v12  ;;  %v603_v62 = vld [vmem:[#allocation6 + $0x90] sm:$0xff]  ;;  %v839_v63 = vld [vmem:[#allocation6 + $0xe0] sm:$0xff] }
  0x3c   :  { %8226 = vst [vmem:[#allocation15_spill] sm:$0xff] %v6456_v14  ;;  %8227 = vst [vmem:[#allocation16_spill] sm:$0xff] %v6458_v15  ;;  %v6592_v4 = vld [vmem:[#allocation3 + $0x78] sm:$0xff]  ;;  %v602_v5 = vld [vmem:[#allocation6 + $0x88] sm:$0xff] }
  0x3d   :  { %135 = vst.msk [vmem:[#allocation2 + $0x31] sm:$0xff] %vm74_vm0, %v6456_v14  ;;  %136 = vst.msk [vmem:[#allocation2 + $0x41] sm:$0xff] %vm74_vm0, %v6458_v15  ;;  %v838_v6 = vld [vmem:[#allocation6 + $0xd8] sm:$0xff]  ;;  %v601_v13 = vld [vmem:[#allocation6 + $0x80] sm:$0xff] }
  0x3e   :  { %8228 = vst [vmem:[#allocation17_spill] sm:$0xff] %v6464_v17  ;;  %8229 = vst [vmem:[#allocation18_spill] sm:$0xff] %v6466_v18  ;;  %v837_v16 = vld [vmem:[#allocation6 + $0xd0] sm:$0xff]  ;;  %v836_v25 = vld [vmem:[#allocation6 + $0xc8] sm:$0xff] }
  0x3f   :  { %137 = vst.msk [vmem:[#allocation2 + $0x51] sm:$0xff] %vm74_vm0, %v6464_v17  ;;  %138 = vst.msk [vmem:[#allocation2 + $0x61] sm:$0xff] %vm74_vm0, %v6466_v18  ;;  %v584_v26 = vld [vmem:[#allocation2 + $0x2] sm:$0xff]  ;;  %v1076_v27 = vld [vmem:[#allocation6 + $0x138] sm:$0xff] }
  0x40   :  { %8230 = vst [vmem:[#allocation19_spill] sm:$0xff] %v6472_v19  ;;  %139 = vst.msk [vmem:[#allocation2 + $0x71] sm:$0xff] %vm74_vm0, %v6472_v19  ;;  %v835_v30 = vld [vmem:[#allocation6 + $0xc0] sm:$0xff]  ;;  %v2501_v12 = vld [vmem:[#allocation8 + $0x78] sm:$0xff] }
  0x41   :  { %8231 = vst [vmem:[#allocation20_spill] sm:$0xff] %v6476_v22  ;;  %141 = vst.msk [vmem:[#allocation2 + $0xb1] sm:$0xff] %vm74_vm0, %v6476_v22  ;;  %v2476_v11 = vld [vmem:[#allocation8 + $0x38] sm:$0xff] }
  0x42   :  { %8232 = vst [vmem:[#allocation21_spill] sm:$0xff] %v6480_v23  ;;  %8233 = vst [vmem:[#allocation22_spill] sm:$0xff] %v6482_v24  ;;  %v6496_v31 = vld [vmem:[#allocation2 + $0x11] sm:$0xff]  ;;  %v6501_v34 = vld [vmem:[#allocation2 + $0x21] sm:$0xff] }
  0x43   :  { %142 = vst.msk [vmem:[#allocation2 + $0xc1] sm:$0xff] %vm74_vm0, %v6480_v23  ;;  %143 = vst.msk [vmem:[#allocation2 + $0xd1] sm:$0xff] %vm74_vm0, %v6482_v24  ;;  %v6498_v32 = vld [vmem:[#allocation2 + $0x10] sm:$0xff]  ;;  %v6504_v35 = vld [vmem:[#allocation2 + $0x20] sm:$0xff]  ;;  %5533 = vmatmul.mubr.msk.f32.vlgmr.msra.gmra.mxu0 %vm74_vm0, %v6496_v31 }
  0x44   :  { %8234 = vst [vmem:[#allocation23_spill] sm:$0xff] %v6488_v28  ;;  %8235 = vst [vmem:[#allocation24_spill] sm:$0xff] %v6490_v29  ;;  %5573 = vmatmul.mubr.msk.f32.vlgmr.msra.gmra.mxu1 %vm74_vm0, %v6498_v32  ;;  %5535 = vmatprep.mubr.msk.f32.mxu0 %vm74_vm0, %v6501_v34  ;;  %v6512_v38 = vld [vmem:[#allocation2 + $0x31] sm:$0xff]  ;;  %v6518_v40 = vld [vmem:[#allocation2 + $0x41] sm:$0xff] }
  0x45   :  { %144 = vst.msk [vmem:[#allocation2 + $0xe1] sm:$0xff] %vm74_vm0, %v6488_v28  ;;  %145 = vst.msk [vmem:[#allocation2 + $0xf1] sm:$0xff] %vm74_vm0, %v6490_v29  ;;  %v6514_v39 = vld [vmem:[#allocation2 + $0x30] sm:$0xff]  ;;  %5597 = vmatpush3.msra.mxu0 %v608_v33  ;;  %5575 = vmatprep.mubr.msk.f32.mxu1 %vm74_vm0, %v6504_v35  ;;  %v6520_v41 = vld [vmem:[#allocation2 + $0x40] sm:$0xff] }
  0x46   :  { %5598 = vmatprep.subr.mxu0 %v607_v36  ;;  %8236 = vst [vmem:[#allocation25_spill] sm:$0xff] %v6526_v43  ;;  %v6530_v44 = vld [vmem:[#allocation2 + $0x51] sm:$0xff]  ;;  %146 = vst.msk [vmem:[#allocation2 + $0x101] sm:$0xff] %vm74_vm0, %v6526_v43  ;;  %v6540_v47 = vld [vmem:[#allocation2 + $0x61] sm:$0xff]  ;;  %5637 = vmatpush3.msra.mxu1 %v842_v37 }
  0x47   :  { %5536 = vmatmul.mubr.msk.f32.gmra.mxu0 %vm74_vm0, %v6512_v38  ;;  %v6532_v45 = vld [vmem:[#allocation2 + $0x50] sm:$0xff]  ;;  %8237 = vst [vmem:[#allocation26_spill] sm:$0xff] %v6536_v46  ;;  %v6542_v48 = vld [vmem:[#allocation2 + $0x60] sm:$0xff]  ;;  %147 = vst.msk [vmem:[#allocation2 + $0x111] sm:$0xff] %vm74_vm0, %v6536_v46  ;;  %5638 = vmatprep.subr.mxu1 %v841_v50 }
  0x48   :  { %5576 = vmatmul.mubr.msk.f32.gmra.mxu1 %vm74_vm0, %v6514_v39  ;;  %5599 = vmatpush3.msra.mxu0 %v607_v36  ;;  %v6554_v51 = vld [vmem:[#allocation2 + $0x71] sm:$0xff]  ;;  %8238 = vst [vmem:[#allocation27_spill] sm:$0xff] %v6558_v55  ;;  %140 = vst.msk [vmem:[#allocation2 + $0x81] sm:$0xff] %vm74_vm0, %v6558_v55  ;;  %v6633_v36 = vld [vmem:[#allocation2 + $0x22] sm:$0xff] }
  0x49   :  { %5538 = vmatprep.mubr.msk.f32.mxu0 %vm74_vm0, %v6518_v40  ;;  %5578 = vmatprep.mubr.msk.f32.mxu1 %vm74_vm0, %v6520_v41  ;;  %v6556_v52 = vld [vmem:[#allocation2 + $0x70] sm:$0xff]  ;;  %8239 = vst [vmem:[#allocation28_spill] sm:$0xff] %v6592_v4  ;;  %148 = vst.msk [vmem:[#allocation2 + $0x121] sm:$0xff] %vm74_vm0, %v6592_v4 }
  0x4a   :  { %5600 = vmatprep.subr.mxu0 %v606_v42  ;;  %5639 = vmatpush3.msra.mxu1 %v841_v50  ;;  %v6568_v58 = vld [vmem:[#allocation2 + $0xb1] sm:$0xff]  ;;  %v6572_v60 = vld [vmem:[#allocation2 + $0xc1] sm:$0xff] }
  0x4b   :  { %5601 = vmatpush3.msra.mxu0 %v606_v42  ;;  %v6570_v59 = vld [vmem:[#allocation2 + $0xb0] sm:$0xff]  ;;  %v6574_v61 = vld [vmem:[#allocation2 + $0xc0] sm:$0xff]  ;;  %5640 = vmatprep.subr.mxu1 %v840_v57 }
  0x4c   :  { %5539 = vmatmul.mubr.msk.f32.gmra.mxu0 %vm74_vm0, %v6530_v44  ;;  %5579 = vmatmul.mubr.msk.f32.gmra.mxu1 %vm74_vm0, %v6532_v45  ;;  %v6584_v0 = vld [vmem:[#allocation2 + $0xd1] sm:$0xff]  ;;  %v6588_v2 = vld [vmem:[#allocation2 + $0xe1] sm:$0xff] }
  0x4d   :  { %5541 = vmatprep.mubr.msk.f32.mxu0 %vm74_vm0, %v6540_v47  ;;  %5581 = vmatprep.mubr.msk.f32.mxu1 %vm74_vm0, %v6542_v48  ;;  %v6586_v1 = vld [vmem:[#allocation2 + $0xd0] sm:$0xff]  ;;  %v6590_v3 = vld [vmem:[#allocation2 + $0xe0] sm:$0xff] }
  0x4e   :  { %5602 = vmatprep.subr.mxu0 %v605_v49  ;;  %5641 = vmatpush3.msra.mxu1 %v840_v57  ;;  %v6604_v7 = vld [vmem:[#allocation2 + $0xf1] sm:$0xff]  ;;  %v6608_v9 = vld [vmem:[#allocation2 + $0x101] sm:$0xff] }
  0x4f   :  { %5603 = vmatpush3.msra.mxu0 %v605_v49  ;;  %5642 = vmatprep.subr.mxu1 %v839_v63  ;;  %v6606_v8 = vld [vmem:[#allocation2 + $0xf0] sm:$0xff]  ;;  %v6610_v10 = vld [vmem:[#allocation2 + $0x100] sm:$0xff]  ;;  %v1074_v49 = vld [vmem:[#allocation6 + $0x128] sm:$0xff] }
  0x50   :  { %5542 = vmatmul.mubr.msk.f32.gmra.mxu0 %vm74_vm0, %v6554_v51  ;;  %5582 = vmatmul.mubr.msk.f32.gmra.mxu1 %vm74_vm0, %v6556_v52  ;;  %v6620_v20 = vld [vmem:[#allocation2 + $0x111] sm:$0xff]  ;;  %v6643_v50 = vld [vmem:[#allocation2 + $0x42] sm:$0xff] }
  0x51   :  { %5544 = vmatprep.mubr.msk.f32.mxu0 %vm74_vm0, %v181_v53  ;;  %5584 = vmatprep.mubr.msk.f32.mxu1 %vm74_vm0, %v157_v54  ;;  %v6622_v21 = vld [vmem:[#allocation2 + $0x110] sm:$0xff]  ;;  %v1310_v53 = vld [vmem:[#allocation6 + $0x178] sm:$0xff] }
  0x52   :  { %5604 = vmatprep.subr.mxu0 %v604_v56  ;;  %5643 = vmatpush3.msra.mxu1 %v839_v63  ;;  %v6629_v33 = vld [vmem:[#allocation2 + $0x12] sm:$0xff] }
  0x53   :  { %5605 = vmatpush3.msra.mxu0 %v604_v56  ;;  %5644 = vmatprep.subr.mxu1 %v838_v6  ;;  %v1075_v37 = vld [vmem:[#allocation6 + $0x130] sm:$0xff]  ;;  %v6657_v56 = vld [vmem:[#allocation2 + $0x62] sm:$0xff]  ;;  %v1072_v57 = vld [vmem:[#allocation6 + $0x118] sm:$0xff] }
  0x54   :  { %5545 = vmatmul.mubr.msk.f32.gmra.mxu0 %vm74_vm0, %v6568_v58  ;;  %5585 = vmatmul.mubr.msk.f32.gmra.mxu1 %vm74_vm0, %v6570_v59  ;;  %v6639_v42 = vld [vmem:[#allocation2 + $0x32] sm:$0xff] }
  0x55   :  { %5547 = vmatprep.mubr.msk.f32.mxu0 %vm74_vm0, %v6572_v60  ;;  %5587 = vmatprep.mubr.msk.f32.mxu1 %vm74_vm0, %v6574_v61  ;;  %v6653_v54 = vld [vmem:[#allocation2 + $0x52] sm:$0xff] }
  0x56   :  { %5606 = vmatprep.subr.mxu0 %v603_v62  ;;  %5645 = vmatpush3.msra.mxu1 %v838_v6  ;;  %v6665_v63 = vld [vmem:[#allocation2 + $0x72] sm:$0xff]  ;;  %v592_v6 = vld [vmem:[#allocation2 + $0xa2] sm:$0xff] }
  0x57   :  { %5607 = vmatpush3.msra.mxu0 %v603_v62  ;;  %5646 = vmatprep.subr.mxu1 %v837_v16  ;;  %v1309_v62 = vld [vmem:[#allocation6 + $0x170] sm:$0xff] }
  0x58   :  { %5548 = vmatmul.mubr.msk.f32.gmra.mxu0 %vm74_vm0, %v6584_v0  ;;  %5588 = vmatmul.mubr.msk.f32.gmra.mxu1 %vm74_vm0, %v6586_v1 }
  0x59   :  { %5550 = vmatprep.mubr.msk.f32.mxu0 %vm74_vm0, %v6588_v2  ;;  %5590 = vmatprep.mubr.msk.f32.mxu1 %vm74_vm0, %v6590_v3 }
  0x5a   :  { %5608 = vmatprep.subr.mxu0 %v602_v5  ;;  %5647 = vmatpush3.msra.mxu1 %v837_v16  ;;  %v1308_v16 = vld [vmem:[#allocation6 + $0x168] sm:$0xff] }
  0x5b   :  { %5609 = vmatpush3.msra.mxu0 %v602_v5  ;;  %5648 = vmatprep.subr.mxu1 %v836_v25  ;;  %v6669_v5 = vld [vmem:[#allocation2 + $0x80] sm:$0xff] }
  0x5c   :  { %5551 = vmatmul.mubr.msk.f32.gmra.mxu0 %vm74_vm0, %v6604_v7  ;;  %5591 = vmatmul.mubr.msk.f32.gmra.mxu1 %vm74_vm0, %v6606_v8 }
  0x5d   :  { %5553 = vmatprep.mubr.msk.f32.mxu0 %vm74_vm0, %v6608_v9  ;;  %5593 = vmatprep.mubr.msk.f32.mxu1 %vm74_vm0, %v6610_v10 }
  0x5e   :  { %5610 = vmatprep.subr.mxu0 %v601_v13  ;;  %5649 = vmatpush3.msra.mxu1 %v836_v25  ;;  %v6676_v25 = vld [vmem:[#allocation2 + $0xb2] sm:$0xff] }
  0x5f   :  { %5611 = vmatpush3.msra.mxu0 %v601_v13  ;;  %5650 = vmatprep.subr.mxu1 %v835_v30  ;;  %v1071_v13 = vld [vmem:[#allocation6 + $0x110] sm:$0xff] }
  0x60   :  { %5554 = vmatmul.mubr.msk.f32.gmra.mxu0 %vm74_vm0, %v6620_v20  ;;  %5594 = vmatmul.mubr.msk.f32.gmra.mxu1 %vm74_vm0, %v6622_v21 }
  0x61   :  { %5612 = vmatprep.mubr.msk.f32.mxu0 %vm74_vm0, %v584_v26  ;;  %5676 = vmatprep.subr.mxu0 %v1076_v27  ;;  %v6680_v26 = vld [vmem:[#allocation2 + $0xc2] sm:$0xff] }
  0x62   :  { %5652 = vmatprep.mubr.msk.f32.mxu1 %vm74_vm0, %v6498_v32  ;;  %5651 = vmatpush3.msra.mxu1 %v835_v30  ;;  %v1073_v32 = vld [vmem:[#allocation6 + $0x120] sm:$0xff] }
  0x63   :  { %5716 = vmatprep.subr.mxu1 %v1310_v53  ;;  %v1307_v30 = vld [vmem:[#allocation6 + $0x160] sm:$0xff] }
  0x64   :  { %5613 = vmatmul.mubr.msk.f32.vlgmr.msra.gmra.mxu0 %vm74_vm0, %v6629_v33  ;;  %5653 = vmatmul.mubr.msk.f32.vlgmr.msra.gmra.mxu1 %vm74_vm0, %v6504_v35 }
  0x65   :  { %5677 = vmatpush3.msra.mxu0 %v1076_v27  ;;  %5615 = vmatprep.mubr.msk.f32.mxu0 %vm74_vm0, %v6633_v36  ;;  %v1070_v27 = vld [vmem:[#allocation6 + $0x108] sm:$0xff] }
  0x66   :  { %5678 = vmatprep.subr.mxu0 %v1075_v37  ;;  %5655 = vmatprep.mubr.msk.f32.mxu1 %vm74_vm0, %v6514_v39 }
  0x67   :  { %5679 = vmatpush3.msra.mxu0 %v1075_v37  ;;  %5717 = vmatpush3.msra.mxu1 %v1310_v53  ;;  %v6688_v37 = vld [vmem:[#allocation2 + $0xd2] sm:$0xff] }
  0x68   :  { %5616 = vmatmul.mubr.msk.f32.gmra.mxu0 %vm74_vm0, %v6639_v42  ;;  %5680 = vmatprep.subr.mxu0 %v1074_v49  ;;  %v6700_v53 = vld [vmem:[#allocation2 + $0xf2] sm:$0xff] }
  0x69   :  { %5656 = vmatmul.mubr.msk.f32.gmra.mxu1 %vm74_vm0, %v6520_v41  ;;  %5618 = vmatprep.mubr.msk.f32.mxu0 %vm74_vm0, %v6643_v50 }
  0x6a   :  { %5658 = vmatprep.mubr.msk.f32.mxu1 %vm74_vm0, %v6532_v45  ;;  %5681 = vmatpush3.msra.mxu0 %v1074_v49  ;;  %v1306_v49 = vld [vmem:[#allocation6 + $0x158] sm:$0xff] }
  0x6b   :  { %5682 = vmatprep.subr.mxu0 %v1073_v32  ;;  %5718 = vmatprep.subr.mxu1 %v1309_v62 }
  0x6c   :  { %5619 = vmatmul.mubr.msk.f32.gmra.mxu0 %vm74_vm0, %v6653_v54  ;;  %5719 = vmatpush3.msra.mxu1 %v1309_v62  ;;  %v1305_v62 = vld [vmem:[#allocation6 + $0x150] sm:$0xff] }
  0x6d   :  { %5659 = vmatmul.mubr.msk.f32.gmra.mxu1 %vm74_vm0, %v6542_v48  ;;  %5621 = vmatprep.mubr.msk.f32.mxu0 %vm74_vm0, %v6657_v56 }
  0x6e   :  { %5661 = vmatprep.mubr.msk.f32.mxu1 %vm74_vm0, %v6556_v52  ;;  %5683 = vmatpush3.msra.mxu0 %v1073_v32  ;;  %v1069_v32 = vld [vmem:[#allocation6 + $0x100] sm:$0xff] }
  0x6f   :  { %5684 = vmatprep.subr.mxu0 %v1072_v57  ;;  %5720 = vmatprep.subr.mxu1 %v1308_v16 }
  0x70   :  { %5622 = vmatmul.mubr.msk.f32.gmra.mxu0 %vm74_vm0, %v6665_v63  ;;  %5721 = vmatpush3.msra.mxu1 %v1308_v16  ;;  %v6716_v16 = vld [vmem:[#allocation2 + $0x120] sm:$0xff] }
  0x71   :  { %5662 = vmatmul.mubr.msk.f32.gmra.mxu1 %vm74_vm0, %v6669_v5  ;;  %5624 = vmatprep.mubr.msk.f32.mxu0 %vm74_vm0, %v592_v6  ;;  %v6712_v6 = vld [vmem:[#allocation2 + $0x112] sm:$0xff] }
  0x72   :  { %5664 = vmatprep.mubr.msk.f32.mxu1 %vm74_vm0, %v6570_v59  ;;  %5685 = vmatpush3.msra.mxu0 %v1072_v57  ;;  %v6692_v59 = vld [vmem:[#allocation2 + $0xe2] sm:$0xff] }
  0x73   :  { %5686 = vmatprep.subr.mxu0 %v1071_v13  ;;  %5722 = vmatprep.subr.mxu1 %v1307_v30  ;;  %v6704_v57 = vld [vmem:[#allocation2 + $0x102] sm:$0xff] }
  0x74   :  { %5625 = vmatmul.mubr.msk.f32.gmra.mxu0 %vm74_vm0, %v6676_v25  ;;  %5723 = vmatpush3.msra.mxu1 %v1307_v30  ;;  %v1303_v30 = vld [vmem:[#allocation6 + $0x140] sm:$0xff] }
  0x75   :  { %5665 = vmatmul.mubr.msk.f32.gmra.mxu1 %vm74_vm0, %v6574_v61  ;;  %5627 = vmatprep.mubr.msk.f32.mxu0 %vm74_vm0, %v6680_v26 }
  0x76   :  { %5667 = vmatprep.mubr.msk.f32.mxu1 %vm74_vm0, %v6586_v1  ;;  %5687 = vmatpush3.msra.mxu0 %v1071_v13  ;;  %v1304_v13 = vld [vmem:[#allocation6 + $0x148] sm:$0xff] }
  0x77   :  { %5688 = vmatprep.subr.mxu0 %v1070_v27  ;;  %5724 = vmatprep.subr.mxu1 %v1306_v49 }
  0x78   :  { %5628 = vmatmul.mubr.msk.f32.gmra.mxu0 %vm74_vm0, %v6688_v37  ;;  %5725 = vmatpush3.msra.mxu1 %v1306_v49  ;;  %v1544_v49 = vld [vmem:[#allocation6 + $0x1b0] sm:$0xff] }
  0x79   :  { %5668 = vmatmul.mubr.msk.f32.gmra.mxu1 %vm74_vm0, %v6590_v3  ;;  %5630 = vmatprep.mubr.msk.f32.mxu0 %vm74_vm0, %v6692_v59 }
  0x7a   :  { %5670 = vmatprep.mubr.msk.f32.mxu1 %vm74_vm0, %v6606_v8  ;;  %5689 = vmatpush3.msra.mxu0 %v1070_v27  ;;  %v1545_v27 = vld [vmem:[#allocation6 + $0x1b8] sm:$0xff] }
  0x7b   :  { %5690 = vmatprep.subr.mxu0 %v1069_v32  ;;  %5726 = vmatprep.subr.mxu1 %v1305_v62 }
  0x7c   :  { %5631 = vmatmul.mubr.msk.f32.gmra.mxu0 %vm74_vm0, %v6700_v53  ;;  %5727 = vmatpush3.msra.mxu1 %v1305_v62  ;;  %v1541_v62 = vld [vmem:[#allocation6 + $0x198] sm:$0xff] }
  0x7d   :  { %5671 = vmatmul.mubr.msk.f32.gmra.mxu1 %vm74_vm0, %v6610_v10  ;;  %5633 = vmatprep.mubr.msk.f32.mxu0 %vm74_vm0, %v6704_v57 }
  0x7e   :  { %5673 = vmatprep.mubr.msk.f32.mxu1 %vm74_vm0, %v6622_v21  ;;  %5691 = vmatpush3.msra.mxu0 %v1069_v32  ;;  %v1543_v32 = vld [vmem:[#allocation6 + $0x1a8] sm:$0xff] }
  0x7f   :  { %5728 = vmatprep.subr.mxu1 %v1304_v13  ;;  %5756 = vmatprep.subr.mxu0 %v1545_v27 }
  0x80   :  { %5634 = vmatmul.mubr.msk.f32.gmra.mxu0 %vm74_vm0, %v6712_v6  ;;  %5729 = vmatpush3.msra.mxu1 %v1304_v13  ;;  %v1778_v13 = vld [vmem:[#allocation6 + $0x1f0] sm:$0xff] }
  0x81   :  { %5674 = vmatmul.mubr.msk.f32.gmra.mxu1 %vm74_vm0, %v6716_v16  ;;  %5692 = vmatprep.mubr.msk.f32.mxu0 %vm74_vm0, %v6496_v31  ;;  %v1542_v31 = vld [vmem:[#allocation6 + $0x1a0] sm:$0xff] }
  0x82   :  { %5730 = vmatprep.subr.mxu1 %v1303_v30  ;;  %5732 = vmatprep.mubr.msk.f32.mxu1 %vm74_vm0, %v6629_v33  ;;  %v1779_v33 = vld [vmem:[#allocation6 + $0x1f8] sm:$0xff] }
  0x83   :  { %5731 = vmatpush3.msra.mxu1 %v1303_v30  ;;  %v6752_v30 = vld [vmem:[#allocation2 + $0x82] sm:$0xff] }
  0x84   :  { %5693 = vmatmul.mubr.msk.f32.vlgmr.msra.gmra.mxu0 %vm74_vm0, %v6501_v34  ;;  %5796 = vmatprep.subr.mxu1 %v1779_v33 }
  0x85   :  { %5757 = vmatpush3.msra.mxu0 %v1545_v27  ;;  %5733 = vmatmul.mubr.msk.f32.vlgmr.msra.gmra.mxu1 %vm74_vm0, %v6633_v36  ;;  %v6748_v27 = vld [vmem:[#allocation2 + $0x81] sm:$0xff] }
  0x86   :  { %5695 = vmatprep.mubr.msk.f32.mxu0 %vm74_vm0, %v6512_v38  ;;  %5758 = vmatprep.subr.mxu0 %v1544_v49 }
  0x87   :  { %5735 = vmatprep.mubr.msk.f32.mxu1 %vm74_vm0, %v6639_v42  ;;  %5759 = vmatpush3.msra.mxu0 %v1544_v49  ;;  %v1540_v49 = vld [vmem:[#allocation6 + $0x190] sm:$0xff] }
  0x88   :  { %5696 = vmatmul.mubr.msk.f32.gmra.mxu0 %vm74_vm0, %v6518_v40  ;;  %5760 = vmatprep.subr.mxu0 %v1543_v32 }
  0x89   :  { %5736 = vmatmul.mubr.msk.f32.gmra.mxu1 %vm74_vm0, %v6643_v50  ;;  %5698 = vmatprep.mubr.msk.f32.mxu0 %vm74_vm0, %v6530_v44 }
  0x8a   :  { %5738 = vmatprep.mubr.msk.f32.mxu1 %vm74_vm0, %v6653_v54  ;;  %5761 = vmatpush3.msra.mxu0 %v1543_v32  ;;  %v1777_v32 = vld [vmem:[#allocation6 + $0x1e8] sm:$0xff] }
  0x8b   :  { %5762 = vmatprep.subr.mxu0 %v1542_v31  ;;  %5797 = vmatpush3.msra.mxu1 %v1779_v33  ;;  %v1776_v33 = vld [vmem:[#allocation6 + $0x1e0] sm:$0xff] }
  0x8c   :  { %5699 = vmatmul.mubr.msk.f32.gmra.mxu0 %vm74_vm0, %v6540_v47  ;;  %5798 = vmatprep.subr.mxu1 %v1778_v13 }
  0x8d   :  { %5739 = vmatmul.mubr.msk.f32.gmra.mxu1 %vm74_vm0, %v6657_v56  ;;  %5701 = vmatprep.mubr.msk.f32.mxu0 %vm74_vm0, %v6554_v51 }
  0x8e   :  { %5741 = vmatprep.mubr.msk.f32.mxu1 %vm74_vm0, %v6665_v63  ;;  %5763 = vmatpush3.msra.mxu0 %v1542_v31  ;;  %v1539_v31 = vld [vmem:[#allocation6 + $0x188] sm:$0xff] }
  0x8f   :  { %5764 = vmatprep.subr.mxu0 %v1541_v62  ;;  %5799 = vmatpush3.msra.mxu1 %v1778_v13  ;;  %v6784_v13 = vld [vmem:[#allocation2 + $0x121] sm:$0xff] }
  0x90   :  { %5702 = vmatmul.mubr.msk.f32.gmra.mxu0 %vm74_vm0, %v6748_v27  ;;  %5800 = vmatprep.subr.mxu1 %v1777_v32 }
  0x91   :  { %5742 = vmatmul.mubr.msk.f32.gmra.mxu1 %vm74_vm0, %v6752_v30  ;;  %5704 = vmatprep.mubr.msk.f32.mxu0 %vm74_vm0, %v6568_v58  ;;  %v1775_v58 = vld [vmem:[#allocation6 + $0x1d8] sm:$0xff] }
  0x92   :  { %5744 = vmatprep.mubr.msk.f32.mxu1 %vm74_vm0, %v6676_v25  ;;  %5765 = vmatpush3.msra.mxu0 %v1541_v62  ;;  %v1538_v25 = vld [vmem:[#allocation6 + $0x180] sm:$0xff]  ;;  %v1774_v62 = vld [vmem:[#allocation6 + $0x1d0] sm:$0xff] }
  0x93   :  { %5766 = vmatprep.subr.mxu0 %v1540_v49  ;;  %5801 = vmatpush3.msra.mxu1 %v1777_v32  ;;  %v6788_v32 = vld [vmem:[#allocation2 + $0x122] sm:$0xff] }
  0x94   :  { %5705 = vmatmul.mubr.msk.f32.gmra.mxu0 %vm74_vm0, %v6572_v60  ;;  %5802 = vmatprep.subr.mxu1 %v1776_v33 }
  0x95   :  { %5745 = vmatmul.mubr.msk.f32.gmra.mxu1 %vm74_vm0, %v6680_v26  ;;  %5707 = vmatprep.mubr.msk.f32.mxu0 %vm74_vm0, %v6584_v0 }
  0x96   :  { %5747 = vmatprep.mubr.msk.f32.mxu1 %vm74_vm0, %v6688_v37  ;;  %5767 = vmatpush3.msra.mxu0 %v1540_v49  ;;  %v1773_v49 = vld [vmem:[#allocation6 + $0x1c8] sm:$0xff] }
  0x97   :  { %5768 = vmatprep.subr.mxu0 %v1539_v31  ;;  %5803 = vmatpush3.msra.mxu1 %v1776_v33  ;;  %v1772_v33 = vld [vmem:[#allocation6 + $0x1c0] sm:$0xff] }
  0x98   :  { %5708 = vmatmul.mubr.msk.f32.gmra.mxu0 %vm74_vm0, %v6588_v2  ;;  %5804 = vmatprep.subr.mxu1 %v1775_v58 }
  0x99   :  { %5748 = vmatmul.mubr.msk.f32.gmra.mxu1 %vm74_vm0, %v6692_v59  ;;  %5710 = vmatprep.mubr.msk.f32.mxu0 %vm74_vm0, %v6604_v7 }
  0x9a   :  { %5750 = vmatprep.mubr.msk.f32.mxu1 %vm74_vm0, %v6700_v53  ;;  %5769 = vmatpush3.msra.mxu0 %v1539_v31  ;;  %v2013_v31 = vld [vmem:[#allocation6 + $0x238] sm:$0xff] }
  0x9b   :  { %5770 = vmatprep.subr.mxu0 %v1538_v25  ;;  %5805 = vmatpush3.msra.mxu1 %v1775_v58  ;;  %v2012_v58 = vld [vmem:[#allocation6 + $0x230] sm:$0xff] }
  0x9c   :  { %5711 = vmatmul.mubr.msk.f32.gmra.mxu0 %vm74_vm0, %v6608_v9  ;;  %5806 = vmatprep.subr.mxu1 %v1774_v62 }
  0x9d   :  { %5751 = vmatmul.mubr.msk.f32.gmra.mxu1 %vm74_vm0, %v6704_v57  ;;  %5713 = vmatprep.mubr.msk.f32.mxu0 %vm74_vm0, %v6620_v20 }
  0x9e   :  { %5753 = vmatprep.mubr.msk.f32.mxu1 %vm74_vm0, %v6712_v6  ;;  %5771 = vmatpush3.msra.mxu0 %v1538_v25  ;;  %v2011_v25 = vld [vmem:[#allocation6 + $0x228] sm:$0xff] }
  0x9f   :  { %5807 = vmatpush3.msra.mxu1 %v1774_v62  ;;  %5836 = vmatprep.subr.mxu0 %v2013_v31 }
  0xa0   :  { %5714 = vmatmul.mubr.msk.f32.gmra.mxu0 %vm74_vm0, %v6784_v13  ;;  %5808 = vmatprep.subr.mxu1 %v1773_v49 }
  0xa1   :  { %5754 = vmatmul.mubr.msk.f32.gmra.mxu1 %vm74_vm0, %v6788_v32  ;;  %5772 = vmatprep.mubr.msk.f32.mxu0 %vm74_vm0, %v6504_v35  ;;  %v2009_v35 = vld [vmem:[#allocation6 + $0x218] sm:$0xff] }
  0xa2   :  { %5809 = vmatpush3.msra.mxu1 %v1773_v49  ;;  %5812 = vmatprep.mubr.msk.f32.mxu1 %vm74_vm0, %v6501_v34  ;;  %v2010_v34 = vld [vmem:[#allocation6 + $0x220] sm:$0xff] }
  0xa3   :  { %5810 = vmatprep.subr.mxu1 %v1772_v33 }
  0xa4   :  { %5773 = vmatmul.mubr.msk.f32.vlgmr.msra.gmra.mxu0 %vm74_vm0, %v6514_v39  ;;  %5811 = vmatpush3.msra.mxu1 %v1772_v33  ;;  %v1762_v39 = vld [vmem:[#allocation2 + $0x91] sm:$0xff] }
  0xa5   :  { %5837 = vmatpush3.msra.mxu0 %v2013_v31  ;;  %5813 = vmatmul.mubr.msk.f32.vlgmr.msra.gmra.mxu1 %vm74_vm0, %v6512_v38  ;;  %v1528_v38 = vld [vmem:[#allocation2 + $0x90] sm:$0xff] }
  0xa6   :  { %5775 = vmatprep.mubr.msk.f32.mxu0 %vm74_vm0, %v6520_v41  ;;  %5838 = vmatprep.subr.mxu0 %v2012_v58  ;;  %v2007_v41 = vld [vmem:[#allocation6 + $0x208] sm:$0xff] }
  0xa7   :  { %5815 = vmatprep.mubr.msk.f32.mxu1 %vm74_vm0, %v6518_v40  ;;  %5839 = vmatpush3.msra.mxu0 %v2012_v58  ;;  %v2008_v40 = vld [vmem:[#allocation6 + $0x210] sm:$0xff] }
  0xa8   :  { %5776 = vmatmul.mubr.msk.f32.gmra.mxu0 %vm74_vm0, %v6532_v45  ;;  %5840 = vmatprep.subr.mxu0 %v2011_v25  ;;  %v1536_v45 = vld [vmem:[#allocation2 + $0x130] sm:$0xff] }
  0xa9   :  { %5816 = vmatmul.mubr.msk.f32.gmra.mxu1 %vm74_vm0, %v6530_v44  ;;  %5778 = vmatprep.mubr.msk.f32.mxu0 %vm74_vm0, %v6542_v48  ;;  %v2006_v44 = vld [vmem:[#allocation6 + $0x200] sm:$0xff]  ;;  %v1996_v48 = vld [vmem:[#allocation2 + $0x92] sm:$0xff] }
  0xaa   :  { %5818 = vmatprep.mubr.msk.f32.mxu1 %vm74_vm0, %v6540_v47  ;;  %5841 = vmatpush3.msra.mxu0 %v2011_v25  ;;  %v1770_v47 = vld [vmem:[#allocation2 + $0x131] sm:$0xff] }
  0xab   :  { %5842 = vmatprep.subr.mxu0 %v2010_v34  ;;  %5876 = vmatprep.subr.mxu1 %v2501_v12 }
  0xac   :  { %5779 = vmatmul.mubr.msk.f32.gmra.mxu0 %vm74_vm0, %v6556_v52  ;;  %5877 = vmatpush3.msra.mxu1 %v2501_v12  ;;  %v2498_v12 = vld [vmem:[#allocation8 + $0x60] sm:$0xff] }
  0xad   :  { %5819 = vmatmul.mubr.msk.f32.gmra.mxu1 %vm74_vm0, %v6554_v51  ;;  %5781 = vmatprep.mubr.msk.f32.mxu0 %vm74_vm0, %v6669_v5  ;;  %v2004_v51 = vld [vmem:[#allocation2 + $0x132] sm:$0xff] }
  0xae   :  { %5821 = vmatprep.mubr.msk.f32.mxu1 %vm74_vm0, %v6748_v27  ;;  %5843 = vmatpush3.msra.mxu0 %v2010_v34 }
  0xaf   :  { %5844 = vmatprep.subr.mxu0 %v2009_v35 }
  0xb0   :  { %5782 = vmatmul.mubr.msk.f32.gmra.mxu0 %vm74_vm0, %v1528_v38 }
  0xb1   :  { %5822 = vmatmul.mubr.msk.f32.gmra.mxu1 %vm74_vm0, %v1762_v39  ;;  %5784 = vmatprep.mubr.msk.f32.mxu0 %vm74_vm0, %v6574_v61 }
  0xb2   :  { %5824 = vmatprep.mubr.msk.f32.mxu1 %vm74_vm0, %v6572_v60  ;;  %5845 = vmatpush3.msra.mxu0 %v2009_v35 }
  0xb3   :  { %5846 = vmatprep.subr.mxu0 %v2008_v40 }
  0xb4   :  { %5785 = vmatmul.mubr.msk.f32.gmra.mxu0 %vm74_vm0, %v6586_v1 }
  0xb5   :  { %5825 = vmatmul.mubr.msk.f32.gmra.mxu1 %vm74_vm0, %v6584_v0  ;;  %5787 = vmatprep.mubr.msk.f32.mxu0 %vm74_vm0, %v6590_v3 }
  0xb6   :  { %5827 = vmatprep.mubr.msk.f32.mxu1 %vm74_vm0, %v6588_v2  ;;  %5847 = vmatpush3.msra.mxu0 %v2008_v40 }
  0xb7   :  { %5848 = vmatprep.subr.mxu0 %v2007_v41 }
  0xb8   :  { %5788 = vmatmul.mubr.msk.f32.gmra.mxu0 %vm74_vm0, %v6606_v8 }
  0xb9   :  { %5828 = vmatmul.mubr.msk.f32.gmra.mxu1 %vm74_vm0, %v6604_v7  ;;  %5790 = vmatprep.mubr.msk.f32.mxu0 %vm74_vm0, %v6610_v10 }
  0xba   :  { %5830 = vmatprep.mubr.msk.f32.mxu1 %vm74_vm0, %v6608_v9  ;;  %5849 = vmatpush3.msra.mxu0 %v2007_v41 }
  0xbb   :  { %5850 = vmatprep.subr.mxu0 %v2006_v44 }
  0xbc   :  { %5791 = vmatmul.mubr.msk.f32.gmra.mxu0 %vm74_vm0, %v6622_v21 }
  0xbd   :  { %5831 = vmatmul.mubr.msk.f32.gmra.mxu1 %vm74_vm0, %v6620_v20  ;;  %5793 = vmatprep.mubr.msk.f32.mxu0 %vm74_vm0, %v6716_v16 }
  0xbe   :  { %5833 = vmatprep.mubr.msk.f32.mxu1 %vm74_vm0, %v6784_v13  ;;  %5851 = vmatpush3.msra.mxu0 %v2006_v44 }
  0xbf   :  { %5916 = vmatprep.subr.mxu0 %v2476_v11 }
  0xc0   :  { %5794 = vmatmul.mubr.msk.f32.gmra.mxu0 %vm74_vm0, %v1536_v45 }
  0xc1   :  { %5834 = vmatmul.mubr.msk.f32.gmra.mxu1 %vm74_vm0, %v1770_v47  ;;  %5852 = vmatprep.mubr.msk.f32.mxu0 %vm74_vm0, %v6633_v36 }
  0xc4   :  { %5853 = vmatmul.mubr.msk.f32.vlgmr.msra.gmra.mxu0 %vm74_vm0, %v6639_v42 }
  0xc5   :  { %5855 = vmatprep.mubr.msk.f32.mxu0 %vm74_vm0, %v6643_v50  ;;  %5917 = vmatpush3.msra.mxu0 %v2476_v11  ;;  %v2473_v11 = vld [vmem:[#allocation8 + $0x20] sm:$0xff] }
  0xc8   :  { %5856 = vmatmul.mubr.msk.f32.gmra.mxu0 %vm74_vm0, %v6653_v54 }
  0xc9   :  { %5858 = vmatprep.mubr.msk.f32.mxu0 %vm74_vm0, %v6657_v56 }
  0xcc   :  { %5859 = vmatmul.mubr.msk.f32.gmra.mxu0 %vm74_vm0, %v6665_v63 }
  0xcd   :  { %5861 = vmatprep.mubr.msk.f32.mxu0 %vm74_vm0, %v6752_v30 }
  0xd0   :  { %5862 = vmatmul.mubr.msk.f32.gmra.mxu0 %vm74_vm0, %v1996_v48 }
  0xd1   :  { %5864 = vmatprep.mubr.msk.f32.mxu0 %vm74_vm0, %v6680_v26 }
  0xd4   :  { %5865 = vmatmul.mubr.msk.f32.gmra.mxu0 %vm74_vm0, %v6688_v37 }
  0xd5   :  { %5867 = vmatprep.mubr.msk.f32.mxu0 %vm74_vm0, %v6692_v59 }
  0xd8   :  { %5868 = vmatmul.mubr.msk.f32.gmra.mxu0 %vm74_vm0, %v6700_v53 }
  0xd9   :  { %5870 = vmatprep.mubr.msk.f32.mxu0 %vm74_vm0, %v6704_v57 }
  0xdc   :  { %5871 = vmatmul.mubr.msk.f32.gmra.mxu0 %vm74_vm0, %v6712_v6 }
  0xdd   :  { %5873 = vmatprep.mubr.msk.f32.mxu0 %vm74_vm0, %v6788_v32 }
  0xe0   :  { %5874 = vmatmul.mubr.msk.f32.gmra.mxu0 %vm74_vm0, %v2004_v51 }
 0x103   :  { %v5534_v52 = vpop.f32.mrf.mxu0 }
 0x104   :  { %v5574_v60 = vpop.f32.mrf.mxu1 }
 0x105   :  { %v511_v61 = vadd.f32 %v5574_v60, %v5534_v52  ;;  %v6884_v0 = vpop.f32.mrf.mxu0 }
 0x106   :  { %v6886_v1 = vpop.f32.mrf.mxu1 }
 0x107   :  { %v5537_v2 = vpop.f32.mrf.mxu0 }
 0x108   :  { %v5577_v3 = vpop.f32.mrf.mxu1 }
 0x109   :  { %v521_v7 = vadd.f32 %v5577_v3, %v5537_v2  ;;  %v6888_v8 = vpop.f32.mrf.mxu0 }
 0x10a   :  { %v6890_v9 = vpop.f32.mrf.mxu1 }
 0x10c   :  { %v5540_v10 = vpop.f32.mrf.mxu0  ;;  %v5580_v20 = vpop.f32.mrf.mxu1 }
 0x10d   :  { %v531_v21 = vadd.f32 %v5580_v20, %v5540_v10 }
 0x10e   :  { %v6892_v36 = vpop.f32.mrf.mxu0  ;;  %v6894_v42 = vpop.f32.mrf.mxu1 }
 0x110   :  { %v5543_v50 = vpop.f32.mrf.mxu0  ;;  %v5583_v54 = vpop.f32.mrf.mxu1 }
 0x111   :  { %v541_v56 = vadd.f32 %v5583_v54, %v5543_v50 }
 0x112   :  { %v6896_v63 = vpop.f32.mrf.mxu0  ;;  %v6898_v5 = vpop.f32.mrf.mxu1 }
 0x114   :  { %v5546_v26 = vpop.f32.mrf.mxu0  ;;  %v5586_v37 = vpop.f32.mrf.mxu1 }
 0x115   :  { %v551_v59 = vadd.f32 %v5586_v37, %v5546_v26 }
 0x116   :  { %v6900_v53 = vpop.f32.mrf.mxu0  ;;  %v6902_v57 = vpop.f32.mrf.mxu1 }
 0x118   :  { %v5549_v6 = vpop.f32.mrf.mxu0  ;;  %v5589_v16 = vpop.f32.mrf.mxu1 }
 0x119   :  { %v561_v27 = vadd.f32 %v5589_v16, %v5549_v6 }
 0x11a   :  { %v6904_v30 = vpop.f32.mrf.mxu0  ;;  %v6906_v62 = vpop.f32.mrf.mxu1 }
 0x11c   :  { %v5552_v13 = vpop.f32.mrf.mxu0  ;;  %v5592_v49 = vpop.f32.mrf.mxu1 }
 0x11d   :  { %v571_v32 = vadd.f32 %v5592_v49, %v5552_v13 }
 0x11e   :  { %v6908_v31 = vpop.f32.mrf.mxu0  ;;  %v6910_v33 = vpop.f32.mrf.mxu1 }
 0x120   :  { %v5555_v58 = vpop.f32.mrf.mxu0  ;;  %v5595_v25 = vpop.f32.mrf.mxu1 }
 0x121   :  { %v581_v34 = vadd.f32 %v5595_v25, %v5555_v58 }
 0x122   :  { %v6912_v35 = vpop.f32.mrf.mxu0  ;;  %v6914_v38 = vpop.f32.mrf.mxu1 }
 0x124   :  { %v5614_v39 = vpop.f32.mrf.mxu0  ;;  %v6918_v41 = vpop.f32.mrf.mxu1 }
 0x125   :  { %v6916_v40 = vadd.f32 %v5614_v39, %v511_v61 }
 0x126   :  { %v6920_v44 = vpop.f32.mrf.mxu0  ;;  %v6922_v45 = vpop.f32.mrf.mxu1 }
 0x128   :  { %v5617_v47 = vpop.f32.mrf.mxu0 }
 0x129   :  { %v6924_v48 = vadd.f32 %v5617_v47, %v521_v7  ;;  %v6926_v51 = vpop.f32.mrf.mxu1 }
 0x12a   :  { %v6928_v52 = vpop.f32.mrf.mxu0 }
 0x12b   :  { %v6930_v60 = vpop.f32.mrf.mxu1 }
 0x12c   :  { %v5620_v2 = vpop.f32.mrf.mxu0 }
 0x12d   :  { %v6932_v3 = vadd.f32 %v5620_v2, %v531_v21  ;;  %v6934_v61 = vpop.f32.mrf.mxu1 }
 0x12e   :  { %v6936_v10 = vpop.f32.mrf.mxu0 }
 0x12f   :  { %v6938_v20 = vpop.f32.mrf.mxu1 }
 0x130   :  { %v5623_v50 = vpop.f32.mrf.mxu0 }
 0x131   :  { %v6940_v54 = vadd.f32 %v5623_v50, %v541_v56  ;;  %v6942_v7 = vpop.f32.mrf.mxu1 }
 0x132   :  { %v6944_v26 = vpop.f32.mrf.mxu0 }
 0x133   :  { %v6946_v37 = vpop.f32.mrf.mxu1 }
 0x134   :  { %v5626_v6 = vpop.f32.mrf.mxu0 }
 0x135   :  { %v6948_v16 = vadd.f32 %v5626_v6, %v551_v59  ;;  %v6950_v21 = vpop.f32.mrf.mxu1 }
 0x136   :  { %v6952_v13 = vpop.f32.mrf.mxu0 }
 0x137   :  { %v6954_v49 = vpop.f32.mrf.mxu1 }
 0x138   :  { %v5629_v58 = vpop.f32.mrf.mxu0 }
 0x139   :  { %v6956_v25 = vadd.f32 %v5629_v58, %v561_v27  ;;  %v6958_v56 = vpop.f32.mrf.mxu1 }
 0x13a   :  { %v6960_v39 = vpop.f32.mrf.mxu0 }
 0x13b   :  { %v6962_v47 = vpop.f32.mrf.mxu1 }
 0x13c   :  { %v5632_v2 = vpop.f32.mrf.mxu0 }
 0x13d   :  { %v6964_v50 = vadd.f32 %v5632_v2, %v571_v32  ;;  %v6966_v59 = vpop.f32.mrf.mxu1 }
 0x13e   :  { %v6968_v6 = vpop.f32.mrf.mxu0 }
 0x13f   :  { %v6970_v4 = vpop.f32.mrf.mxu1 }
 0x140   :  { %v5635_v43 = vpop.f32.mrf.mxu0 }
 0x141   :  { %v6972_v29 = vadd.f32 %v5635_v43, %v581_v34  ;;  %v6974_v27 = vpop.f32.mrf.mxu1 }
 0x142   :  { %8241 = vst [vmem:[#allocation30_spill] sm:$0xff] %v6974_v27  ;;  %v6976_v58 = vpop.f32.mrf.mxu0 }
 0x143   :  { %8240 = vst [vmem:[#allocation29_spill] sm:$0xff] %v6972_v29  ;;  %v6978_v28 = vpop.f32.mrf.mxu1  ;;  %v2474_v29 = vld [vmem:[#allocation8 + $0x28] sm:$0xff] }
 0x144   :  { %8242 = vst [vmem:[#allocation31_spill] sm:$0xff] %v6978_v28  ;;  %v6980_v24 = vpop.f32.mrf.mxu0  ;;  %v2475_v28 = vld [vmem:[#allocation8 + $0x30] sm:$0xff] }
 0x145   :  { %v6982_v23 = vpop.f32.mrf.mxu1  ;;  %5918 = vmatprep.subr.mxu0 %v2475_v28 }
 0x146   :  { %v6984_v32 = vpop.f32.mrf.mxu0  ;;  %5919 = vmatpush3.msra.mxu0 %v2475_v28  ;;  %v2472_v28 = vld [vmem:[#allocation8 + $0x18] sm:$0xff] }
 0x147   :  { %v6986_v2 = vpop.f32.mrf.mxu1  ;;  %5920 = vmatprep.subr.mxu0 %v2474_v29 }
 0x148   :  { %8243 = vst [vmem:[#allocation32_spill] sm:$0xff] %v6986_v2  ;;  %v6988_v22 = vpop.f32.mrf.mxu0  ;;  %5921 = vmatpush3.msra.mxu0 %v2474_v29  ;;  %v2495_v29 = vld [vmem:[#allocation8 + $0x48] sm:$0xff] }
 0x149   :  { %v6990_v55 = vpop.f32.mrf.mxu1  ;;  %5922 = vmatprep.subr.mxu0 %v2473_v11 }
 0x14a   :  { %8244 = vst [vmem:[#allocation33_spill] sm:$0xff] %v6990_v55  ;;  %v6992_v43 = vpop.f32.mrf.mxu0  ;;  %5923 = vmatpush3.msra.mxu0 %v2473_v11  ;;  %v2494_v11 = vld [vmem:[#allocation8 + $0x40] sm:$0xff] }
 0x14b   :  { %v6994_v34 = vpop.f32.mrf.mxu1  ;;  %5924 = vmatprep.subr.mxu0 %v2472_v28 }
 0x14c   :  { %8245 = vst [vmem:[#allocation34_spill] sm:$0xff] %v6994_v34  ;;  %v6996_v19 = vpop.f32.mrf.mxu0  ;;  %v2500_v34 = vld [vmem:[#allocation8 + $0x70] sm:$0xff]  ;;  %5925 = vmatpush3.msra.mxu0 %v2472_v28 }
 0x14d   :  { %v6998_v18 = vpop.f32.mrf.mxu1  ;;  %5878 = vmatprep.subr.mxu1 %v2500_v34 }
 0x14e   :  { %8246 = vst [vmem:[#allocation35_spill] sm:$0xff] %v6998_v18  ;;  %v7000_v17 = vpop.f32.mrf.mxu0  ;;  %5879 = vmatpush3.msra.mxu1 %v2500_v34  ;;  %v2497_v34 = vld [vmem:[#allocation8 + $0x58] sm:$0xff] }
 0x14f   :  { %8247 = vst [vmem:[#allocation36_spill] sm:$0xff] %v7000_v17  ;;  %v7002_v15 = vpop.f32.mrf.mxu1  ;;  %v2477_v17 = vld [vmem:[#allocation2 + $0x1] sm:$0xff] }
 0x150   :  { %8248 = vst [vmem:[#allocation37_spill] sm:$0xff] %v7002_v15  ;;  %v7004_v14 = vpop.f32.mrf.mxu0  ;;  %v2499_v15 = vld [vmem:[#allocation8 + $0x68] sm:$0xff]  ;;  %5892 = vmatprep.mubr.msk.f32.mxu1 %vm74_vm0, %v2477_v17 }
 0x151   :  { %8249 = vst [vmem:[#allocation38_spill] sm:$0xff] %v7004_v14  ;;  %v7006_v46 = vpop.f32.mrf.mxu1  ;;  %5880 = vmatprep.subr.mxu1 %v2499_v15 }
 0x152   :  { %8250 = vst [vmem:[#allocation39_spill] sm:$0xff] %v7006_v46  ;;  %v7008_v55 = vpop.f32.mrf.mxu0  ;;  %5881 = vmatpush3.msra.mxu1 %v2499_v15 }
 0x153   :  { %8251 = vst [vmem:[#allocation40_spill] sm:$0xff] %v7008_v55  ;;  %v7010_v27 = vpop.f32.mrf.mxu1  ;;  %5882 = vmatprep.subr.mxu1 %v2498_v12 }
 0x154   :  { %8252 = vst [vmem:[#allocation41_spill] sm:$0xff] %v7010_v27  ;;  %v7012_v18 = vpop.f32.mrf.mxu0  ;;  %5883 = vmatpush3.msra.mxu1 %v2498_v12 }
 0x155   :  { %8253 = vst [vmem:[#allocation42_spill] sm:$0xff] %v7012_v18  ;;  %v7014_v14 = vpop.f32.mrf.mxu1  ;;  %5884 = vmatprep.subr.mxu1 %v2497_v34 }
 0x156   :  { %8254 = vst [vmem:[#allocation43_spill] sm:$0xff] %v7014_v14  ;;  %v7016_v46 = vpop.f32.mrf.mxu0  ;;  %v2496_v14 = vld [vmem:[#allocation8 + $0x50] sm:$0xff]  ;;  %5885 = vmatpush3.msra.mxu1 %v2497_v34  ;;  %v2453_v34 = vld [vmem:[#allocation2] sm:$0xff] }
 0x157   :  { %8255 = vst [vmem:[#allocation44_spill] sm:$0xff] %v7016_v46  ;;  %v7018_v55 = vpop.f32.mrf.mxu1  ;;  %v2471_v46 = vld [vmem:[#allocation8 + $0x10] sm:$0xff]  ;;  %5886 = vmatprep.subr.mxu1 %v2496_v14  ;;  %5932 = vmatprep.mubr.msk.f32.mxu0 %vm74_vm0, %v2453_v34 }
 0x158   :  { %8256 = vst [vmem:[#allocation45_spill] sm:$0xff] %v7018_v55  ;;  %v7020_v27 = vpop.f32.mrf.mxu0  ;;  %v2470_v55 = vld [vmem:[#allocation8 + $0x8] sm:$0xff]  ;;  %5926 = vmatprep.subr.mxu0 %v2471_v46  ;;  %5887 = vmatpush3.msra.mxu1 %v2496_v14 }
 0x159   :  { %8257 = vst [vmem:[#allocation46_spill] sm:$0xff] %v7020_v27  ;;  %v7022_v18 = vpop.f32.mrf.mxu1  ;;  %5927 = vmatpush3.msra.mxu0 %v2471_v46  ;;  %5888 = vmatprep.subr.mxu1 %v2495_v29  ;;  %v7042_v46 = vld [vmem:[#allocation8 + $0xb8] sm:$0xff] }
 0x15a   :  { %8258 = vst [vmem:[#allocation47_spill] sm:$0xff] %v7022_v18  ;;  %v7024_v15 = vpop.f32.mrf.mxu0  ;;  %v2469_v18 = vld [vmem:[#allocation8] sm:$0xff]  ;;  %5928 = vmatprep.subr.mxu0 %v2470_v55  ;;  %5889 = vmatpush3.msra.mxu1 %v2495_v29  ;;  %8267 = vst [vmem:[#allocation56_spill] sm:$0xff] %v7042_v46 }
 0x15b   :  { %8259 = vst [vmem:[#allocation48_spill] sm:$0xff] %v7024_v15  ;;  %v7026_v2 = vpop.f32.mrf.mxu1  ;;  %5929 = vmatpush3.msra.mxu0 %v2470_v55  ;;  %5890 = vmatprep.subr.mxu1 %v2494_v11 }
 0x15c   :  { %8260 = vst [vmem:[#allocation49_spill] sm:$0xff] %v7026_v2  ;;  %v7028_v12 = vpop.f32.mrf.mxu0  ;;  %5930 = vmatprep.subr.mxu0 %v2469_v18  ;;  %5891 = vmatpush3.msra.mxu1 %v2494_v11 }
 0x15d   :  { %8261 = vst [vmem:[#allocation50_spill] sm:$0xff] %v7028_v12  ;;  %v7030_v27 = vpop.f32.mrf.mxu1  ;;  %5931 = vmatpush3.msra.mxu0 %v2469_v18  ;;  %5956 = vmatprep.subr.mxu1 %v7042_v46 }
 0x15e   :  { %8262 = vst [vmem:[#allocation51_spill] sm:$0xff] %v7030_v27  ;;  %v7032_v15 = vpop.f32.mrf.mxu0 }
 0x15f   :  { %8263 = vst [vmem:[#allocation52_spill] sm:$0xff] %v7032_v15  ;;  %v7034_v28 = vpop.f32.mrf.mxu1 }
 0x160   :  { %8264 = vst [vmem:[#allocation53_spill] sm:$0xff] %v7034_v28  ;;  %v7036_v2 = vpop.f32.mrf.mxu0 }
 0x161   :  { %8265 = vst [vmem:[#allocation54_spill] sm:$0xff] %v7036_v2  ;;  %v7039_v14 = vpop.f32.mrf.mxu1 }
 0x162   :  { %8266 = vst [vmem:[#allocation55_spill] sm:$0xff] %v7039_v14  ;;  %v7044_v27 = vpop.f32.mrf.mxu0 }
 0x163   :  { %8268 = vst [vmem:[#allocation57_spill] sm:$0xff] %v7044_v27  ;;  %v7047_v55 = vpop.f32.mrf.mxu1 }
 0x164   :  { %8269 = vst [vmem:[#allocation58_spill] sm:$0xff] %v7047_v55  ;;  %v7049_v29 = vpop.f32.mrf.mxu0 }
 0x165   :  { %v7051_v28 = vpop.f32.mrf.mxu1 }
 0x166   :  { %8270 = vst [vmem:[#allocation59_spill] sm:$0xff] %v7051_v28  ;;  %v7053_v11 = vpop.f32.mrf.mxu0  ;;  %v7073_v28 = vld [vmem:[#allocation8 + $0xf8] sm:$0xff] }
 0x167   :  { %v7055_v17 = vpop.f32.mrf.mxu1  ;;  %8278 = vst [vmem:[#allocation67_spill] sm:$0xff] %v7073_v28  ;;  %5996 = vmatprep.subr.mxu0 %v7073_v28  ;;  %v546_v28 = vadd.f32 %v6902_v57, %v6900_v53  ;;  %v576_v57 = vadd.f32 %v6914_v38, %v6912_v35  ;;  %v1043_v38 = vadd.f32 %v6942_v7, %v6940_v54 }
 0x168   :  { %v7057_v14 = vpop.f32.mrf.mxu0  ;;  %v1049_v54 = vadd.f32 %v6966_v59, %v6964_v50  ;;  %v8282_v59 = vld [vmem:[#allocation40_spill] sm:$0xff] }
 0x169   :  { %v7059_v18 = vpop.f32.mrf.mxu1 }
 0x16a   :  { %8271 = vst [vmem:[#allocation60_spill] sm:$0xff] %v7059_v18  ;;  %v7061_v34 = vpop.f32.mrf.mxu0  ;;  %v506_v18 = vadd.f32 %v6886_v1, %v6884_v0 }
 0x16b   :  { %8272 = vst [vmem:[#allocation61_spill] sm:$0xff] %v7061_v34  ;;  %v7065_v27 = vpop.f32.mrf.mxu1 }
 0x16c   :  { %v7063_v2 = vpop.f32.mrf.mxu0  ;;  %8274 = vst [vmem:[#allocation63_spill] sm:$0xff] %v7065_v27  ;;  %v526_v27 = vadd.f32 %v6894_v42, %v6892_v36 }
 0x16d   :  { %8273 = vst [vmem:[#allocation62_spill] sm:$0xff] %v7063_v2  ;;  %v7071_v15 = vpop.f32.mrf.mxu1  ;;  %v516_v2 = vadd.f32 %v6890_v9, %v6888_v8  ;;  %v556_v8 = vadd.f32 %v6906_v62, %v6904_v30  ;;  %v1037_v9 = vadd.f32 %v6918_v41, %v6916_v40  ;;  %v1039_v41 = vadd.f32 %v6926_v51, %v6924_v48 }
 0x16e   :  { %v7067_v46 = vpop.f32.mrf.mxu0  ;;  %8277 = vst [vmem:[#allocation66_spill] sm:$0xff] %v7071_v15  ;;  %v536_v15 = vadd.f32 %v6898_v5, %v6896_v63  ;;  %v806_v36 = vadd.f32 %v6936_v10, %v526_v27  ;;  %v566_v63 = vadd.f32 %v6910_v33, %v6908_v31  ;;  %v810_v5 = vadd.f32 %v6952_v13, %v546_v28  ;;  %v8283_v27 = vld [vmem:[#allocation29_spill] sm:$0xff] }
 0x16f   :  { %8275 = vst [vmem:[#allocation64_spill] sm:$0xff] %v7067_v46  ;;  %v7089_v46 = vpop.f32.mrf.mxu1  ;;  %v804_v0 = vadd.f32 %v6928_v52, %v516_v2  ;;  %v812_v30 = vadd.f32 %v6960_v39, %v556_v8  ;;  %v1271_v62 = vadd.f32 %v6980_v24, %v1037_v9  ;;  %v1041_v33 = vadd.f32 %v6934_v61, %v6932_v3  ;;  %v8280_v39 = vld [vmem:[#allocation32_spill] sm:$0xff]  ;;  %v8289_v8 = vld [vmem:[#allocation46_spill] sm:$0xff] }
 0x170   :  { %v7069_v55 = vpop.f32.mrf.mxu0  ;;  %v808_v42 = vadd.f32 %v6944_v26, %v536_v15  ;;  %v814_v52 = vadd.f32 %v6968_v6, %v566_v63  ;;  %v1040_v35 = vadd.f32 %v6938_v20, %v806_v36  ;;  %v1045_v48 = vadd.f32 %v6950_v21, %v6948_v16  ;;  %v8281_v6 = vld [vmem:[#allocation38_spill] sm:$0xff]  ;;  %v8290_v36 = vld [vmem:[#allocation48_spill] sm:$0xff] }
 0x171   :  { %8276 = vst [vmem:[#allocation65_spill] sm:$0xff] %v7069_v55  ;;  %v802_v55 = vadd.f32 %v6920_v44, %v506_v18  ;;  %v7112_v40 = vpop.f32.mrf.mxu1  ;;  %v1038_v31 = vadd.f32 %v6930_v60, %v804_v0  ;;  %v1044_v51 = vadd.f32 %v6954_v49, %v810_v5  ;;  %v1047_v60 = vadd.f32 %v6958_v56, %v6956_v25  ;;  %v8279_v49 = vld [vmem:[#allocation36_spill] sm:$0xff]  ;;  %v8288_v18 = vld [vmem:[#allocation33_spill] sm:$0xff]  ;;  %v8291_v5 = vld [vmem:[#allocation34_spill] sm:$0xff] }
 0x172   :  { %v7075_v12 = vpop.f32.mrf.mxu0  ;;  %v1042_v24 = vadd.f32 %v6946_v37, %v808_v42  ;;  %v816_v3 = vadd.f32 %v6976_v58, %v576_v57  ;;  %v1046_v20 = vadd.f32 %v6962_v47, %v812_v30  ;;  %v1505_v7 = vadd.f32 %v6982_v23, %v1271_v62  ;;  %v8284_v58 = vld [vmem:[#allocation30_spill] sm:$0xff]  ;;  %v8293_v62 = vld [vmem:[#allocation37_spill] sm:$0xff] }
 0x173   :  { %v1036_v44 = vadd.f32 %v6922_v45, %v802_v55  ;;  %v1273_v26 = vadd.f32 %v6988_v22, %v1039_v41  ;;  %v7140_v37 = vpop.f32.mrf.mxu1  ;;  %v1048_v16 = vadd.f32 %v6970_v4, %v814_v52  ;;  %v1272_v21 = vadd.f32 %v6992_v43, %v1038_v31  ;;  %v8285_v4 = vld [vmem:[#allocation31_spill] sm:$0xff]  ;;  %v8286_v43 = vld [vmem:[#allocation42_spill] sm:$0xff] }
 0x174   :  { %v7082_v34 = vpop.f32.mrf.mxu0  ;;  %v1275_v13 = vadd.f32 %v6996_v19, %v1041_v33  ;;  %v1274_v25 = vadd.f32 %v8279_v49, %v1040_v35  ;;  %v1277_v50 = vadd.f32 %v8281_v6, %v1043_v38  ;;  %v1276_v23 = vadd.f32 %v8282_v59, %v1042_v24  ;;  %v8287_v19 = vld [vmem:[#allocation44_spill] sm:$0xff]  ;;  %v8294_v31 = vld [vmem:[#allocation50_spill] sm:$0xff]  ;;  %v8295_v35 = vld [vmem:[#allocation39_spill] sm:$0xff] }
 0x175   :  { %v1270_v45 = vadd.f32 %v6984_v32, %v1036_v44  ;;  %v1740_v22 = vadd.f32 %v7049_v29, %v1505_v7  ;;  %v1051_v32 = vadd.f32 %v8284_v58, %v8283_v27  ;;  %v1050_v2 = vadd.f32 %v8285_v4, %v816_v3  ;;  %v5826_v29 = vpop.f32.mrf.mxu1  ;;  %v8292_v44 = vld [vmem:[#allocation35_spill] sm:$0xff]  ;;  %v8296_v24 = vld [vmem:[#allocation41_spill] sm:$0xff] }
 0x176   :  { %v7094_v1 = vpop.f32.mrf.mxu0  ;;  %v1279_v15 = vadd.f32 %v8286_v43, %v1045_v48  ;;  %v1278_v28 = vadd.f32 %v8287_v19, %v1044_v51  ;;  %v1507_v0 = vadd.f32 %v8288_v18, %v1273_v26  ;;  %v1281_v9 = vadd.f32 %v8289_v8, %v1047_v60  ;;  %v8297_v48 = vld [vmem:[#allocation59_spill] sm:$0xff]  ;;  %v8300_v26 = vld [vmem:[#allocation52_spill] sm:$0xff]  ;;  %v8305_v58 = vld [vmem:[#allocation57_spill] sm:$0xff] }
 0x177   :  { %v1504_v47 = vadd.f32 %v8280_v39, %v1270_v45  ;;  %v1280_v42 = vadd.f32 %v8290_v36, %v1046_v20  ;;  %v1506_v57 = vadd.f32 %v8291_v5, %v1272_v21  ;;  %v1509_v30 = vadd.f32 %v8292_v44, %v1275_v13  ;;  %v8299_v20 = vld [vmem:[#allocation45_spill] sm:$0xff]  ;;  %v8301_v13 = vld [vmem:[#allocation54_spill] sm:$0xff]  ;;  %v1934_v59 = vpop.f32.mrf.mxu1  ;;  %v8312_v5 = vld [vmem:[#allocation55_spill] sm:$0xff] }
 0x178   :  { %v7105_v53 = vpop.f32.mrf.mxu0  ;;  %v1508_v41 = vadd.f32 %v8293_v62, %v1274_v25  ;;  %v1283_v33 = vadd.f32 %v8294_v31, %v1049_v54  ;;  %v1511_v38 = vadd.f32 %v8295_v35, %v1277_v50  ;;  %v1510_v45 = vadd.f32 %v8296_v24, %v1276_v23  ;;  %v8302_v54 = vld [vmem:[#allocation47_spill] sm:$0xff]  ;;  %v8306_v4 = vld [vmem:[#allocation61_spill] sm:$0xff]  ;;  %v8307_v43 = vld [vmem:[#allocation62_spill] sm:$0xff] }
 0x179   :  { %v1739_v63 = vadd.f32 %v7053_v11, %v1504_v47  ;;  %v1974_v51 = vadd.f32 %v8297_v48, %v1740_v22  ;;  %v1742_v60 = vadd.f32 %v7057_v14, %v1507_v0  ;;  %v8298_v11 = vld [vmem:[#allocation43_spill] sm:$0xff]  ;;  %v1512_v7 = vadd.f32 %v8299_v20, %v1278_v28  ;;  %v8303_v47 = vld [vmem:[#allocation49_spill] sm:$0xff]  ;;  %v8308_v28 = vld [vmem:[#allocation60_spill] sm:$0xff] }
 0x17a   :  { %v7120_v10 = vpop.f32.mrf.mxu0  ;;  %v1513_v3 = vadd.f32 %v8298_v11, %v1279_v15  ;;  %v1282_v21 = vadd.f32 %v8300_v26, %v1048_v16  ;;  %v1285_v49 = vadd.f32 %v8301_v13, %v1051_v32  ;;  %v1515_v39 = vadd.f32 %v8302_v54, %v1281_v9  ;;  %v7183_v14 = vld [vmem:[%s8198_s2] ss:$0 sm:$0xff]  ;;  %v8304_v22 = vld [vmem:[#allocation51_spill] sm:$0xff]  ;;  %v8309_v0 = vld [vmem:[#allocation64_spill] sm:$0xff] }
 0x17b   :  { %v1514_v6 = vadd.f32 %v8303_v47, %v1280_v42  ;;  %v1973_v50 = vadd.f32 %v7055_v17, %v1739_v63  ;;  %v1517_v27 = vadd.f32 %v8304_v22, %v1283_v33  ;;  %v1284_v16 = vadd.f32 %v8305_v58, %v1050_v2  ;;  %v8310_v8 = vld [vmem:[#allocation65_spill] sm:$0xff]  ;;  %v5829_v33 = vpop.f32.mrf.mxu1  ;;  %v8314_v48 = vld [vmem:[#allocation63_spill] sm:$0xff] }
 0x17c   :  { %v7133_v61 = vpop.f32.mrf.mxu0  ;;  %v1741_v32 = vadd.f32 %v8306_v4, %v1506_v57  ;;  %v1744_v15 = vadd.f32 %v8307_v43, %v1509_v30  ;;  %v1976_v18 = vadd.f32 %v8308_v28, %v1742_v60  ;;  %v1743_v17 = vadd.f32 %v8309_v0, %v1508_v41  ;;  %v8311_v42 = vld [vmem:[#allocation53_spill] sm:$0xff]  ;;  %v8315_v60 = vld [vmem:[#allocation66_spill] sm:$0xff] }
 0x17d   :  { %v1746_v9 = vadd.f32 %v8310_v8, %v1511_v38  ;;  %v1516_v63 = vadd.f32 %v8311_v42, %v1282_v21  ;;  %v7194_v44 = vadd.f32 %v8312_v5, %v1285_v49  ;;  %v1745_v62 = vadd.f32 %v7075_v12, %v1510_v45  ;;  %v8313_v38 = vld [vmem:[#allocation58_spill] sm:$0xff] }
 0x17e   :  { %v7146_v56 = vpop.f32.mrf.mxu0  ;;  %v1748_v30 = vadd.f32 %v7082_v34, %v1513_v3  ;;  %v1747_v31 = vadd.f32 %v7094_v1, %v1512_v7  ;;  %v7206_v24 = vadd.f32 %v8313_v38, %v1284_v16  ;;  %v1978_v12 = vadd.f32 %v8315_v60, %v1744_v15 }
 0x17f   :  { %v1750_v45 = vadd.f32 %v7105_v53, %v1515_v39  ;;  %v1977_v20 = vadd.f32 %v7089_v46, %v1743_v17  ;;  %v1980_v34 = vadd.f32 %v7112_v40, %v1746_v9  ;;  %v1979_v7 = vadd.f32 %v7140_v37, %v1745_v62 }
 0x180   :  { %v7157_v55 = vpop.f32.mrf.mxu0  ;;  %v1982_v49 = vadd.f32 %v5826_v29, %v1748_v30  ;;  %v1981_v46 = vadd.f32 %v1934_v59, %v1747_v31  ;;  %v1749_v40 = vadd.f32 %v7120_v10, %v1514_v6  ;;  %v1752_v22 = vadd.f32 %v7133_v61, %v1517_v27 }
 0x181   :  { %v1984_v39 = vadd.f32 %v5829_v33, %v1750_v45  ;;  %v1751_v28 = vadd.f32 %v7146_v56, %v1516_v63 }
 0x182   :  { %v7167_v52 = vpop.f32.mrf.mxu0 }
 0x184   :  { %v5854_v25 = vpop.f32.mrf.mxu0 }
 0x185   :  { %v2208_v23 = vadd.f32 %v5854_v25, %v1974_v51  ;;  %v1975_v51 = vadd.f32 %v8314_v48, %v1741_v32  ;;  %v1944_v25 = vpop.f32.mrf.mxu1 }
 0x186   :  { %v2128_v19 = vpop.f32.mrf.mxu0  ;;  %v1983_v43 = vadd.f32 %v1944_v25, %v1749_v40 }
 0x187   :  { %v2207_v36 = vadd.f32 %v2128_v19, %v1973_v50  ;;  %v7198_v2 = vadd.f32 %v7183_v14, %v2208_v23  ;;  %v5832_v15 = vpop.f32.mrf.mxu1 }
 0x188   :  { %v5857_v57 = vpop.f32.mrf.mxu0  ;;  %v1986_v31 = vadd.f32 %v5832_v15, %v1752_v22 }
 0x189   :  { %v7203_v41 = vadd.f32 %v7183_v14, %v2207_v36  ;;  %v2210_v35 = vadd.f32 %v5857_v57, %v1976_v18  ;;  %v2287_v26 = vmul.f32 %v7198_v2, %v7198_v2  ;;  %v2249_v47 = vsel %vm74_vm0, %v7198_v2, 0.0  ;;  %v1954_v33 = vpop.f32.mrf.mxu1 }
 0x18a   :  { %v2138_v11 = vpop.f32.mrf.mxu0 }
 0x18b   :  { %v2286_v1 = vmul.f32 %v7203_v41, %v7203_v41  ;;  %v7216_v3 = vadd.f32 %v7183_v14, %v2210_v35  ;;  %v2248_v21 = vsel %vm74_vm0, %v7203_v41, 0.0  ;;  %v2209_v53 = vadd.f32 %v2138_v11, %v1975_v51  ;;  %v5835_v40 = vpop.f32.mrf.mxu1 }
 0x18c   :  { %v5860_v13 = vpop.f32.mrf.mxu0  ;;  %v2250_v58 = vadd.f32 %v2249_v47, %v2248_v21  ;;  %v2303_v10 = vsel %vm74_vm0, %v2287_v26, 0.0  ;;  %v1754_v51 = vadd.f32 %v7157_v55, %v7194_v44 }
 0x18d   :  { %v2212_v54 = vadd.f32 %v5860_v13, %v1978_v12  ;;  %v2302_v37 = vsel %vm74_vm0, %v2286_v1, 0.0  ;;  %v7228_v50 = vadd.f32 %v7183_v14, %v2209_v53  ;;  %v2289_v29 = vmul.f32 %v7216_v3, %v7216_v3 }
 0x18e   :  { %v2148_v23 = vpop.f32.mrf.mxu0  ;;  %v2304_v61 = vadd.f32 %v2303_v10, %v2302_v37  ;;  %v2253_v18 = vsel %vm74_vm0, %v7216_v3, 0.0  ;;  %v1985_v13 = vadd.f32 %v1954_v33, %v1751_v28  ;;  %v1988_v28 = vadd.f32 %v5835_v40, %v1754_v51 }
 0x18f   :  { %v2211_v59 = vadd.f32 %v2148_v23, %v1977_v20  ;;  %v2251_v6 = vsel %vm74_vm0, %v7228_v50, 0.0  ;;  %v2288_v16 = vmul.f32 %v7228_v50, %v7228_v50  ;;  %v7239_v4 = vadd.f32 %v7183_v14, %v2212_v54 }
 0x190   :  { %v5863_v32 = vpop.f32.mrf.mxu0  ;;  %v2252_v27 = vadd.f32 %v2251_v6, %v2250_v58  ;;  %v2307_v9 = vsel %vm74_vm0, %v2289_v29, 0.0 }
 0x191   :  { %v7242_v19 = vadd.f32 %v7183_v14, %v2211_v59  ;;  %v2305_v0 = vsel %vm74_vm0, %v2288_v16, 0.0  ;;  %v2214_v17 = vadd.f32 %v5863_v32, %v1980_v34  ;;  %v2291_v62 = vmul.f32 %v7239_v4, %v7239_v4 }
 0x192   :  { %v2158_v8 = vpop.f32.mrf.mxu0  ;;  %v2306_v36 = vadd.f32 %v2305_v0, %v2304_v61  ;;  %v2254_v42 = vadd.f32 %v2253_v18, %v2252_v27  ;;  %v2257_v60 = vsel %vm74_vm0, %v7239_v4, 0.0 }
 0x193   :  { %v2255_v5 = vsel %vm74_vm0, %v7242_v19, 0.0  ;;  %v2290_v56 = vmul.f32 %v7242_v19, %v7242_v19  ;;  %v7256_v63 = vadd.f32 %v7183_v14, %v2214_v17  ;;  %v2213_v57 = vadd.f32 %v2158_v8, %v1979_v7 }
 0x194   :  { %v5866_v30 = vpop.f32.mrf.mxu0  ;;  %v2256_v35 = vadd.f32 %v2255_v5, %v2254_v42  ;;  %v2308_v38 = vadd.f32 %v2307_v9, %v2306_v36  ;;  %v2311_v26 = vsel %vm74_vm0, %v2291_v62, 0.0 }
 0x195   :  { %v2216_v48 = vadd.f32 %v5866_v30, %v1982_v49  ;;  %v2309_v12 = vsel %vm74_vm0, %v2290_v56, 0.0  ;;  %v7264_v45 = vadd.f32 %v7183_v14, %v2213_v57  ;;  %v2293_v34 = vmul.f32 %v7256_v63, %v7256_v63 }
 0x196   :  { %v2168_v11 = vpop.f32.mrf.mxu0  ;;  %v2310_v20 = vadd.f32 %v2309_v12, %v2308_v38  ;;  %v2258_v1 = vadd.f32 %v2257_v60, %v2256_v35  ;;  %v1753_v49 = vadd.f32 %v7167_v52, %v7206_v24 }
 0x197   :  { %v2215_v7 = vadd.f32 %v2168_v11, %v1981_v46  ;;  %v2259_v55 = vsel %vm74_vm0, %v7264_v45, 0.0  ;;  %v2292_v44 = vmul.f32 %v7264_v45, %v7264_v45  ;;  %v7274_v21 = vadd.f32 %v7183_v14, %v2216_v48 }
 0x198   :  { %v5869_v53 = vpop.f32.mrf.mxu0  ;;  %v2260_v25 = vadd.f32 %v2259_v55, %v2258_v1  ;;  %v2312_v54 = vadd.f32 %v2311_v26, %v2310_v20  ;;  %v2261_v46 = vsel %vm74_vm0, %v7256_v63, 0.0  ;;  %v2315_v58 = vsel %vm74_vm0, %v2293_v34, 0.0 }
 0x199   :  { %v2313_v47 = vsel %vm74_vm0, %v2292_v44, 0.0  ;;  %v7282_v37 = vadd.f32 %v7183_v14, %v2215_v7  ;;  %v2218_v23 = vadd.f32 %v5869_v53, %v1984_v39  ;;  %v2295_v52 = vmul.f32 %v7274_v21, %v7274_v21  ;;  %v1964_v39 = vpop.f32.mrf.mxu1 }
 0x19a   :  { %v2178_v22 = vpop.f32.mrf.mxu0  ;;  %v2314_v29 = vadd.f32 %v2313_v47, %v2312_v54  ;;  %v2262_v59 = vadd.f32 %v2261_v46, %v2260_v25  ;;  %v2265_v18 = vsel %vm74_vm0, %v7274_v21, 0.0  ;;  %v1987_v62 = vadd.f32 %v1964_v39, %v1753_v49 }
 0x19b   :  { %v2217_v10 = vadd.f32 %v2178_v22, %v1983_v43  ;;  %v2263_v24 = vsel %vm74_vm0, %v7282_v37, 0.0  ;;  %v2294_v6 = vmul.f32 %v7282_v37, %v7282_v37  ;;  %v7292_v16 = vadd.f32 %v7183_v14, %v2218_v23 }
 0x19c   :  { %v5872_v32 = vpop.f32.mrf.mxu0  ;;  %v2264_v15 = vadd.f32 %v2263_v24, %v2262_v59  ;;  %v2316_v61 = vadd.f32 %v2315_v58, %v2314_v29  ;;  %v2319_v56 = vsel %vm74_vm0, %v2295_v52, 0.0 }
 0x19d   :  { %v7295_v27 = vadd.f32 %v7183_v14, %v2217_v10  ;;  %v2220_v43 = vadd.f32 %v5872_v32, %v1986_v31  ;;  %v2317_v0 = vsel %vm74_vm0, %v2294_v6, 0.0  ;;  %v2297_v17 = vmul.f32 %v7292_v16, %v7292_v16 }
 0x19e   :  { %v2188_v8 = vpop.f32.mrf.mxu0  ;;  %v2318_v9 = vadd.f32 %v2317_v0, %v2316_v61  ;;  %v2266_v36 = vadd.f32 %v2265_v18, %v2264_v15  ;;  %v2269_v51 = vsel %vm74_vm0, %v7292_v16, 0.0 }
 0x19f   :  { %v2267_v42 = vsel %vm74_vm0, %v7295_v27, 0.0  ;;  %v2296_v5 = vmul.f32 %v7295_v27, %v7295_v27  ;;  %v7308_v57 = vadd.f32 %v7183_v14, %v2220_v43  ;;  %v2219_v30 = vadd.f32 %v2188_v8, %v1985_v13 }
 0x1a0   :  { %v5875_v31 = vpop.f32.mrf.mxu0  ;;  %v2268_v33 = vadd.f32 %v2267_v42, %v2266_v36  ;;  %v2320_v35 = vadd.f32 %v2319_v56, %v2318_v9  ;;  %v2323_v11 = vsel %vm74_vm0, %v2297_v17, 0.0 }
 0x1a1   :  { %v2321_v38 = vsel %vm74_vm0, %v2296_v5, 0.0  ;;  %v2222_v48 = vadd.f32 %v5875_v31, %v1988_v28  ;;  %v7314_v60 = vadd.f32 %v7183_v14, %v2219_v30  ;;  %v2299_v7 = vmul.f32 %v7308_v57, %v7308_v57 }
 0x1a2   :  { %v2198_v12 = vpop.f32.mrf.mxu0  ;;  %v2322_v20 = vadd.f32 %v2321_v38, %v2320_v35  ;;  %v2270_v34 = vadd.f32 %v2269_v51, %v2268_v33  ;;  %v2273_v49 = vsel %vm74_vm0, %v7308_v57, 0.0 }
 0x1a3   :  { %v2221_v1 = vadd.f32 %v2198_v12, %v1987_v62  ;;  %v2271_v26 = vsel %vm74_vm0, %v7314_v60, 0.0  ;;  %v2298_v55 = vmul.f32 %v7314_v60, %v7314_v60  ;;  %v7324_v44 = vadd.f32 %v7183_v14, %v2222_v48 }
 0x1a4   :  { %v2272_v53 = vadd.f32 %v2271_v26, %v2270_v34  ;;  %v2324_v13 = vadd.f32 %v2323_v11, %v2322_v20  ;;  %v2327_v47 = vsel %vm74_vm0, %v2299_v7, 0.0 }
 0x1a5   :  { %v2325_v40 = vsel %vm74_vm0, %v2298_v55, 0.0  ;;  %v2244_v25 = vadd.f32 %v7183_v14, %v2221_v1  ;;  %v2301_v23 = vmul.f32 %v7324_v44, %v7324_v44  ;;  %v2277_v10 = vsel %vm74_vm0, %v7324_v44, 0.0 }
 0x1a6   :  { %v2326_v54 = vadd.f32 %v2325_v40, %v2324_v13  ;;  %v2274_v46 = vadd.f32 %v2273_v49, %v2272_v53 }
 0x1a7   :  { %v2275_v22 = vsel %vm74_vm0, %v2244_v25, 0.0  ;;  %v2300_v58 = vmul.f32 %v2244_v25, %v2244_v25  ;;  %v2331_v14 = vsel %vm74_vm0, %v2301_v23, 0.0 }
 0x1a8   :  { %v2276_v29 = vadd.f32 %v2275_v22, %v2274_v46  ;;  %v2328_v59 = vadd.f32 %v2327_v47, %v2326_v54 }
 0x1a9   :  { %v2329_v52 = vsel %vm74_vm0, %v2300_v58, 0.0 }
 0x1aa   :  { %v2278_v24 = vadd.f32 %v2277_v10, %v2276_v29  ;;  %v2330_v6 = vadd.f32 %v2329_v52, %v2328_v59 }
 0x1ac   :  { %v2279_v32 = vrot.slane %v2278_v24, 4  ;;  %v2332_v39 = vadd.f32 %v2331_v14, %v2330_v6 }
 0x1ae   :  { %v2280_v15 = vadd.f32 %v2279_v32, %v2278_v24  ;;  %v2333_v61 = vrot.slane %v2332_v39, 4 }
 0x1b0   :  { %v2281_v43 = vrot.slane %v2280_v15, 2  ;;  %v2334_v28 = vadd.f32 %v2333_v61, %v2332_v39 }
 0x1b2   :  { %v2282_v18 = vadd.f32 %v2281_v43, %v2280_v15  ;;  %v2335_v0 = vrot.slane %v2334_v28, 2 }
 0x1b4   :  { %v2283_v17 = vrot.slane %v2282_v18, 1  ;;  %v2336_v8 = vadd.f32 %v2335_v0, %v2334_v28 }
 0x1b6   :  { %v2284_v9 = vadd.f32 %v2283_v17, %v2282_v18  ;;  %v2337_v36 = vrot.slane %v2336_v8, 1 }
 0x1b8   :  { %v7338_v42 = vmul.f32 0.0078125, %v2284_v9  ;;  %v2338_v5 = vadd.f32 %v2337_v36, %v2336_v8 }
 0x1ba   :  { %v2339_v62 = vmul.f32 0.0078125, %v2338_v5  ;;  %v2340_v56 = vmul.f32 %v7338_v42, %v7338_v42  ;;  %v2343_v30 = vsub.f32 %v7203_v41, %v7338_v42  ;;  %v2344_v31 = vsub.f32 %v7198_v2, %v7338_v42 }
 0x1bb   :  { %v2345_v33 = vsub.f32 %v7228_v50, %v7338_v42  ;;  %v2346_v35 = vsub.f32 %v7216_v3, %v7338_v42  ;;  %v2348_v48 = vsub.f32 %v7239_v4, %v7338_v42  ;;  %v2352_v51 = vsub.f32 %v7274_v21, %v7338_v42 }
 0x1bc   :  { %v2341_v38 = vsub.f32 %v2339_v62, %v2340_v56  ;;  %v2354_v12 = vsub.f32 %v7292_v16, %v7338_v42  ;;  %v2356_v2 = vsub.f32 %v7308_v57, %v7338_v42  ;;  %v2350_v50 = vsub.f32 %v7256_v63, %v7338_v42  ;;  %v4935_v16 = vld [vmem:[%s8199_s3] ss:$0 sm:$0xff] }
 0x1bd   :  { %v2358_v3 = vsub.f32 %v7324_v44, %v7338_v42  ;;  %v2357_v4 = vsub.f32 %v2244_v25, %v7338_v42  ;;  %v2347_v21 = vsub.f32 %v7242_v19, %v7338_v42  ;;  %v2349_v57 = vsub.f32 %v7264_v45, %v7338_v42  ;;  %v4936_v44 = vld [vmem:[%s8200_s4] ss:$0 sm:$0xff] }
 0x1be   :  { %v2342_v41 = vmax.f32 %v2341_v38, 0.0  ;;  %v2351_v63 = vsub.f32 %v7282_v37, %v7338_v42  ;;  %v2353_v34 = vsub.f32 %v7295_v27, %v7338_v42  ;;  %v2355_v1 = vsub.f32 %v7314_v60, %v7338_v42 }
 0x1c0   :  { %v2359_v11 = vadd.f32 1e-05, %v2342_v41 }
 0x1c2   :  { %6243 = vrsqrt.f32 %v2359_v11 }
 0x1cf   :  { %v6244_v20 = vpop.eup %6243 }
 0x1d0   :  { %v2375_v7 = vmul.f32 %v6244_v20, %v2357_v4  ;;  %v2361_v26 = vmul.f32 %v6244_v20, %v2343_v30  ;;  %v2362_v19 = vmul.f32 %v6244_v20, %v2344_v31  ;;  %v2363_v55 = vmul.f32 %v6244_v20, %v2345_v33 }
 0x1d1   :  { %v2364_v53 = vmul.f32 %v6244_v20, %v2346_v35  ;;  %v2365_v13 = vmul.f32 %v6244_v20, %v2347_v21  ;;  %v2366_v45 = vmul.f32 %v6244_v20, %v2348_v48  ;;  %v2367_v49 = vmul.f32 %v6244_v20, %v2349_v57 }
 0x1d2   :  { %v2397_v40 = vmul.f32 %v4935_v16, %v2375_v7  ;;  %v2383_v37 = vmul.f32 %v4935_v16, %v2361_v26  ;;  %v2384_v25 = vmul.f32 %v4935_v16, %v2362_v19  ;;  %v2385_v54 = vmul.f32 %v4935_v16, %v2363_v55 }
 0x1d3   :  { %v2386_v27 = vmul.f32 %v4935_v16, %v2364_v53  ;;  %v2387_v46 = vmul.f32 %v4935_v16, %v2365_v13  ;;  %v2388_v47 = vmul.f32 %v4935_v16, %v2366_v45  ;;  %v2389_v60 = vmul.f32 %v4935_v16, %v2367_v49  ;;  %v3145_v53 = vld [vmem:[#allocation8 + $0xf0] sm:$0xff]  ;;  %v8316_v45 = vld [vmem:[#allocation56_spill] sm:$0xff] }
 0x1d4   :  { %v2419_v23 = vadd.f32 %v4936_v44, %v2397_v40  ;;  %v2405_v22 = vadd.f32 %v4936_v44, %v2383_v37  ;;  %v2406_v58 = vadd.f32 %v4936_v44, %v2384_v25  ;;  %v2407_v29 = vadd.f32 %v4936_v44, %v2385_v54  ;;  %v8317_v49 = vld [vmem:[#allocation67_spill] sm:$0xff]  ;;  %v2910_v25 = vld [vmem:[#allocation8 + $0xa8] sm:$0xff] }
 0x1d5   :  { %v2408_v59 = vadd.f32 %v4936_v44, %v2386_v27  ;;  %v2409_v10 = vadd.f32 %v4936_v44, %v2387_v46  ;;  %v2410_v52 = vadd.f32 %v4936_v44, %v2388_v47  ;;  %v2411_v24 = vadd.f32 %v4936_v44, %v2389_v60  ;;  %v3144_v46 = vld [vmem:[#allocation8 + $0xe8] sm:$0xff] }
 0x1d6   :  { %v2435_v6 = vmax.f32 %v2419_v23, 0.0  ;;  %v2421_v14 = vmax.f32 %v2405_v22, 0.0  ;;  %v2422_v32 = vmax.f32 %v2406_v58, 0.0  ;;  %v2423_v39 = vmax.f32 %v2407_v29, 0.0  ;;  %v2909_v23 = vld [vmem:[#allocation8 + $0xa0] sm:$0xff] }
 0x1d7   :  { %v2424_v15 = vmax.f32 %v2408_v59, 0.0  ;;  %v2425_v61 = vmax.f32 %v2409_v10, 0.0  ;;  %v2426_v43 = vmax.f32 %v2410_v52, 0.0  ;;  %v2427_v28 = vmax.f32 %v2411_v24, 0.0  ;;  %v3143_v29 = vld [vmem:[#allocation8 + $0xe0] sm:$0xff] }
 0x1d8   :  { %2451 = vst.msk [vmem:[#allocation2 + $0x111] sm:$0xff] %vm74_vm0, %v2435_v6  ;;  %2437 = vst.msk [vmem:[#allocation2 + $0x11] sm:$0xff] %vm74_vm0, %v2421_v14  ;;  %v2369_v18 = vmul.f32 %v6244_v20, %v2351_v63  ;;  %v2370_v0 = vmul.f32 %v6244_v20, %v2352_v51  ;;  %v2371_v17 = vmul.f32 %v6244_v20, %v2353_v34  ;;  %v2485_v59 = vld [vmem:[#allocation2 + $0xa1] sm:$0xff]  ;;  %v2908_v6 = vld [vmem:[#allocation8 + $0x98] sm:$0xff] }
 0x1d9   :  { %2438 = vst.msk [vmem:[#allocation2 + $0x21] sm:$0xff] %vm74_vm0, %v2422_v32  ;;  %2439 = vst.msk [vmem:[#allocation2 + $0x31] sm:$0xff] %vm74_vm0, %v2423_v39  ;;  %v2372_v8 = vmul.f32 %v6244_v20, %v2354_v12  ;;  %v2373_v9 = vmul.f32 %v6244_v20, %v2355_v1  ;;  %v2374_v36 = vmul.f32 %v6244_v20, %v2356_v2  ;;  %v2461_v10 = vld [vmem:[#allocation2 + $0xa0] sm:$0xff]  ;;  %v2907_v14 = vld [vmem:[#allocation8 + $0x90] sm:$0xff] }
 0x1da   :  { %2440 = vst.msk [vmem:[#allocation2 + $0x41] sm:$0xff] %vm74_vm0, %v2424_v15  ;;  %2441 = vst.msk [vmem:[#allocation2 + $0x51] sm:$0xff] %vm74_vm0, %v2425_v61  ;;  %v2368_v42 = vmul.f32 %v6244_v20, %v2350_v50  ;;  %v2376_v5 = vmul.f32 %v6244_v20, %v2358_v3  ;;  %v2391_v62 = vmul.f32 %v4935_v16, %v2369_v18  ;;  %v3142_v15 = vld [vmem:[#allocation8 + $0xd8] sm:$0xff] }
 0x1db   :  { %2442 = vst.msk [vmem:[#allocation2 + $0x61] sm:$0xff] %vm74_vm0, %v2426_v43  ;;  %2443 = vst.msk [vmem:[#allocation2 + $0x71] sm:$0xff] %vm74_vm0, %v2427_v28  ;;  %v2392_v56 = vmul.f32 %v4935_v16, %v2370_v0  ;;  %v2393_v30 = vmul.f32 %v4935_v16, %v2371_v17  ;;  %v2394_v31 = vmul.f32 %v4935_v16, %v2372_v8  ;;  %v2906_v28 = vld [vmem:[#allocation8 + $0x88] sm:$0xff]  ;;  %v3141_v17 = vld [vmem:[#allocation8 + $0xd0] sm:$0xff] }
 0x1dc   :  { %v2395_v33 = vmul.f32 %v4935_v16, %v2373_v9  ;;  %v2396_v35 = vmul.f32 %v4935_v16, %v2374_v36  ;;  %v2390_v38 = vmul.f32 %v4935_v16, %v2368_v42  ;;  %v2398_v48 = vmul.f32 %v4935_v16, %v2376_v5  ;;  %v2905_v36 = vld [vmem:[#allocation8 + $0x80] sm:$0xff] }
 0x1dd   :  { %v2413_v51 = vadd.f32 %v4936_v44, %v2391_v62  ;;  %v2414_v12 = vadd.f32 %v4936_v44, %v2392_v56  ;;  %v2415_v41 = vadd.f32 %v4936_v44, %v2393_v30  ;;  %v2416_v11 = vadd.f32 %v4936_v44, %v2394_v31  ;;  %v3140_v62 = vld [vmem:[#allocation8 + $0xc8] sm:$0xff]  ;;  %v3139_v31 = vld [vmem:[#allocation8 + $0xc0] sm:$0xff] }
 0x1de   :  { %v2417_v4 = vadd.f32 %v4936_v44, %v2395_v33  ;;  %v2418_v21 = vadd.f32 %v4936_v44, %v2396_v35  ;;  %v2412_v57 = vadd.f32 %v4936_v44, %v2390_v38  ;;  %v2420_v63 = vadd.f32 %v4936_v44, %v2398_v48  ;;  %v2911_v44 = vld [vmem:[#allocation8 + $0xb0] sm:$0xff]  ;;  %v2888_v38 = vld [vmem:[#allocation2 + $0x2] sm:$0xff]  ;;  %v3380_v48 = vld [vmem:[#allocation8 + $0x138] sm:$0xff] }
 0x1df   :  { %v2429_v34 = vmax.f32 %v2413_v51, 0.0  ;;  %v2430_v2 = vmax.f32 %v2414_v12, 0.0  ;;  %v2431_v50 = vmax.f32 %v2415_v41, 0.0  ;;  %v2432_v3 = vmax.f32 %v2416_v11, 0.0  ;;  %v7387_v20 = vld [vmem:[#allocation2 + $0x11] sm:$0xff] }
 0x1e0   :  { %v7389_v1 = vld [vmem:[#allocation2 + $0x10] sm:$0xff]  ;;  %v7391_v7 = vld [vmem:[#allocation2 + $0x21] sm:$0xff]  ;;  %v2433_v26 = vmax.f32 %v2417_v4, 0.0  ;;  %v2434_v16 = vmax.f32 %v2418_v21, 0.0  ;;  %v2428_v19 = vmax.f32 %v2412_v57, 0.0  ;;  %5893 = vmatmul.mubr.msk.f32.vlgmr.msra.gmra.mxu1 %vm74_vm0, %v7387_v20  ;;  %v2436_v13 = vmax.f32 %v2420_v63, 0.0 }
 0x1e1   :  { %5933 = vmatmul.mubr.msk.f32.vlgmr.msra.gmra.mxu0 %vm74_vm0, %v7389_v1  ;;  %v7397_v55 = vld [vmem:[#allocation2 + $0x20] sm:$0xff]  ;;  %2445 = vst.msk [vmem:[#allocation2 + $0xb1] sm:$0xff] %vm74_vm0, %v2429_v34  ;;  %2446 = vst.msk [vmem:[#allocation2 + $0xc1] sm:$0xff] %vm74_vm0, %v2430_v2  ;;  %5895 = vmatprep.mubr.msk.f32.mxu1 %vm74_vm0, %v7391_v7  ;;  %v7413_v40 = vld [vmem:[#allocation2 + $0x31] sm:$0xff] }
 0x1e2   :  { %2447 = vst.msk [vmem:[#allocation2 + $0xd1] sm:$0xff] %vm74_vm0, %v2431_v50  ;;  %2448 = vst.msk [vmem:[#allocation2 + $0xe1] sm:$0xff] %vm74_vm0, %v2432_v3  ;;  %5935 = vmatprep.mubr.msk.f32.mxu0 %vm74_vm0, %v7397_v55  ;;  %5957 = vmatpush3.msra.mxu1 %v8316_v45  ;;  %v7415_v37 = vld [vmem:[#allocation2 + $0x30] sm:$0xff]  ;;  %v7421_v54 = vld [vmem:[#allocation2 + $0x41] sm:$0xff] }
 0x1e3   :  { %2449 = vst.msk [vmem:[#allocation2 + $0xf1] sm:$0xff] %vm74_vm0, %v2433_v26  ;;  %2450 = vst.msk [vmem:[#allocation2 + $0x101] sm:$0xff] %vm74_vm0, %v2434_v16  ;;  %5997 = vmatpush3.msra.mxu0 %v8317_v49  ;;  %5958 = vmatprep.subr.mxu1 %v2911_v44  ;;  %v7423_v27 = vld [vmem:[#allocation2 + $0x40] sm:$0xff]  ;;  %v7429_v47 = vld [vmem:[#allocation2 + $0x51] sm:$0xff] }
 0x1e4   :  { %2444 = vst.msk [vmem:[#allocation2 + $0x81] sm:$0xff] %vm74_vm0, %v2428_v19  ;;  %2452 = vst.msk [vmem:[#allocation2 + $0x121] sm:$0xff] %vm74_vm0, %v2436_v13  ;;  %5998 = vmatprep.subr.mxu0 %v3145_v53  ;;  %5896 = vmatmul.mubr.msk.f32.gmra.mxu1 %vm74_vm0, %v7413_v40  ;;  %v7431_v60 = vld [vmem:[#allocation2 + $0x50] sm:$0xff]  ;;  %v7437_v22 = vld [vmem:[#allocation2 + $0x61] sm:$0xff] }
 0x1e5   :  { %5936 = vmatmul.mubr.msk.f32.gmra.mxu0 %vm74_vm0, %v7415_v37  ;;  %5898 = vmatprep.mubr.msk.f32.mxu1 %vm74_vm0, %v7421_v54  ;;  %v7439_v58 = vld [vmem:[#allocation2 + $0x60] sm:$0xff]  ;;  %v7445_v52 = vld [vmem:[#allocation2 + $0x71] sm:$0xff]  ;;  %v3378_v63 = vld [vmem:[#allocation8 + $0x128] sm:$0xff] }
 0x1e6   :  { %5938 = vmatprep.mubr.msk.f32.mxu0 %vm74_vm0, %v7423_v27  ;;  %5959 = vmatpush3.msra.mxu1 %v2911_v44  ;;  %v7447_v24 = vld [vmem:[#allocation2 + $0x70] sm:$0xff]  ;;  %v3614_v51 = vld [vmem:[#allocation8 + $0x178] sm:$0xff]  ;;  %v7520_v41 = vld [vmem:[#allocation2 + $0x22] sm:$0xff] }
 0x1e7   :  { %5999 = vmatpush3.msra.mxu0 %v3145_v53  ;;  %5960 = vmatprep.subr.mxu1 %v2910_v25  ;;  %v7503_v33 = vld [vmem:[#allocation2 + $0x111] sm:$0xff]  ;;  %v7532_v57 = vld [vmem:[#allocation2 + $0x42] sm:$0xff] }
 0x1e8   :  { %6000 = vmatprep.subr.mxu0 %v3144_v46  ;;  %5899 = vmatmul.mubr.msk.f32.gmra.mxu1 %vm74_vm0, %v7429_v47  ;;  %v7455_v32 = vld [vmem:[#allocation2 + $0xb1] sm:$0xff]  ;;  %v7463_v61 = vld [vmem:[#allocation2 + $0xc1] sm:$0xff] }
 0x1e9   :  { %5939 = vmatmul.mubr.msk.f32.gmra.mxu0 %vm74_vm0, %v7431_v60  ;;  %5901 = vmatprep.mubr.msk.f32.mxu1 %vm74_vm0, %v7437_v22  ;;  %v7457_v39 = vld [vmem:[#allocation2 + $0xb0] sm:$0xff]  ;;  %v7465_v43 = vld [vmem:[#allocation2 + $0xc0] sm:$0xff]  ;;  %v3612_v34 = vld [vmem:[#allocation8 + $0x168] sm:$0xff] }
 0x1ea   :  { %5941 = vmatprep.mubr.msk.f32.mxu0 %vm74_vm0, %v7439_v58  ;;  %5961 = vmatpush3.msra.mxu1 %v2910_v25  ;;  %v7471_v18 = vld [vmem:[#allocation2 + $0xd1] sm:$0xff]  ;;  %v7479_v8 = vld [vmem:[#allocation2 + $0xe1] sm:$0xff] }
 0x1eb   :  { %6001 = vmatpush3.msra.mxu0 %v3144_v46  ;;  %5962 = vmatprep.subr.mxu1 %v2909_v23  ;;  %v7473_v0 = vld [vmem:[#allocation2 + $0xd0] sm:$0xff]  ;;  %v7481_v9 = vld [vmem:[#allocation2 + $0xe0] sm:$0xff]  ;;  %v3376_v44 = vld [vmem:[#allocation8 + $0x118] sm:$0xff] }
 0x1ec   :  { %6002 = vmatprep.subr.mxu0 %v3143_v29  ;;  %5902 = vmatmul.mubr.msk.f32.gmra.mxu1 %vm74_vm0, %v7445_v52  ;;  %v7487_v42 = vld [vmem:[#allocation2 + $0xf1] sm:$0xff]  ;;  %v7495_v56 = vld [vmem:[#allocation2 + $0x101] sm:$0xff] }
 0x1ed   :  { %5942 = vmatmul.mubr.msk.f32.gmra.mxu0 %vm74_vm0, %v7447_v24  ;;  %5963 = vmatpush3.msra.mxu1 %v2909_v23  ;;  %v7489_v5 = vld [vmem:[#allocation2 + $0xf0] sm:$0xff]  ;;  %v7497_v30 = vld [vmem:[#allocation2 + $0x100] sm:$0xff]  ;;  %v3610_v45 = vld [vmem:[#allocation8 + $0x158] sm:$0xff] }
 0x1ee   :  { %5904 = vmatprep.mubr.msk.f32.mxu1 %vm74_vm0, %v2485_v59  ;;  %5944 = vmatprep.mubr.msk.f32.mxu0 %vm74_vm0, %v2461_v10  ;;  %v7505_v35 = vld [vmem:[#allocation2 + $0x110] sm:$0xff]  ;;  %v7544_v50 = vld [vmem:[#allocation2 + $0x62] sm:$0xff] }
 0x1ef   :  { %5964 = vmatprep.subr.mxu1 %v2908_v6  ;;  %6003 = vmatpush3.msra.mxu0 %v3143_v29  ;;  %v7514_v12 = vld [vmem:[#allocation2 + $0x12] sm:$0xff]  ;;  %v3377_v3 = vld [vmem:[#allocation8 + $0x120] sm:$0xff]  ;;  %v3374_v46 = vld [vmem:[#allocation8 + $0x108] sm:$0xff] }
 0x1f0   :  { %5965 = vmatpush3.msra.mxu1 %v2908_v6  ;;  %6004 = vmatprep.subr.mxu0 %v3142_v15  ;;  %v3379_v11 = vld [vmem:[#allocation8 + $0x130] sm:$0xff]  ;;  %v2896_v26 = vld [vmem:[#allocation2 + $0xa2] sm:$0xff] }
 0x1f1   :  { %5905 = vmatmul.mubr.msk.f32.gmra.mxu1 %vm74_vm0, %v7455_v32  ;;  %5945 = vmatmul.mubr.msk.f32.gmra.mxu0 %vm74_vm0, %v7457_v39  ;;  %v3613_v4 = vld [vmem:[#allocation8 + $0x170] sm:$0xff]  ;;  %v7552_v19 = vld [vmem:[#allocation2 + $0x80] sm:$0xff]  ;;  %v3608_v6 = vld [vmem:[#allocation8 + $0x148] sm:$0xff] }
 0x1f2   :  { %5907 = vmatprep.mubr.msk.f32.mxu1 %vm74_vm0, %v7463_v61  ;;  %5947 = vmatprep.mubr.msk.f32.mxu0 %vm74_vm0, %v7465_v43  ;;  %v7526_v21 = vld [vmem:[#allocation2 + $0x32] sm:$0xff]  ;;  %v7567_v49 = vld [vmem:[#allocation2 + $0xc2] sm:$0xff] }
 0x1f3   :  { %5966 = vmatprep.subr.mxu1 %v2907_v14  ;;  %6005 = vmatpush3.msra.mxu0 %v3142_v15  ;;  %v7538_v2 = vld [vmem:[#allocation2 + $0x52] sm:$0xff]  ;;  %v7579_v29 = vld [vmem:[#allocation2 + $0xe2] sm:$0xff] }
 0x1f4   :  { %5967 = vmatpush3.msra.mxu1 %v2907_v14  ;;  %6006 = vmatprep.subr.mxu0 %v3141_v17  ;;  %v7550_v16 = vld [vmem:[#allocation2 + $0x72] sm:$0xff]  ;;  %v3373_v10 = vld [vmem:[#allocation8 + $0x100] sm:$0xff] }
 0x1f5   :  { %5908 = vmatmul.mubr.msk.f32.gmra.mxu1 %vm74_vm0, %v7471_v18  ;;  %5948 = vmatmul.mubr.msk.f32.gmra.mxu0 %vm74_vm0, %v7473_v0  ;;  %v7561_v53 = vld [vmem:[#allocation2 + $0xb2] sm:$0xff]  ;;  %v7591_v14 = vld [vmem:[#allocation2 + $0x102] sm:$0xff] }
 0x1f6   :  { %5910 = vmatprep.mubr.msk.f32.mxu1 %vm74_vm0, %v7479_v8  ;;  %5950 = vmatprep.mubr.msk.f32.mxu0 %vm74_vm0, %v7481_v9  ;;  %v3375_v13 = vld [vmem:[#allocation8 + $0x110] sm:$0xff] }
 0x1f7   :  { %5968 = vmatprep.subr.mxu1 %v2906_v28  ;;  %6007 = vmatpush3.msra.mxu0 %v3141_v17  ;;  %v7573_v25 = vld [vmem:[#allocation2 + $0xd2] sm:$0xff] }
 0x1f8   :  { %5969 = vmatpush3.msra.mxu1 %v2906_v28  ;;  %6008 = vmatprep.subr.mxu0 %v3140_v62  ;;  %v3609_v23 = vld [vmem:[#allocation8 + $0x150] sm:$0xff]  ;;  %v7599_v28 = vld [vmem:[#allocation2 + $0x120] sm:$0xff]  ;;  %v3848_v17 = vld [vmem:[#allocation8 + $0x1b8] sm:$0xff] }
 0x1f9   :  { %5911 = vmatmul.mubr.msk.f32.gmra.mxu1 %vm74_vm0, %v7487_v42  ;;  %5951 = vmatmul.mubr.msk.f32.gmra.mxu0 %vm74_vm0, %v7489_v5  ;;  %v7585_v59 = vld [vmem:[#allocation2 + $0xf2] sm:$0xff] }
 0x1fa   :  { %5913 = vmatprep.mubr.msk.f32.mxu1 %vm74_vm0, %v7495_v56  ;;  %5953 = vmatprep.mubr.msk.f32.mxu0 %vm74_vm0, %v7497_v30  ;;  %v7597_v15 = vld [vmem:[#allocation2 + $0x112] sm:$0xff] }
 0x1fb   :  { %5970 = vmatprep.subr.mxu1 %v2905_v36  ;;  %6009 = vmatpush3.msra.mxu0 %v3140_v62  ;;  %v3847_v62 = vld [vmem:[#allocation8 + $0x1b0] sm:$0xff] }
 0x1fc   :  { %5971 = vmatpush3.msra.mxu1 %v2905_v36  ;;  %6010 = vmatprep.subr.mxu0 %v3139_v31  ;;  %v4082_v36 = vld [vmem:[#allocation8 + $0x1f8] sm:$0xff] }
 0x1fd   :  { %5914 = vmatmul.mubr.msk.f32.gmra.mxu1 %vm74_vm0, %v7503_v33  ;;  %5954 = vmatmul.mubr.msk.f32.gmra.mxu0 %vm74_vm0, %v7505_v35 }
 0x1fe   :  { %6012 = vmatprep.mubr.msk.f32.mxu0 %vm74_vm0, %v7389_v1  ;;  %5972 = vmatprep.mubr.msk.f32.mxu1 %vm74_vm0, %v2888_v38  ;;  %v3611_v1 = vld [vmem:[#allocation8 + $0x160] sm:$0xff]  ;;  %v4080_v38 = vld [vmem:[#allocation8 + $0x1e8] sm:$0xff] }
 0x1ff   :  { %6011 = vmatpush3.msra.mxu0 %v3139_v31  ;;  %6036 = vmatprep.subr.mxu1 %v3380_v48  ;;  %v3846_v31 = vld [vmem:[#allocation8 + $0x1a8] sm:$0xff] }
 0x200   :  { %6076 = vmatprep.subr.mxu0 %v3614_v51 }
 0x201   :  { %5973 = vmatmul.mubr.msk.f32.vlgmr.msra.gmra.mxu1 %vm74_vm0, %v7514_v12  ;;  %6013 = vmatmul.mubr.msk.f32.vlgmr.msra.gmra.mxu0 %vm74_vm0, %v7397_v55 }
 0x202   :  { %5975 = vmatprep.mubr.msk.f32.mxu1 %vm74_vm0, %v7520_v41  ;;  %6015 = vmatprep.mubr.msk.f32.mxu0 %vm74_vm0, %v7415_v37 }
 0x203   :  { %6037 = vmatpush3.msra.mxu1 %v3380_v48  ;;  %6077 = vmatpush3.msra.mxu0 %v3614_v51  ;;  %v3845_v48 = vld [vmem:[#allocation8 + $0x1a0] sm:$0xff] }
 0x204   :  { %6038 = vmatprep.subr.mxu1 %v3379_v11  ;;  %6078 = vmatprep.subr.mxu0 %v3613_v4  ;;  %v7633_v51 = vld [vmem:[#allocation2 + $0x81] sm:$0xff] }
 0x205   :  { %5976 = vmatmul.mubr.msk.f32.gmra.mxu1 %vm74_vm0, %v7526_v21  ;;  %6016 = vmatmul.mubr.msk.f32.gmra.mxu0 %vm74_vm0, %v7423_v27 }
 0x206   :  { %5978 = vmatprep.mubr.msk.f32.mxu1 %vm74_vm0, %v7532_v57  ;;  %6018 = vmatprep.mubr.msk.f32.mxu0 %vm74_vm0, %v7431_v60 }
 0x207   :  { %6039 = vmatpush3.msra.mxu1 %v3379_v11  ;;  %6079 = vmatpush3.msra.mxu0 %v3613_v4  ;;  %v4079_v11 = vld [vmem:[#allocation8 + $0x1e0] sm:$0xff]  ;;  %v3844_v4 = vld [vmem:[#allocation8 + $0x198] sm:$0xff] }
 0x208   :  { %6040 = vmatprep.subr.mxu1 %v3378_v63  ;;  %6080 = vmatprep.subr.mxu0 %v3612_v34 }
 0x209   :  { %5979 = vmatmul.mubr.msk.f32.gmra.mxu1 %vm74_vm0, %v7538_v2  ;;  %6019 = vmatmul.mubr.msk.f32.gmra.mxu0 %vm74_vm0, %v7439_v58 }
 0x20a   :  { %5981 = vmatprep.mubr.msk.f32.mxu1 %vm74_vm0, %v7544_v50  ;;  %6021 = vmatprep.mubr.msk.f32.mxu0 %vm74_vm0, %v7447_v24 }
 0x20b   :  { %6041 = vmatpush3.msra.mxu1 %v3378_v63  ;;  %6081 = vmatpush3.msra.mxu0 %v3612_v34  ;;  %v4078_v63 = vld [vmem:[#allocation8 + $0x1d8] sm:$0xff]  ;;  %v3843_v34 = vld [vmem:[#allocation8 + $0x190] sm:$0xff] }
 0x20c   :  { %6042 = vmatprep.subr.mxu1 %v3377_v3  ;;  %6082 = vmatprep.subr.mxu0 %v3611_v1 }
 0x20d   :  { %5982 = vmatmul.mubr.msk.f32.gmra.mxu1 %vm74_vm0, %v7550_v16  ;;  %6022 = vmatmul.mubr.msk.f32.gmra.mxu0 %vm74_vm0, %v7552_v19 }
 0x20e   :  { %6024 = vmatprep.mubr.msk.f32.mxu0 %vm74_vm0, %v7457_v39  ;;  %6043 = vmatpush3.msra.mxu1 %v3377_v3  ;;  %v3607_v39 = vld [vmem:[#allocation8 + $0x140] sm:$0xff]  ;;  %v3842_v3 = vld [vmem:[#allocation8 + $0x188] sm:$0xff] }
 0x20f   :  { %5984 = vmatprep.mubr.msk.f32.mxu1 %vm74_vm0, %v2896_v26  ;;  %6044 = vmatprep.subr.mxu1 %v3376_v44  ;;  %v3841_v26 = vld [vmem:[#allocation8 + $0x180] sm:$0xff] }
 0x210   :  { %6045 = vmatpush3.msra.mxu1 %v3376_v44  ;;  %6083 = vmatpush3.msra.mxu0 %v3611_v1  ;;  %v4076_v1 = vld [vmem:[#allocation8 + $0x1c8] sm:$0xff] }
 0x211   :  { %5985 = vmatmul.mubr.msk.f32.gmra.mxu1 %vm74_vm0, %v7561_v53  ;;  %6025 = vmatmul.mubr.msk.f32.gmra.mxu0 %vm74_vm0, %v7465_v43  ;;  %v3371_v44 = vld [vmem:[#allocation2 + $0x121] sm:$0xff] }
 0x212   :  { %5987 = vmatprep.mubr.msk.f32.mxu1 %vm74_vm0, %v7567_v49  ;;  %6027 = vmatprep.mubr.msk.f32.mxu0 %vm74_vm0, %v7473_v0 }
 0x213   :  { %6046 = vmatprep.subr.mxu1 %v3375_v13  ;;  %6084 = vmatprep.subr.mxu0 %v3610_v45 }
 0x214   :  { %6047 = vmatpush3.msra.mxu1 %v3375_v13  ;;  %6085 = vmatpush3.msra.mxu0 %v3610_v45  ;;  %v4075_v13 = vld [vmem:[#allocation8 + $0x1c0] sm:$0xff]  ;;  %v4316_v45 = vld [vmem:[#allocation8 + $0x238] sm:$0xff] }
 0x215   :  { %5988 = vmatmul.mubr.msk.f32.gmra.mxu1 %vm74_vm0, %v7573_v25  ;;  %6028 = vmatmul.mubr.msk.f32.gmra.mxu0 %vm74_vm0, %v7481_v9 }
 0x216   :  { %5990 = vmatprep.mubr.msk.f32.mxu1 %vm74_vm0, %v7579_v29  ;;  %6030 = vmatprep.mubr.msk.f32.mxu0 %vm74_vm0, %v7489_v5 }
 0x217   :  { %6048 = vmatprep.subr.mxu1 %v3374_v46  ;;  %6086 = vmatprep.subr.mxu0 %v3609_v23 }
 0x218   :  { %6049 = vmatpush3.msra.mxu1 %v3374_v46  ;;  %6087 = vmatpush3.msra.mxu0 %v3609_v23  ;;  %v4315_v46 = vld [vmem:[#allocation8 + $0x230] sm:$0xff] }
 0x219   :  { %5991 = vmatmul.mubr.msk.f32.gmra.mxu1 %vm74_vm0, %v7585_v59  ;;  %6031 = vmatmul.mubr.msk.f32.gmra.mxu0 %vm74_vm0, %v7497_v30 }
 0x21a   :  { %5993 = vmatprep.mubr.msk.f32.mxu1 %vm74_vm0, %v7591_v14  ;;  %6033 = vmatprep.mubr.msk.f32.mxu0 %vm74_vm0, %v7505_v35 }
 0x21b   :  { %6050 = vmatprep.subr.mxu1 %v3373_v10  ;;  %6088 = vmatprep.subr.mxu0 %v3608_v6 }
 0x21c   :  { %6051 = vmatpush3.msra.mxu1 %v3373_v10  ;;  %6089 = vmatpush3.msra.mxu0 %v3608_v6 }
 0x21d   :  { %5994 = vmatmul.mubr.msk.f32.gmra.mxu1 %vm74_vm0, %v7597_v15  ;;  %6034 = vmatmul.mubr.msk.f32.gmra.mxu0 %vm74_vm0, %v7599_v28 }
 0x21e   :  { %6052 = vmatprep.mubr.msk.f32.mxu1 %vm74_vm0, %v7387_v20  ;;  %6092 = vmatprep.mubr.msk.f32.mxu0 %vm74_vm0, %v7514_v12  ;;  %v4081_v20 = vld [vmem:[#allocation8 + $0x1f0] sm:$0xff]  ;;  %v7635_v12 = vld [vmem:[#allocation2 + $0x82] sm:$0xff] }
 0x21f   :  { %6090 = vmatprep.subr.mxu0 %v3607_v39  ;;  %6116 = vmatprep.subr.mxu1 %v3848_v17 }
 0x220   :  { %6091 = vmatpush3.msra.mxu0 %v3607_v39 }
 0x221   :  { %6053 = vmatmul.mubr.msk.f32.vlgmr.msra.gmra.mxu1 %vm74_vm0, %v7391_v7  ;;  %6093 = vmatmul.mubr.msk.f32.vlgmr.msra.gmra.mxu0 %vm74_vm0, %v7520_v41 }
 0x222   :  { %6055 = vmatprep.mubr.msk.f32.mxu1 %vm74_vm0, %v7413_v40  ;;  %6095 = vmatprep.mubr.msk.f32.mxu0 %vm74_vm0, %v7526_v21 }
 0x223   :  { %6117 = vmatpush3.msra.mxu1 %v3848_v17  ;;  %6156 = vmatprep.subr.mxu0 %v4082_v36 }
 0x224   :  { %6118 = vmatprep.subr.mxu1 %v3847_v62  ;;  %6157 = vmatpush3.msra.mxu0 %v4082_v36 }
 0x225   :  { %6056 = vmatmul.mubr.msk.f32.gmra.mxu1 %vm74_vm0, %v7421_v54  ;;  %6096 = vmatmul.mubr.msk.f32.gmra.mxu0 %vm74_vm0, %v7532_v57 }
 0x226   :  { %6058 = vmatprep.mubr.msk.f32.mxu1 %vm74_vm0, %v7429_v47  ;;  %6098 = vmatprep.mubr.msk.f32.mxu0 %vm74_vm0, %v7538_v2 }
 0x227   :  { %6119 = vmatpush3.msra.mxu1 %v3847_v62  ;;  %6158 = vmatprep.subr.mxu0 %v4081_v20 }
 0x228   :  { %6120 = vmatprep.subr.mxu1 %v3846_v31  ;;  %6159 = vmatpush3.msra.mxu0 %v4081_v20 }
 0x229   :  { %6059 = vmatmul.mubr.msk.f32.gmra.mxu1 %vm74_vm0, %v7437_v22  ;;  %6099 = vmatmul.mubr.msk.f32.gmra.mxu0 %vm74_vm0, %v7544_v50 }
 0x22a   :  { %6061 = vmatprep.mubr.msk.f32.mxu1 %vm74_vm0, %v7445_v52  ;;  %6101 = vmatprep.mubr.msk.f32.mxu0 %vm74_vm0, %v7550_v16 }
 0x22b   :  { %6121 = vmatpush3.msra.mxu1 %v3846_v31  ;;  %6160 = vmatprep.subr.mxu0 %v4080_v38 }
 0x22c   :  { %6122 = vmatprep.subr.mxu1 %v3845_v48  ;;  %6161 = vmatpush3.msra.mxu0 %v4080_v38 }
 0x22d   :  { %6062 = vmatmul.mubr.msk.f32.gmra.mxu1 %vm74_vm0, %v7633_v51  ;;  %6102 = vmatmul.mubr.msk.f32.gmra.mxu0 %vm74_vm0, %v7635_v12 }
 0x22e   :  { %6064 = vmatprep.mubr.msk.f32.mxu1 %vm74_vm0, %v7455_v32  ;;  %6104 = vmatprep.mubr.msk.f32.mxu0 %vm74_vm0, %v7561_v53  ;;  %v4077_v32 = vld [vmem:[#allocation8 + $0x1d0] sm:$0xff]  ;;  %v7669_v53 = vld [vmem:[#allocation2 + $0x122] sm:$0xff] }
 0x22f   :  { %6123 = vmatpush3.msra.mxu1 %v3845_v48  ;;  %6162 = vmatprep.subr.mxu0 %v4079_v11 }
 0x230   :  { %6124 = vmatprep.subr.mxu1 %v3844_v4  ;;  %6163 = vmatpush3.msra.mxu0 %v4079_v11 }
 0x231   :  { %6065 = vmatmul.mubr.msk.f32.gmra.mxu1 %vm74_vm0, %v7463_v61  ;;  %6105 = vmatmul.mubr.msk.f32.gmra.mxu0 %vm74_vm0, %v7567_v49 }
 0x232   :  { %6067 = vmatprep.mubr.msk.f32.mxu1 %vm74_vm0, %v7471_v18  ;;  %6107 = vmatprep.mubr.msk.f32.mxu0 %vm74_vm0, %v7573_v25 }
 0x233   :  { %6125 = vmatpush3.msra.mxu1 %v3844_v4  ;;  %6164 = vmatprep.subr.mxu0 %v4078_v63 }
 0x234   :  { %6126 = vmatprep.subr.mxu1 %v3843_v34  ;;  %6165 = vmatpush3.msra.mxu0 %v4078_v63 }
 0x235   :  { %6068 = vmatmul.mubr.msk.f32.gmra.mxu1 %vm74_vm0, %v7479_v8  ;;  %6108 = vmatmul.mubr.msk.f32.gmra.mxu0 %vm74_vm0, %v7579_v29 }
 0x236   :  { %6070 = vmatprep.mubr.msk.f32.mxu1 %vm74_vm0, %v7487_v42  ;;  %6110 = vmatprep.mubr.msk.f32.mxu0 %vm74_vm0, %v7585_v59 }
 0x237   :  { %6127 = vmatpush3.msra.mxu1 %v3843_v34  ;;  %6166 = vmatprep.subr.mxu0 %v4077_v32 }
 0x238   :  { %6128 = vmatprep.subr.mxu1 %v3842_v3  ;;  %6167 = vmatpush3.msra.mxu0 %v4077_v32 }
 0x239   :  { %6071 = vmatmul.mubr.msk.f32.gmra.mxu1 %vm74_vm0, %v7495_v56  ;;  %6111 = vmatmul.mubr.msk.f32.gmra.mxu0 %vm74_vm0, %v7591_v14 }
 0x23a   :  { %6073 = vmatprep.mubr.msk.f32.mxu1 %vm74_vm0, %v7503_v33  ;;  %6113 = vmatprep.mubr.msk.f32.mxu0 %vm74_vm0, %v7597_v15 }
 0x23b   :  { %6129 = vmatpush3.msra.mxu1 %v3842_v3  ;;  %6168 = vmatprep.subr.mxu0 %v4076_v1 }
 0x23c   :  { %6130 = vmatprep.subr.mxu1 %v3841_v26  ;;  %6169 = vmatpush3.msra.mxu0 %v4076_v1 }
 0x23d   :  { %6074 = vmatmul.mubr.msk.f32.gmra.mxu1 %vm74_vm0, %v3371_v44  ;;  %6114 = vmatmul.mubr.msk.f32.gmra.mxu0 %vm74_vm0, %v7669_v53 }
 0x23e   :  { %6131 = vmatpush3.msra.mxu1 %v3841_v26  ;;  %6132 = vmatprep.mubr.msk.f32.mxu1 %vm74_vm0, %v7397_v55  ;;  %v4313_v55 = vld [vmem:[#allocation8 + $0x220] sm:$0xff] }
 0x23f   :  { %6172 = vmatprep.mubr.msk.f32.mxu0 %vm74_vm0, %v7391_v7  ;;  %6170 = vmatprep.subr.mxu0 %v4075_v13  ;;  %v4314_v7 = vld [vmem:[#allocation8 + $0x228] sm:$0xff] }
 0x240   :  { %6171 = vmatpush3.msra.mxu0 %v4075_v13  ;;  %6196 = vmatprep.subr.mxu1 %v4316_v45 }
 0x241   :  { %6133 = vmatmul.mubr.msk.f32.vlgmr.msra.gmra.mxu1 %vm74_vm0, %v7415_v37  ;;  %6173 = vmatmul.mubr.msk.f32.vlgmr.msra.gmra.mxu0 %vm74_vm0, %v7413_v40  ;;  %v3831_v40 = vld [vmem:[#allocation2 + $0x90] sm:$0xff] }
 0x242   :  { %6135 = vmatprep.mubr.msk.f32.mxu1 %vm74_vm0, %v7423_v27  ;;  %6175 = vmatprep.mubr.msk.f32.mxu0 %vm74_vm0, %v7421_v54  ;;  %v4065_v37 = vld [vmem:[#allocation2 + $0x91] sm:$0xff] }
 0x243   :  { %6197 = vmatpush3.msra.mxu1 %v4316_v45  ;;  %v4312_v54 = vld [vmem:[#allocation8 + $0x218] sm:$0xff]  ;;  %v4311_v27 = vld [vmem:[#allocation8 + $0x210] sm:$0xff] }
 0x244   :  { %6198 = vmatprep.subr.mxu1 %v4315_v46 }
 0x245   :  { %6136 = vmatmul.mubr.msk.f32.gmra.mxu1 %vm74_vm0, %v7431_v60  ;;  %6176 = vmatmul.mubr.msk.f32.gmra.mxu0 %vm74_vm0, %v7429_v47  ;;  %v4310_v47 = vld [vmem:[#allocation8 + $0x208] sm:$0xff]  ;;  %v4309_v60 = vld [vmem:[#allocation8 + $0x200] sm:$0xff] }
 0x246   :  { %6138 = vmatprep.mubr.msk.f32.mxu1 %vm74_vm0, %v7439_v58  ;;  %6178 = vmatprep.mubr.msk.f32.mxu0 %vm74_vm0, %v7437_v22  ;;  %v3839_v22 = vld [vmem:[#allocation2 + $0x130] sm:$0xff] }
 0x247   :  { %6199 = vmatpush3.msra.mxu1 %v4315_v46  ;;  %v4073_v58 = vld [vmem:[#allocation2 + $0x131] sm:$0xff] }
 0x248   :  { %6200 = vmatprep.subr.mxu1 %v4314_v7 }
 0x249   :  { %6139 = vmatmul.mubr.msk.f32.gmra.mxu1 %vm74_vm0, %v7447_v24  ;;  %6179 = vmatmul.mubr.msk.f32.gmra.mxu0 %vm74_vm0, %v7445_v52  ;;  %v4299_v52 = vld [vmem:[#allocation2 + $0x92] sm:$0xff] }
 0x24a   :  { %6141 = vmatprep.mubr.msk.f32.mxu1 %vm74_vm0, %v7552_v19  ;;  %6181 = vmatprep.mubr.msk.f32.mxu0 %vm74_vm0, %v7633_v51  ;;  %v4307_v24 = vld [vmem:[#allocation2 + $0x132] sm:$0xff] }
 0x24b   :  { %6201 = vmatpush3.msra.mxu1 %v4314_v7 }
 0x24c   :  { %6202 = vmatprep.subr.mxu1 %v4313_v55 }
 0x24d   :  { %6142 = vmatmul.mubr.msk.f32.gmra.mxu1 %vm74_vm0, %v3831_v40  ;;  %6182 = vmatmul.mubr.msk.f32.gmra.mxu0 %vm74_vm0, %v4065_v37 }
 0x24e   :  { %6144 = vmatprep.mubr.msk.f32.mxu1 %vm74_vm0, %v7465_v43  ;;  %6184 = vmatprep.mubr.msk.f32.mxu0 %vm74_vm0, %v7463_v61 }
 0x24f   :  { %6203 = vmatpush3.msra.mxu1 %v4313_v55 }
 0x250   :  { %6204 = vmatprep.subr.mxu1 %v4312_v54 }
 0x251   :  { %6145 = vmatmul.mubr.msk.f32.gmra.mxu1 %vm74_vm0, %v7473_v0  ;;  %6185 = vmatmul.mubr.msk.f32.gmra.mxu0 %vm74_vm0, %v7471_v18 }
 0x252   :  { %6147 = vmatprep.mubr.msk.f32.mxu1 %vm74_vm0, %v7481_v9  ;;  %6187 = vmatprep.mubr.msk.f32.mxu0 %vm74_vm0, %v7479_v8 }
 0x253   :  { %6205 = vmatpush3.msra.mxu1 %v4312_v54 }
 0x254   :  { %6206 = vmatprep.subr.mxu1 %v4311_v27 }
 0x255   :  { %6148 = vmatmul.mubr.msk.f32.gmra.mxu1 %vm74_vm0, %v7489_v5  ;;  %6188 = vmatmul.mubr.msk.f32.gmra.mxu0 %vm74_vm0, %v7487_v42 }
 0x256   :  { %6150 = vmatprep.mubr.msk.f32.mxu1 %vm74_vm0, %v7497_v30  ;;  %6190 = vmatprep.mubr.msk.f32.mxu0 %vm74_vm0, %v7495_v56 }
 0x257   :  { %6207 = vmatpush3.msra.mxu1 %v4311_v27 }
 0x258   :  { %6208 = vmatprep.subr.mxu1 %v4310_v47 }
 0x259   :  { %6151 = vmatmul.mubr.msk.f32.gmra.mxu1 %vm74_vm0, %v7505_v35  ;;  %6191 = vmatmul.mubr.msk.f32.gmra.mxu0 %vm74_vm0, %v7503_v33 }
 0x25a   :  { %6153 = vmatprep.mubr.msk.f32.mxu1 %vm74_vm0, %v7599_v28  ;;  %6193 = vmatprep.mubr.msk.f32.mxu0 %vm74_vm0, %v3371_v44 }
 0x25b   :  { %6209 = vmatpush3.msra.mxu1 %v4310_v47 }
 0x25c   :  { %6210 = vmatprep.subr.mxu1 %v4309_v60 }
 0x25d   :  { %6154 = vmatmul.mubr.msk.f32.gmra.mxu1 %vm74_vm0, %v3839_v22  ;;  %6194 = vmatmul.mubr.msk.f32.gmra.mxu0 %vm74_vm0, %v4073_v58 }
 0x25e   :  { %6211 = vmatpush3.msra.mxu1 %v4309_v60  ;;  %6212 = vmatprep.mubr.msk.f32.mxu1 %vm74_vm0, %v7520_v41 }
 0x261   :  { %6213 = vmatmul.mubr.msk.f32.vlgmr.msra.gmra.mxu1 %vm74_vm0, %v7526_v21 }
 0x262   :  { %6215 = vmatprep.mubr.msk.f32.mxu1 %vm74_vm0, %v7532_v57 }
 0x265   :  { %6216 = vmatmul.mubr.msk.f32.gmra.mxu1 %vm74_vm0, %v7538_v2 }
 0x266   :  { %6218 = vmatprep.mubr.msk.f32.mxu1 %vm74_vm0, %v7544_v50 }
 0x269   :  { %6219 = vmatmul.mubr.msk.f32.gmra.mxu1 %vm74_vm0, %v7550_v16 }
 0x26a   :  { %6221 = vmatprep.mubr.msk.f32.mxu1 %vm74_vm0, %v7635_v12 }
 0x26d   :  { %6222 = vmatmul.mubr.msk.f32.gmra.mxu1 %vm74_vm0, %v4299_v52 }
 0x26e   :  { %6224 = vmatprep.mubr.msk.f32.mxu1 %vm74_vm0, %v7567_v49 }
 0x271   :  { %6225 = vmatmul.mubr.msk.f32.gmra.mxu1 %vm74_vm0, %v7573_v25 }
 0x272   :  { %6227 = vmatprep.mubr.msk.f32.mxu1 %vm74_vm0, %v7579_v29 }
 0x275   :  { %6228 = vmatmul.mubr.msk.f32.gmra.mxu1 %vm74_vm0, %v7585_v59 }
 0x276   :  { %6230 = vmatprep.mubr.msk.f32.mxu1 %vm74_vm0, %v7591_v14 }
 0x279   :  { %6231 = vmatmul.mubr.msk.f32.gmra.mxu1 %vm74_vm0, %v7597_v15 }
 0x27a   :  { %6233 = vmatprep.mubr.msk.f32.mxu1 %vm74_vm0, %v7669_v53 }
 0x27d   :  { %6234 = vmatmul.mubr.msk.f32.gmra.mxu1 %vm74_vm0, %v4307_v24 }
 0x2a0   :  { %v5894_v61 = vpop.f32.mrf.mxu1 }
 0x2a1   :  { %v5934_v43 = vpop.f32.mrf.mxu0 }
 0x2a2   :  { %v2815_v18 = vadd.f32 %v5934_v43, %v5894_v61  ;;  %v2616_v0 = vpop.f32.mrf.mxu1 }
 0x2a3   :  { %v2809_v8 = vpop.f32.mrf.mxu0 }
 0x2a4   :  { %v2810_v9 = vadd.f32 %v2809_v8, %v2616_v0  ;;  %v5897_v42 = vpop.f32.mrf.mxu1 }
 0x2a5   :  { %v5937_v5 = vpop.f32.mrf.mxu0 }
 0x2a6   :  { %v2825_v56 = vadd.f32 %v5937_v5, %v5897_v42  ;;  %v2626_v30 = vpop.f32.mrf.mxu1 }
 0x2a7   :  { %v2819_v33 = vpop.f32.mrf.mxu0 }
 0x2a8   :  { %v2820_v35 = vadd.f32 %v2819_v33, %v2626_v30  ;;  %v5900_v41 = vpop.f32.mrf.mxu1 }
 0x2a9   :  { %v5940_v21 = vpop.f32.mrf.mxu0 }
 0x2aa   :  { %v2835_v57 = vadd.f32 %v5940_v21, %v5900_v41  ;;  %v2636_v2 = vpop.f32.mrf.mxu1 }
 0x2ab   :  { %v2829_v50 = vpop.f32.mrf.mxu0 }
 0x2ac   :  { %v2830_v16 = vadd.f32 %v2829_v50, %v2636_v2  ;;  %v5903_v19 = vpop.f32.mrf.mxu1 }
 0x2ad   :  { %v5943_v49 = vpop.f32.mrf.mxu0 }
 0x2ae   :  { %v2845_v25 = vadd.f32 %v5943_v49, %v5903_v19  ;;  %v2646_v23 = vpop.f32.mrf.mxu1 }
 0x2af   :  { %v2839_v29 = vpop.f32.mrf.mxu0 }
 0x2b0   :  { %v2840_v59 = vadd.f32 %v2839_v29, %v2646_v23 }
 0x2b1   :  { %v5906_v10 = vpop.f32.mrf.mxu1  ;;  %v5946_v6 = vpop.f32.mrf.mxu0 }
 0x2b2   :  { %v2855_v14 = vadd.f32 %v5946_v6, %v5906_v10 }
 0x2b3   :  { %v2656_v39 = vpop.f32.mrf.mxu1  ;;  %v2849_v15 = vpop.f32.mrf.mxu0 }
 0x2b4   :  { %v2850_v28 = vadd.f32 %v2849_v15, %v2656_v39 }
 0x2b5   :  { %v5909_v17 = vpop.f32.mrf.mxu1  ;;  %v5949_v36 = vpop.f32.mrf.mxu0 }
 0x2b6   :  { %v2865_v62 = vadd.f32 %v5949_v36, %v5909_v17 }
 0x2b7   :  { %v2666_v20 = vpop.f32.mrf.mxu1  ;;  %v2859_v31 = vpop.f32.mrf.mxu0 }
 0x2b8   :  { %v2860_v38 = vadd.f32 %v2859_v31, %v2666_v20 }
 0x2b9   :  { %v5912_v48 = vpop.f32.mrf.mxu1  ;;  %v5952_v51 = vpop.f32.mrf.mxu0 }
 0x2ba   :  { %v2875_v12 = vadd.f32 %v5952_v51, %v5912_v48 }
 0x2bb   :  { %v2676_v11 = vpop.f32.mrf.mxu1  ;;  %v2869_v4 = vpop.f32.mrf.mxu0 }
 0x2bc   :  { %v2870_v63 = vadd.f32 %v2869_v4, %v2676_v11 }
 0x2bd   :  { %v5915_v34 = vpop.f32.mrf.mxu1  ;;  %v5955_v32 = vpop.f32.mrf.mxu0 }
 0x2be   :  { %v2885_v3 = vadd.f32 %v5955_v32, %v5915_v34 }
 0x2bf   :  { %v2686_v1 = vpop.f32.mrf.mxu1  ;;  %v2879_v26 = vpop.f32.mrf.mxu0 }
 0x2c0   :  { %v2880_v44 = vadd.f32 %v2879_v26, %v2686_v1 }
 0x2c1   :  { %v5974_v53 = vpop.f32.mrf.mxu1  ;;  %v7763_v13 = vpop.f32.mrf.mxu0 }
 0x2c2   :  { %v7765_v45 = vadd.f32 %v5974_v53, %v2815_v18 }
 0x2c3   :  { %v3027_v46 = vpop.f32.mrf.mxu1  ;;  %v7767_v7 = vpop.f32.mrf.mxu0 }
 0x2c4   :  { %v7769_v55 = vadd.f32 %v3027_v46, %v2810_v9 }
 0x2c5   :  { %v5977_v40 = vpop.f32.mrf.mxu1  ;;  %v7771_v37 = vpop.f32.mrf.mxu0 }
 0x2c6   :  { %v7773_v54 = vadd.f32 %v5977_v40, %v2825_v56 }
 0x2c7   :  { %v3037_v27 = vpop.f32.mrf.mxu1  ;;  %v7775_v47 = vpop.f32.mrf.mxu0 }
 0x2c8   :  { %v7777_v60 = vadd.f32 %v3037_v27, %v2820_v35 }
 0x2c9   :  { %v5980_v22 = vpop.f32.mrf.mxu1  ;;  %v7779_v58 = vpop.f32.mrf.mxu0 }
 0x2ca   :  { %v7781_v52 = vadd.f32 %v5980_v22, %v2835_v57 }
 0x2cb   :  { %v3047_v24 = vpop.f32.mrf.mxu1  ;;  %v7783_v61 = vpop.f32.mrf.mxu0 }
 0x2cc   :  { %v7785_v43 = vadd.f32 %v3047_v24, %v2830_v16 }
 0x2cd   :  { %v5983_v18 = vpop.f32.mrf.mxu1  ;;  %v7787_v0 = vpop.f32.mrf.mxu0 }
 0x2ce   :  { %v7789_v8 = vadd.f32 %v5983_v18, %v2845_v25 }
 0x2cf   :  { %v3057_v9 = vpop.f32.mrf.mxu1  ;;  %v7791_v42 = vpop.f32.mrf.mxu0 }
 0x2d0   :  { %v7793_v5 = vadd.f32 %v3057_v9, %v2840_v59 }
 0x2d1   :  { %v5986_v56 = vpop.f32.mrf.mxu1  ;;  %v7795_v30 = vpop.f32.mrf.mxu0 }
 0x2d2   :  { %v7797_v33 = vadd.f32 %v5986_v56, %v2855_v14 }
 0x2d3   :  { %v3067_v35 = vpop.f32.mrf.mxu1  ;;  %v7799_v41 = vpop.f32.mrf.mxu0 }
 0x2d4   :  { %v7801_v21 = vadd.f32 %v3067_v35, %v2850_v28 }
 0x2d5   :  { %v5989_v57 = vpop.f32.mrf.mxu1  ;;  %v7803_v2 = vpop.f32.mrf.mxu0 }
 0x2d6   :  { %v7805_v50 = vadd.f32 %v5989_v57, %v2865_v62 }
 0x2d7   :  { %v3077_v16 = vpop.f32.mrf.mxu1  ;;  %v7807_v19 = vpop.f32.mrf.mxu0 }
 0x2d8   :  { %v7809_v49 = vadd.f32 %v3077_v16, %v2860_v38 }
 0x2d9   :  { %v5992_v25 = vpop.f32.mrf.mxu1  ;;  %v7811_v23 = vpop.f32.mrf.mxu0 }
 0x2da   :  { %v7813_v29 = vadd.f32 %v5992_v25, %v2875_v12 }
 0x2db   :  { %v3087_v59 = vpop.f32.mrf.mxu1  ;;  %v7815_v10 = vpop.f32.mrf.mxu0 }
 0x2dc   :  { %v7817_v6 = vadd.f32 %v3087_v59, %v2870_v63 }
 0x2dd   :  { %v5995_v14 = vpop.f32.mrf.mxu1  ;;  %v7819_v39 = vpop.f32.mrf.mxu0 }
 0x2de   :  { %v7821_v15 = vadd.f32 %v5995_v14, %v2885_v3 }
 0x2df   :  { %v3097_v28 = vpop.f32.mrf.mxu1  ;;  %v7823_v17 = vpop.f32.mrf.mxu0 }
 0x2e0   :  { %v7825_v36 = vadd.f32 %v3097_v28, %v2880_v44 }
 0x2e1   :  { %v6054_v62 = vpop.f32.mrf.mxu1  ;;  %v7827_v20 = vpop.f32.mrf.mxu0 }
 0x2e3   :  { %v3495_v31 = vpop.f32.mrf.mxu1  ;;  %v7829_v38 = vpop.f32.mrf.mxu0 }
 0x2e5   :  { %v6057_v48 = vpop.f32.mrf.mxu1  ;;  %v7831_v51 = vpop.f32.mrf.mxu0 }
 0x2e7   :  { %v3505_v12 = vpop.f32.mrf.mxu1  ;;  %v7833_v11 = vpop.f32.mrf.mxu0 }
 0x2e9   :  { %v6060_v4 = vpop.f32.mrf.mxu1  ;;  %v7835_v63 = vpop.f32.mrf.mxu0 }
 0x2eb   :  { %v3515_v34 = vpop.f32.mrf.mxu1  ;;  %v7837_v32 = vpop.f32.mrf.mxu0 }
 0x2ed   :  { %v7839_v3 = vpop.f32.mrf.mxu1  ;;  %v7841_v1 = vpop.f32.mrf.mxu0 }
 0x2ee   :  { %8318 = vst [vmem:[#allocation36_spill] sm:$0xff] %v7841_v1 }
 0x2ef   :  { %v7843_v26 = vpop.f32.mrf.mxu1  ;;  %v7845_v44 = vpop.f32.mrf.mxu0 }
 0x2f0   :  { %8319 = vst [vmem:[#allocation32_spill] sm:$0xff] %v7845_v44 }
 0x2f1   :  { %v7847_v53 = vpop.f32.mrf.mxu1  ;;  %v7849_v46 = vpop.f32.mrf.mxu0 }
 0x2f2   :  { %8320 = vst [vmem:[#allocation38_spill] sm:$0xff] %v7849_v46 }
 0x2f3   :  { %v7851_v40 = vpop.f32.mrf.mxu1  ;;  %v7853_v27 = vpop.f32.mrf.mxu0 }
 0x2f4   :  { %8321 = vst [vmem:[#allocation40_spill] sm:$0xff] %v7853_v27 }
 0x2f5   :  { %v7855_v22 = vpop.f32.mrf.mxu1  ;;  %v7857_v24 = vpop.f32.mrf.mxu0 }
 0x2f6   :  { %8322 = vst [vmem:[#allocation29_spill] sm:$0xff] %v7857_v24 }
 0x2f7   :  { %v7859_v18 = vpop.f32.mrf.mxu1  ;;  %v7861_v9 = vpop.f32.mrf.mxu0 }
 0x2f8   :  { %8323 = vst [vmem:[#allocation30_spill] sm:$0xff] %v7861_v9 }
 0x2f9   :  { %v7863_v56 = vpop.f32.mrf.mxu1  ;;  %v7865_v35 = vpop.f32.mrf.mxu0 }
 0x2fa   :  { %8324 = vst [vmem:[#allocation31_spill] sm:$0xff] %v7863_v56  ;;  %8325 = vst [vmem:[#allocation42_spill] sm:$0xff] %v7865_v35 }
 0x2fb   :  { %v7867_v57 = vpop.f32.mrf.mxu1  ;;  %v7869_v16 = vpop.f32.mrf.mxu0 }
 0x2fc   :  { %8326 = vst [vmem:[#allocation44_spill] sm:$0xff] %v7867_v57  ;;  %8327 = vst [vmem:[#allocation33_spill] sm:$0xff] %v7869_v16 }
 0x2fd   :  { %v7871_v25 = vpop.f32.mrf.mxu1  ;;  %v7873_v59 = vpop.f32.mrf.mxu0 }
 0x2fe   :  { %8328 = vst [vmem:[#allocation46_spill] sm:$0xff] %v7871_v25  ;;  %8329 = vst [vmem:[#allocation48_spill] sm:$0xff] %v7873_v59 }
 0x2ff   :  { %v7875_v14 = vpop.f32.mrf.mxu1  ;;  %v7877_v28 = vpop.f32.mrf.mxu0 }
 0x300   :  { %8330 = vst [vmem:[#allocation34_spill] sm:$0xff] %v7875_v14  ;;  %8331 = vst [vmem:[#allocation35_spill] sm:$0xff] %v7877_v28 }
 0x301   :  { %v6134_v24 = vpop.f32.mrf.mxu1  ;;  %v7879_v27 = vpop.f32.mrf.mxu0 }
 0x302   :  { %8332 = vst [vmem:[#allocation37_spill] sm:$0xff] %v7879_v27 }
 0x303   :  { %v3963_v9 = vpop.f32.mrf.mxu1  ;;  %v7881_v46 = vpop.f32.mrf.mxu0 }
 0x304   :  { %8333 = vst [vmem:[#allocation50_spill] sm:$0xff] %v7881_v46 }
 0x305   :  { %v6137_v44 = vpop.f32.mrf.mxu1  ;;  %v7883_v35 = vpop.f32.mrf.mxu0 }
 0x306   :  { %8334 = vst [vmem:[#allocation39_spill] sm:$0xff] %v7883_v35  ;;  %v3341_v35 = vadd.f32 %v7763_v13, %v7765_v45  ;;  %v3344_v13 = vadd.f32 %v7783_v61, %v7785_v43  ;;  %v3347_v45 = vadd.f32 %v7787_v0, %v7789_v8  ;;  %v3351_v0 = vadd.f32 %v7803_v2, %v7805_v50 }
 0x307   :  { %v7885_v57 = vpop.f32.mrf.mxu1  ;;  %v7889_v25 = vpop.f32.mrf.mxu0  ;;  %v3350_v8 = vadd.f32 %v7807_v19, %v7809_v49  ;;  %v3354_v2 = vadd.f32 %v7823_v17, %v7825_v36 }
 0x308   :  { %8336 = vst [vmem:[#allocation59_spill] sm:$0xff] %v7889_v25  ;;  %v3575_v25 = vadd.f32 %v6054_v62, %v3341_v35  ;;  %v3578_v43 = vadd.f32 %v3515_v34, %v3344_v13  ;;  %v3585_v17 = vadd.f32 %v7855_v22, %v3351_v0  ;;  %v8357_v0 = vld [vmem:[#allocation33_spill] sm:$0xff] }
 0x309   :  { %v7887_v16 = vpop.f32.mrf.mxu1  ;;  %v7895_v28 = vpop.f32.mrf.mxu0  ;;  %v3584_v36 = vadd.f32 %v7859_v18, %v3350_v8  ;;  %v8346_v34 = vld [vmem:[#allocation37_spill] sm:$0xff] }
 0x30a   :  { %8335 = vst [vmem:[#allocation41_spill] sm:$0xff] %v7887_v16 }
 0x30b   :  { %v7891_v59 = vpop.f32.mrf.mxu1  ;;  %v7901_v46 = vpop.f32.mrf.mxu0 }
 0x30c   :  { %8337 = vst [vmem:[#allocation43_spill] sm:$0xff] %v7891_v59  ;;  %8341 = vst [vmem:[#allocation47_spill] sm:$0xff] %v7901_v46  ;;  %v3340_v59 = vadd.f32 %v7767_v7, %v7769_v55  ;;  %v3346_v55 = vadd.f32 %v7791_v42, %v7793_v5  ;;  %v3353_v42 = vadd.f32 %v7811_v23, %v7813_v29 }
 0x30d   :  { %v7893_v14 = vpop.f32.mrf.mxu1  ;;  %v3352_v5 = vadd.f32 %v7815_v10, %v7817_v6  ;;  %v3812_v10 = vadd.f32 %v7837_v32, %v3578_v43 }
 0x30e   :  { %8338 = vst [vmem:[#allocation45_spill] sm:$0xff] %v7893_v14  ;;  %v7911_v14 = vpop.f32.mrf.mxu0  ;;  %v3574_v7 = vadd.f32 %v3495_v31, %v3340_v59  ;;  %v3580_v49 = vadd.f32 %v7843_v26, %v3346_v55  ;;  %v8353_v55 = vld [vmem:[#allocation40_spill] sm:$0xff] }
 0x30f   :  { %v7897_v1 = vpop.f32.mrf.mxu1 }
 0x310   :  { %8339 = vst [vmem:[#allocation52_spill] sm:$0xff] %v7897_v1  ;;  %v3343_v1 = vadd.f32 %v7771_v37, %v7773_v54  ;;  %v3349_v37 = vadd.f32 %v7795_v30, %v7797_v33  ;;  %v7934_v62 = vpop.f32.mrf.mxu0  ;;  %v3355_v33 = vadd.f32 %v7819_v39, %v7821_v15 }
 0x311   :  { %v7899_v27 = vpop.f32.mrf.mxu1  ;;  %v8352_v13 = vld [vmem:[#allocation41_spill] sm:$0xff] }
 0x312   :  { %8340 = vst [vmem:[#allocation54_spill] sm:$0xff] %v7899_v27  ;;  %v3342_v27 = vadd.f32 %v7775_v47, %v7777_v60  ;;  %v3577_v54 = vadd.f32 %v6057_v48, %v3343_v1  ;;  %v3583_v6 = vadd.f32 %v7847_v53, %v3349_v37  ;;  %v7960_v15 = vpop.f32.mrf.mxu0  ;;  %v8347_v1 = vld [vmem:[#allocation32_spill] sm:$0xff]  ;;  %v8348_v53 = vld [vmem:[#allocation46_spill] sm:$0xff] }
 0x313   :  { %v7903_v56 = vpop.f32.mrf.mxu1  ;;  %v3814_v26 = vadd.f32 %v8347_v1, %v3580_v49 }
 0x314   :  { %8342 = vst [vmem:[#allocation49_spill] sm:$0xff] %v7903_v56  ;;  %v3345_v56 = vadd.f32 %v7779_v58, %v7781_v52  ;;  %v3576_v47 = vadd.f32 %v3505_v12, %v3342_v27  ;;  %v3348_v58 = vadd.f32 %v7799_v41, %v7801_v21  ;;  %v3809_v52 = vadd.f32 %v7827_v20, %v3575_v25  ;;  %v8344_v12 = vld [vmem:[#allocation36_spill] sm:$0xff]  ;;  %v8351_v25 = vld [vmem:[#allocation50_spill] sm:$0xff] }
 0x315   :  { %v7907_v16 = vpop.f32.mrf.mxu1  ;;  %v3808_v41 = vadd.f32 %v7829_v38, %v3574_v7  ;;  %v3581_v21 = vadd.f32 %v7839_v3, %v3347_v45  ;;  %v3811_v50 = vadd.f32 %v7831_v51, %v3577_v54  ;;  %v8343_v38 = vld [vmem:[#allocation31_spill] sm:$0xff]  ;;  %v3589_v27 = vadd.f32 %v8348_v53, %v3355_v33  ;;  %v4237_v45 = vpop.f32.mrf.mxu0  ;;  %v8354_v54 = vld [vmem:[#allocation29_spill] sm:$0xff] }
 0x316   :  { %v3579_v61 = vadd.f32 %v6060_v4, %v3345_v56  ;;  %v4043_v20 = vadd.f32 %v6134_v24, %v3809_v52  ;;  %v3810_v19 = vadd.f32 %v7833_v11, %v3576_v47  ;;  %v3582_v31 = vadd.f32 %v7851_v40, %v3348_v58  ;;  %v8345_v4 = vld [vmem:[#allocation44_spill] sm:$0xff]  ;;  %v8349_v40 = vld [vmem:[#allocation34_spill] sm:$0xff] }
 0x317   :  { %v7917_v46 = vpop.f32.mrf.mxu1  ;;  %v4042_v39 = vadd.f32 %v3963_v9, %v3808_v41  ;;  %v3587_v48 = vadd.f32 %v8343_v38, %v3353_v42  ;;  %v3815_v11 = vadd.f32 %v8344_v12, %v3581_v21  ;;  %v4045_v3 = vadd.f32 %v6137_v44, %v3811_v50  ;;  %v7978_v9 = vld [vmem:[%s8202_s6] ss:$0 sm:$0xff]  ;;  %v8350_v56 = vld [vmem:[#allocation38_spill] sm:$0xff]  ;;  %v8358_v42 = vld [vmem:[#allocation39_spill] sm:$0xff] }
 0x318   :  { %v3813_v29 = vadd.f32 %v7835_v63, %v3579_v61  ;;  %v3586_v63 = vadd.f32 %v8345_v4, %v3352_v5  ;;  %v4277_v32 = vadd.f32 %v8346_v34, %v4043_v20  ;;  %v3588_v24 = vadd.f32 %v8349_v40, %v3354_v2  ;;  %v8355_v58 = vld [vmem:[#allocation30_spill] sm:$0xff]  ;;  %v8359_v21 = vld [vmem:[#allocation48_spill] sm:$0xff]  ;;  %v8360_v2 = vld [vmem:[#allocation35_spill] sm:$0xff] }
 0x319   :  { %v7929_v60 = vpop.f32.mrf.mxu1  ;;  %v4044_v22 = vadd.f32 %v7885_v57, %v3810_v19  ;;  %v3817_v35 = vadd.f32 %v8350_v56, %v3583_v6  ;;  %v4276_v59 = vadd.f32 %v8351_v25, %v4042_v39  ;;  %v3816_v37 = vadd.f32 %v8353_v55, %v3582_v31  ;;  %v8356_v52 = vld [vmem:[#allocation42_spill] sm:$0xff]  ;;  %v8361_v19 = vld [vmem:[#allocation59_spill] sm:$0xff]  ;;  %v8363_v12 = vld [vmem:[#allocation45_spill] sm:$0xff] }
 0x31a   :  { %v4047_v44 = vadd.f32 %v8352_v13, %v3813_v29  ;;  %v3819_v47 = vadd.f32 %v8354_v54, %v3585_v17  ;;  %v3818_v57 = vadd.f32 %v8355_v58, %v3584_v36  ;;  %v3821_v61 = vadd.f32 %v8356_v52, %v3587_v48  ;;  %v8362_v29 = vld [vmem:[#allocation43_spill] sm:$0xff]  ;;  %v6189_v17 = vpop.f32.mrf.mxu0 }
 0x31b   :  { %v7944_v30 = vpop.f32.mrf.mxu1  ;;  %v3820_v8 = vadd.f32 %v8357_v0, %v3586_v63  ;;  %v4279_v5 = vadd.f32 %v8358_v42, %v4045_v3  ;;  %v7993_v20 = vadd.f32 %v8359_v21, %v3589_v27  ;;  %v7996_v50 = vadd.f32 %v8360_v2, %v3588_v24  ;;  %v8364_v63 = vld [vmem:[#allocation52_spill] sm:$0xff]  ;;  %v8366_v1 = vld [vmem:[#allocation49_spill] sm:$0xff] }
 0x31c   :  { %v4278_v49 = vadd.f32 %v8361_v19, %v4044_v22  ;;  %v4046_v6 = vadd.f32 %v8362_v29, %v3812_v10  ;;  %v4281_v31 = vadd.f32 %v7895_v28, %v4047_v44  ;;  %v4049_v4 = vadd.f32 %v8363_v12, %v3815_v11  ;;  %v8367_v11 = vld [vmem:[#allocation47_spill] sm:$0xff] }
 0x31d   :  { %v7955_v23 = vpop.f32.mrf.mxu1  ;;  %v4048_v34 = vadd.f32 %v8364_v63, %v3814_v26  ;;  %v4050_v53 = vadd.f32 %v8366_v1, %v3816_v37  ;;  %v4053_v26 = vadd.f32 %v7907_v16, %v3819_v47  ;;  %v4052_v25 = vadd.f32 %v7917_v46, %v3818_v57 }
 0x31e   :  { %v4280_v22 = vadd.f32 %v8367_v11, %v4046_v6  ;;  %v4283_v55 = vadd.f32 %v7911_v14, %v4049_v4  ;;  %v4054_v2 = vadd.f32 %v7944_v30, %v3820_v8 }
 0x31f   :  { %v7966_v51 = vpop.f32.mrf.mxu1  ;;  %v4282_v37 = vadd.f32 %v7934_v62, %v4048_v34  ;;  %v4284_v52 = vadd.f32 %v4237_v45, %v4050_v53 }
 0x321   :  { %v6214_v18 = vpop.f32.mrf.mxu1 }
 0x322   :  { %v4511_v7 = vadd.f32 %v6214_v18, %v4277_v32  ;;  %v8365_v32 = vld [vmem:[#allocation54_spill] sm:$0xff] }
 0x323   :  { %v4431_v43 = vpop.f32.mrf.mxu1  ;;  %v4051_v3 = vadd.f32 %v8365_v32, %v3817_v35 }
 0x324   :  { %v7990_v33 = vadd.f32 %v7978_v9, %v4511_v7  ;;  %v4510_v41 = vadd.f32 %v4431_v43, %v4276_v59  ;;  %v4247_v59 = vpop.f32.mrf.mxu0  ;;  %v4287_v43 = vadd.f32 %v6189_v17, %v4053_v26 }
 0x325   :  { %v6217_v39 = vpop.f32.mrf.mxu1  ;;  %v4285_v47 = vadd.f32 %v7960_v15, %v4051_v3 }
 0x326   :  { %v4590_v36 = vmul.f32 %v7990_v33, %v7990_v33  ;;  %v8004_v38 = vadd.f32 %v7978_v9, %v4510_v41  ;;  %v4513_v48 = vadd.f32 %v6217_v39, %v4279_v5  ;;  %v4552_v28 = vsel %vm74_vm0, %v7990_v33, 0.0  ;;  %v6192_v15 = vpop.f32.mrf.mxu0 }
 0x327   :  { %v4441_v10 = vpop.f32.mrf.mxu1  ;;  %v4286_v5 = vadd.f32 %v4247_v59, %v4052_v25  ;;  %v4055_v41 = vadd.f32 %v7929_v60, %v3821_v61  ;;  %v4057_v59 = vadd.f32 %v7955_v23, %v7993_v20 }
 0x328   :  { %v4551_v27 = vsel %vm74_vm0, %v8004_v38, 0.0  ;;  %v4589_v40 = vmul.f32 %v8004_v38, %v8004_v38  ;;  %v8017_v24 = vadd.f32 %v7978_v9, %v4513_v48  ;;  %v4512_v56 = vadd.f32 %v4441_v10, %v4278_v49  ;;  %v4257_v4 = vpop.f32.mrf.mxu0 }
 0x329   :  { %v4553_v18 = vadd.f32 %v4552_v28, %v4551_v27  ;;  %v6220_v35 = vpop.f32.mrf.mxu1  ;;  %v4606_v13 = vsel %vm74_vm0, %v4590_v36, 0.0  ;;  %v4289_v12 = vadd.f32 %v6192_v15, %v4055_v41  ;;  %v4288_v3 = vadd.f32 %v4257_v4, %v4054_v2 }
 0x32a   :  { %v4605_v44 = vsel %vm74_vm0, %v4589_v40, 0.0  ;;  %v4515_v7 = vadd.f32 %v6220_v35, %v4281_v31  ;;  %v8027_v58 = vadd.f32 %v7978_v9, %v4512_v56  ;;  %v4592_v46 = vmul.f32 %v8017_v24, %v8017_v24 }
 0x32b   :  { %v4607_v54 = vadd.f32 %v4606_v13, %v4605_v44  ;;  %v4451_v16 = vpop.f32.mrf.mxu1  ;;  %v4556_v19 = vsel %vm74_vm0, %v8017_v24, 0.0  ;;  %v4056_v13 = vadd.f32 %v7966_v51, %v7996_v50  ;;  %v6195_v44 = vpop.f32.mrf.mxu0 }
 0x32c   :  { %v4514_v57 = vadd.f32 %v4451_v16, %v4280_v22  ;;  %v4554_v0 = vsel %vm74_vm0, %v8027_v58, 0.0  ;;  %v4591_v14 = vmul.f32 %v8027_v58, %v8027_v58  ;;  %v8037_v62 = vadd.f32 %v7978_v9, %v4515_v7 }
 0x32d   :  { %v6223_v42 = vpop.f32.mrf.mxu1  ;;  %v4555_v45 = vadd.f32 %v4554_v0, %v4553_v18  ;;  %v4610_v39 = vsel %vm74_vm0, %v4592_v46, 0.0  ;;  %v4291_v2 = vadd.f32 %v6195_v44, %v4057_v59 }
 0x32e   :  { %v8041_v21 = vadd.f32 %v7978_v9, %v4514_v57  ;;  %v4608_v49 = vsel %vm74_vm0, %v4591_v14, 0.0  ;;  %v4517_v29 = vadd.f32 %v6223_v42, %v4283_v55  ;;  %v4594_v61 = vmul.f32 %v8037_v62, %v8037_v62 }
 0x32f   :  { %v4461_v6 = vpop.f32.mrf.mxu1  ;;  %v4609_v31 = vadd.f32 %v4608_v49, %v4607_v54  ;;  %v4557_v17 = vadd.f32 %v4556_v19, %v4555_v45  ;;  %v4560_v1 = vsel %vm74_vm0, %v8037_v62, 0.0 }
 0x330   :  { %v4558_v60 = vsel %vm74_vm0, %v8041_v21, 0.0  ;;  %v4593_v30 = vmul.f32 %v8041_v21, %v8041_v21  ;;  %v8055_v8 = vadd.f32 %v7978_v9, %v4517_v29  ;;  %v4516_v36 = vadd.f32 %v4461_v6, %v4282_v37 }
 0x331   :  { %v6226_v48 = vpop.f32.mrf.mxu1  ;;  %v4559_v63 = vadd.f32 %v4558_v60, %v4557_v17  ;;  %v4611_v34 = vadd.f32 %v4610_v39, %v4609_v31  ;;  %v4614_v26 = vsel %vm74_vm0, %v4594_v61, 0.0 }
 0x332   :  { %v4519_v32 = vadd.f32 %v6226_v48, %v4285_v47  ;;  %v4612_v53 = vsel %vm74_vm0, %v4593_v30, 0.0  ;;  %v8061_v10 = vadd.f32 %v7978_v9, %v4516_v36  ;;  %v4596_v40 = vmul.f32 %v8055_v8, %v8055_v8 }
 0x333   :  { %v4471_v28 = vpop.f32.mrf.mxu1  ;;  %v4613_v27 = vadd.f32 %v4612_v53, %v4611_v34  ;;  %v4561_v11 = vadd.f32 %v4560_v1, %v4559_v63  ;;  %v4564_v37 = vsel %vm74_vm0, %v8055_v8, 0.0 }
 0x334   :  { %v4518_v22 = vadd.f32 %v4471_v28, %v4284_v52  ;;  %v4562_v18 = vsel %vm74_vm0, %v8061_v10, 0.0  ;;  %v4595_v56 = vmul.f32 %v8061_v10, %v8061_v10  ;;  %v8071_v35 = vadd.f32 %v7978_v9, %v4519_v32 }
 0x335   :  { %v6229_v25 = vpop.f32.mrf.mxu1  ;;  %v4563_v7 = vadd.f32 %v4562_v18, %v4561_v11  ;;  %v4615_v55 = vadd.f32 %v4614_v26, %v4613_v27  ;;  %v4618_v46 = vsel %vm74_vm0, %v4596_v40, 0.0 }
 0x336   :  { %v4616_v54 = vsel %vm74_vm0, %v4595_v56, 0.0  ;;  %v8081_v16 = vadd.f32 %v7978_v9, %v4518_v22  ;;  %v4521_v47 = vadd.f32 %v6229_v25, %v4287_v43  ;;  %v4598_v51 = vmul.f32 %v8071_v35, %v8071_v35  ;;  %v4267_v43 = vpop.f32.mrf.mxu0 }
 0x337   :  { %v4481_v52 = vpop.f32.mrf.mxu1  ;;  %v4617_v57 = vadd.f32 %v4616_v54, %v4615_v55  ;;  %v4565_v23 = vadd.f32 %v4564_v37, %v4563_v7  ;;  %v4568_v19 = vsel %vm74_vm0, %v8071_v35, 0.0  ;;  %v4290_v61 = vadd.f32 %v4267_v43, %v4056_v13 }
 0x338   :  { %v4520_v20 = vadd.f32 %v4481_v52, %v4286_v5  ;;  %v4566_v50 = vsel %vm74_vm0, %v8081_v16, 0.0  ;;  %v4597_v0 = vmul.f32 %v8081_v16, %v8081_v16  ;;  %v8091_v14 = vadd.f32 %v7978_v9, %v4521_v47 }
 0x339   :  { %v6232_v42 = vpop.f32.mrf.mxu1  ;;  %v4567_v41 = vadd.f32 %v4566_v50, %v4565_v23  ;;  %v4619_v15 = vadd.f32 %v4618_v46, %v4617_v57  ;;  %v4622_v30 = vsel %vm74_vm0, %v4598_v51, 0.0 }
 0x33a   :  { %v8094_v45 = vadd.f32 %v7978_v9, %v4520_v20  ;;  %v4523_v5 = vadd.f32 %v6232_v42, %v4289_v12  ;;  %v4620_v49 = vsel %vm74_vm0, %v4597_v0, 0.0  ;;  %v4600_v29 = vmul.f32 %v8091_v14, %v8091_v14 }
 0x33b   :  { %v4491_v6 = vpop.f32.mrf.mxu1  ;;  %v4621_v39 = vadd.f32 %v4620_v49, %v4619_v15  ;;  %v4569_v31 = vadd.f32 %v4568_v19, %v4567_v41  ;;  %v4572_v1 = vsel %vm74_vm0, %v8091_v14, 0.0 }
 0x33c   :  { %v4570_v17 = vsel %vm74_vm0, %v8094_v45, 0.0  ;;  %v4599_v60 = vmul.f32 %v8094_v45, %v8094_v45  ;;  %v8107_v36 = vadd.f32 %v7978_v9, %v4523_v5  ;;  %v4522_v48 = vadd.f32 %v4491_v6, %v4288_v3 }
 0x33d   :  { %v6235_v12 = vpop.f32.mrf.mxu1  ;;  %v4571_v4 = vadd.f32 %v4570_v17, %v4569_v31  ;;  %v4623_v63 = vadd.f32 %v4622_v30, %v4621_v39  ;;  %v4626_v27 = vsel %vm74_vm0, %v4600_v29, 0.0 }
 0x33e   :  { %v4624_v34 = vsel %vm74_vm0, %v4599_v60, 0.0  ;;  %v4525_v32 = vadd.f32 %v6235_v12, %v4291_v2  ;;  %v8113_v53 = vadd.f32 %v7978_v9, %v4522_v48  ;;  %v4602_v3 = vmul.f32 %v8107_v36, %v8107_v36 }
 0x33f   :  { %v4501_v28 = vpop.f32.mrf.mxu1  ;;  %v4625_v40 = vadd.f32 %v4624_v34, %v4623_v63  ;;  %v4573_v11 = vadd.f32 %v4572_v1, %v4571_v4  ;;  %v4576_v13 = vsel %vm74_vm0, %v8107_v36, 0.0 }
 0x340   :  { %v4524_v22 = vadd.f32 %v4501_v28, %v4290_v61  ;;  %v4574_v26 = vsel %vm74_vm0, %v8113_v53, 0.0  ;;  %v4601_v18 = vmul.f32 %v8113_v53, %v8113_v53  ;;  %v8123_v56 = vadd.f32 %v7978_v9, %v4525_v32 }
 0x341   :  { %v4575_v25 = vadd.f32 %v4574_v26, %v4573_v11  ;;  %v4627_v59 = vadd.f32 %v4626_v27, %v4625_v40  ;;  %v4630_v54 = vsel %vm74_vm0, %v4602_v3, 0.0 }
 0x342   :  { %v4628_v44 = vsel %vm74_vm0, %v4601_v18, 0.0  ;;  %v4547_v7 = vadd.f32 %v7978_v9, %v4524_v22  ;;  %v4604_v47 = vmul.f32 %v8123_v56, %v8123_v56  ;;  %v4580_v20 = vsel %vm74_vm0, %v8123_v56, 0.0 }
 0x343   :  { %v4629_v55 = vadd.f32 %v4628_v44, %v4627_v59  ;;  %v4577_v37 = vadd.f32 %v4576_v13, %v4575_v25 }
 0x344   :  { %v4578_v52 = vsel %vm74_vm0, %v4547_v7, 0.0  ;;  %v4603_v46 = vmul.f32 %v4547_v7, %v4547_v7  ;;  %v4634_v9 = vsel %vm74_vm0, %v4604_v47, 0.0 }
 0x345   :  { %v4579_v57 = vadd.f32 %v4578_v52, %v4577_v37  ;;  %v4631_v23 = vadd.f32 %v4630_v54, %v4629_v55 }
 0x346   :  { %v4632_v51 = vsel %vm74_vm0, %v4603_v46, 0.0 }
 0x347   :  { %v4581_v50 = vadd.f32 %v4580_v20, %v4579_v57  ;;  %v4633_v0 = vadd.f32 %v4632_v51, %v4631_v23 }
 0x349   :  { %v4582_v42 = vrot.slane %v4581_v50, 4  ;;  %v4635_v43 = vadd.f32 %v4634_v9, %v4633_v0  ;;  %v8368_v0 = vld [vmem:[#allocation26_spill] sm:$0xff] }
 0x34b   :  { %v4583_v41 = vadd.f32 %v4582_v42, %v4581_v50  ;;  %v4636_v15 = vrot.slane %v4635_v43, 4 }
 0x34d   :  { %v4584_v5 = vrot.slane %v4583_v41, 2  ;;  %v4637_v2 = vadd.f32 %v4636_v15, %v4635_v43 }
 0x34f   :  { %v4585_v19 = vadd.f32 %v4584_v5, %v4583_v41  ;;  %v4638_v49 = vrot.slane %v4637_v2, 2 }
 0x351   :  { %v4586_v29 = vrot.slane %v4585_v19, 1  ;;  %v4639_v6 = vadd.f32 %v4638_v49, %v4637_v2 }
 0x353   :  { %v4587_v39 = vadd.f32 %v4586_v29, %v4585_v19  ;;  %v4640_v31 = vrot.slane %v4639_v6, 1 }
 0x355   :  { %v4588_v17 = vmul.f32 0.0078125, %v4587_v39  ;;  %v4641_v60 = vadd.f32 %v4640_v31, %v4639_v6 }
 0x357   :  { %v4642_v61 = vmul.f32 0.0078125, %v4641_v60  ;;  %v4643_v30 = vmul.f32 %v4588_v17, %v4588_v17  ;;  %v4660_v48 = vsub.f32 %v4547_v7, %v4588_v17  ;;  %v4646_v12 = vsub.f32 %v8004_v38, %v4588_v17 }
 0x358   :  { %v4647_v4 = vsub.f32 %v7990_v33, %v4588_v17  ;;  %v4648_v63 = vsub.f32 %v8027_v58, %v4588_v17  ;;  %v4649_v34 = vsub.f32 %v8017_v24, %v4588_v17  ;;  %v4650_v32 = vsub.f32 %v8041_v21, %v4588_v17 }
 0x359   :  { %v4644_v1 = vsub.f32 %v4642_v61, %v4643_v30  ;;  %v4651_v28 = vsub.f32 %v8037_v62, %v4588_v17  ;;  %v4652_v27 = vsub.f32 %v8061_v10, %v4588_v17  ;;  %v4653_v40 = vsub.f32 %v8055_v8, %v4588_v17  ;;  %v5082_v8 = vld [vmem:[%s8203_s7] ss:$0 sm:$0xff]  ;;  %s6339_s7 = smov [#allocation9]  }
 0x35a   :  { %v4654_v11 = vsub.f32 %v8081_v16, %v4588_v17  ;;  %v4655_v22 = vsub.f32 %v8071_v35, %v4588_v17  ;;  %v4656_v38 = vsub.f32 %v8094_v45, %v4588_v17  ;;  %v4657_v33 = vsub.f32 %v8091_v14, %v4588_v17  ;;  %v5083_v14 = vld [vmem:[%s8204_s8] ss:$0 sm:$0xff]  ;;  %s4777_s8 = sshll.u32 %s6339_s7, 4  ;;  %s4778_s8 = int_to_ptr.vmem [resolvable:$true] %s4777_s8 }
 0x35b   :  { %v4645_v58 = vmax.f32 %v4644_v1, 0.0  ;;  %v4658_v24 = vsub.f32 %v8113_v53, %v4588_v17  ;;  %v4659_v21 = vsub.f32 %v8107_v36, %v4588_v17  ;;  %v4661_v3 = vsub.f32 %v8123_v56, %v4588_v17  ;;  %s6307_s10 = scalar_lea.vmem %s4778_s8, 2048  ;;  %p6312_p2 = scmp.lt.s32.totalorder %s4778_s8, %s4778_s8 }
 0x35c   :  { %p6308_p1 = scmp.ne.s32.totalorder %s4778_s8, %s6307_s10  ;;  %p6313_p3 = scmp.lt.s32.totalorder %s6307_s10, %s6307_s10 }
 0x35d   :  { %v4662_v62 = vadd.f32 1e-05, %v4645_v58 }
 0x35e   :  { %p6314_p4 = por %p6313_p3, %p6312_p2 }
 0x35f   :  { %6245 = vrsqrt.f32 %v4662_v62 }
 0x360   :  { %p6315_p5 = pnand %p6314_p4, %p6308_p1 }
 0x36c   :  { %v6246_v10 = vpop.eup %6245 }
 0x36d   :  { %v4678_v16 = vmul.f32 %v6246_v10, %v4660_v48  ;;  %v4664_v35 = vmul.f32 %v6246_v10, %v4646_v12  ;;  %v4665_v26 = vmul.f32 %v6246_v10, %v4647_v4  ;;  %v4666_v45 = vmul.f32 %v6246_v10, %v4648_v63 }
 0x36e   :  { %v4667_v53 = vmul.f32 %v6246_v10, %v4649_v34  ;;  %v4668_v18 = vmul.f32 %v6246_v10, %v4650_v32  ;;  %v4669_v36 = vmul.f32 %v6246_v10, %v4651_v28  ;;  %v4670_v25 = vmul.f32 %v6246_v10, %v4652_v27 }
 0x36f   :  { %v4700_v56 = vmul.f32 %v5082_v8, %v4678_v16  ;;  %v4671_v59 = vmul.f32 %v6246_v10, %v4653_v40  ;;  %v4672_v13 = vmul.f32 %v6246_v10, %v4654_v11  ;;  %v4673_v44 = vmul.f32 %v6246_v10, %v4655_v22  ;;  %v8369_v40 = vld [vmem:[#allocation13_spill] sm:$0xff]  ;;  %v8370_v22 = vld [vmem:[#allocation14_spill] sm:$0xff]  ;;  %v8375_v16 = vld [vmem:[#allocation19_spill] sm:$0xff] }
 0x370   :  { %v4674_v7 = vmul.f32 %v6246_v10, %v4656_v38  ;;  %v4675_v55 = vmul.f32 %v6246_v10, %v4657_v33  ;;  %v4676_v37 = vmul.f32 %v6246_v10, %v4658_v24  ;;  %v4677_v54 = vmul.f32 %v6246_v10, %v4659_v21  ;;  %v8371_v33 = vld [vmem:[#allocation15_spill] sm:$0xff]  ;;  %v8372_v24 = vld [vmem:[#allocation16_spill] sm:$0xff] }
 0x371   :  { %v4722_v47 = vadd.f32 %v5083_v14, %v4700_v56  ;;  %v4679_v52 = vmul.f32 %v6246_v10, %v4661_v3  ;;  %v4686_v46 = vmul.f32 %v5082_v8, %v4664_v35  ;;  %v4687_v57 = vmul.f32 %v5082_v8, %v4665_v26  ;;  %v8373_v3 = vld [vmem:[#allocation17_spill] sm:$0xff]  ;;  %v8374_v10 = vld [vmem:[#allocation18_spill] sm:$0xff]  ;;  %v8376_v26 = vld [vmem:[#allocation27_spill] sm:$0xff] }
 0x372   :  { %v4688_v23 = vmul.f32 %v5082_v8, %v4666_v45  ;;  %v4689_v20 = vmul.f32 %v5082_v8, %v4667_v53  ;;  %v4690_v51 = vmul.f32 %v5082_v8, %v4668_v18  ;;  %v4691_v50 = vmul.f32 %v5082_v8, %v4669_v36  ;;  %v8377_v53 = vld [vmem:[#allocation20_spill] sm:$0xff]  ;;  %v8378_v36 = vld [vmem:[#allocation21_spill] sm:$0xff] }
 0x373   :  { %v4738_v9 = vadd.f32 %v4722_v47, %v8368_v0  ;;  %v4692_v42 = vmul.f32 %v5082_v8, %v4670_v25  ;;  %v4693_v43 = vmul.f32 %v5082_v8, %v4671_v59  ;;  %v4694_v41 = vmul.f32 %v5082_v8, %v4672_v13  ;;  %v8379_v25 = vld [vmem:[#allocation22_spill] sm:$0xff]  ;;  %v8380_v59 = vld [vmem:[#allocation23_spill] sm:$0xff] }
 0x374   :  { %v4695_v15 = vmul.f32 %v5082_v8, %v4673_v44  ;;  %v4696_v5 = vmul.f32 %v5082_v8, %v4674_v7  ;;  %v4697_v2 = vmul.f32 %v5082_v8, %v4675_v55  ;;  %v4698_v19 = vmul.f32 %v5082_v8, %v4676_v37  ;;  %v8381_v44 = vld [vmem:[#allocation24_spill] sm:$0xff]  ;;  %v8382_v55 = vld [vmem:[#allocation25_spill] sm:$0xff] }
 0x375   :  { %v4754_v49 = vmax.f32 %v4738_v9, 0.0  ;;  %v4699_v29 = vmul.f32 %v5082_v8, %v4677_v54  ;;  %v4701_v6 = vmul.f32 %v5082_v8, %v4679_v52  ;;  %v4708_v39 = vadd.f32 %v5083_v14, %v4686_v46  ;;  %v8383_v54 = vld [vmem:[#allocation28_spill] sm:$0xff] }
 0x376   :  { %v4709_v31 = vadd.f32 %v5083_v14, %v4687_v57  ;;  %v4710_v17 = vadd.f32 %v5083_v14, %v4688_v23  ;;  %v4711_v60 = vadd.f32 %v5083_v14, %v4689_v20  ;;  %v4712_v61 = vadd.f32 %v5083_v14, %v4690_v51 }
 0x377   :  { %4770 = vst.msk [vmem:[#allocation9 + $0x70] sm:$0xff] %vm74_vm0, %v4754_v49  ;;  %v4713_v30 = vadd.f32 %v5083_v14, %v4691_v50  ;;  %v4714_v48 = vadd.f32 %v5083_v14, %v4692_v42  ;;  %v4715_v12 = vadd.f32 %v5083_v14, %v4693_v43  ;;  %v4716_v4 = vadd.f32 %v5083_v14, %v4694_v41 }
 0x378   :  { %v4717_v63 = vadd.f32 %v5083_v14, %v4695_v15  ;;  %v4718_v34 = vadd.f32 %v5083_v14, %v4696_v5  ;;  %v4719_v32 = vadd.f32 %v5083_v14, %v4697_v2  ;;  %v4720_v1 = vadd.f32 %v5083_v14, %v4698_v19 }
 0x379   :  { %v4721_v28 = vadd.f32 %v5083_v14, %v4699_v29  ;;  %v4723_v27 = vadd.f32 %v5083_v14, %v4701_v6  ;;  %v4724_v11 = vadd.f32 %v4708_v39, %v8369_v40  ;;  %v4725_v38 = vadd.f32 %v4709_v31, %v8370_v22 }
 0x37a   :  { %v4726_v58 = vadd.f32 %v4710_v17, %v8371_v33  ;;  %v4727_v21 = vadd.f32 %v4711_v60, %v8372_v24  ;;  %v4728_v62 = vadd.f32 %v4712_v61, %v8373_v3  ;;  %v4729_v8 = vadd.f32 %v4713_v30, %v8374_v10 }
 0x37b   :  { %v4730_v35 = vadd.f32 %v4714_v48, %v8375_v16  ;;  %v4731_v45 = vadd.f32 %v4715_v12, %v8376_v26  ;;  %v4732_v18 = vadd.f32 %v4716_v4, %v8377_v53  ;;  %v4733_v14 = vadd.f32 %v4717_v63, %v8378_v36 }
 0x37c   :  { %v4734_v56 = vadd.f32 %v4718_v34, %v8379_v25  ;;  %v4735_v13 = vadd.f32 %v4719_v32, %v8380_v59  ;;  %v4736_v7 = vadd.f32 %v4720_v1, %v8381_v44  ;;  %v4737_v37 = vadd.f32 %v4721_v28, %v8382_v55 }
 0x37d   :  { %v4739_v47 = vadd.f32 %v4723_v27, %v8383_v54  ;;  %v4740_v52 = vmax.f32 %v4724_v11, 0.0  ;;  %v4741_v46 = vmax.f32 %v4725_v38, 0.0  ;;  %v4742_v57 = vmax.f32 %v4726_v58, 0.0 }
 0x37e   :  { %v4743_v23 = vmax.f32 %v4727_v21, 0.0  ;;  %v4744_v20 = vmax.f32 %v4728_v62, 0.0  ;;  %v4745_v51 = vmax.f32 %v4729_v8, 0.0  ;;  %v4746_v50 = vmax.f32 %v4730_v35, 0.0 }
 0x37f   :  { %v4747_v0 = vmax.f32 %v4731_v45, 0.0  ;;  %v4748_v9 = vmax.f32 %v4732_v18, 0.0  ;;  %v4749_v42 = vmax.f32 %v4733_v14, 0.0  ;;  %v4750_v43 = vmax.f32 %v4734_v56, 0.0  ;;  %4756 = vst.msk [vmem:[#allocation9] sm:$0xff] %vm74_vm0, %v4740_v52  ;;  %4757 = vst.msk [vmem:[#allocation9 + $0x8] sm:$0xff] %vm74_vm0, %v4741_v46 }
 0x380   :  { %4758 = vst.msk [vmem:[#allocation9 + $0x10] sm:$0xff] %vm74_vm0, %v4742_v57  ;;  %v4751_v41 = vmax.f32 %v4735_v13, 0.0  ;;  %v4752_v15 = vmax.f32 %v4736_v7, 0.0  ;;  %v4753_v5 = vmax.f32 %v4737_v37, 0.0  ;;  %v4755_v2 = vmax.f32 %v4739_v47, 0.0  ;;  %4759 = vst.msk [vmem:[#allocation9 + $0x18] sm:$0xff] %vm74_vm0, %v4743_v23 }
 0x381   :  { %4760 = vst.msk [vmem:[#allocation9 + $0x20] sm:$0xff] %vm74_vm0, %v4744_v20  ;;  %4761 = vst.msk [vmem:[#allocation9 + $0x28] sm:$0xff] %vm74_vm0, %v4745_v51 }
 0x382   :  { %4762 = vst.msk [vmem:[#allocation9 + $0x30] sm:$0xff] %vm74_vm0, %v4746_v50  ;;  %4763 = vst.msk [vmem:[#allocation9 + $0x38] sm:$0xff] %vm74_vm0, %v4747_v0 }
 0x383   :  { %4764 = vst.msk [vmem:[#allocation9 + $0x40] sm:$0xff] %vm74_vm0, %v4748_v9  ;;  %4765 = vst.msk [vmem:[#allocation9 + $0x48] sm:$0xff] %vm74_vm0, %v4749_v42 }
 0x384   :  { %4766 = vst.msk [vmem:[#allocation9 + $0x50] sm:$0xff] %vm74_vm0, %v4750_v43  ;;  %4767 = vst.msk [vmem:[#allocation9 + $0x58] sm:$0xff] %vm74_vm0, %v4751_v41 }
 0x385   :  { %4768 = vst.msk [vmem:[#allocation9 + $0x60] sm:$0xff] %vm74_vm0, %v4752_v15  ;;  %4769 = vst.msk [vmem:[#allocation9 + $0x68] sm:$0xff] %vm74_vm0, %v4753_v5 }
 0x386   :  { %4771 = vst.msk [vmem:[#allocation9 + $0x78] sm:$0xff] %vm74_vm0, %v4755_v2 }
 0x387   :  { %6318 = shalt.err (!%p6315_p5)
}
 0x388   :  { %4783 = dma.vmem_to_hbm [thread:$0]  %s4778_s8, 2048, %s8205_s9, [#allocation5], %s6335_s14, %s6335_s14, %s6336_s15  }
 0x389   :  { %6331 = dma.done.wait [#allocation5], 2048  }
 0x38a   :  { %6332 = vsyncadd [#allocation5], 4294965248 }
 0x38b   :  { %4787 = vsyncpa [#allocation4], 1 }
 0x38c   :  { %4788 = vsyncpa [#allocation7], 1 }
 0x38d   :  { %4789 = vsyncpa [#allocation5], 1 }

</bundles_post_ra>
